<compile_context>
chip_gen: v6e
topology: v6e:2x2x1
jax: 0.10.0
libtpu: 0.0.40
codegen_flags: <defaults>
</compile_context>

<pallas_src>
import math

import jax
import jax.numpy as jnp
from jax import lax
from jax.experimental import pallas as pl
from jax.experimental.pallas import tpu as pltpu

NEG_SLOPE = 0.2
LN_EPS = 1e-5
MXU_DTYPE = jnp.bfloat16   # bf16 MXU operands; accumulation & elementwise in f32


def _zeros_map(ndim):
    def f(b):
        return (0,) * ndim
    return f


def _make_encoder_kernel(plan, *, T, P, n_weight_refs):
    """Build the fused whole-encoder kernel body.

    plan: list of ("conv", meta) | ("resblock", [meta, ...], post_lrelu)
      meta holds only static ints/bools: Cin, Cout, K, dil, pad, apply_ln.
    Weight refs are consumed positionally in plan order:
      plain conv: w, b          LN sub-conv: w, b, gamma, beta
    """

    def kernel(*refs):
        x_ref = refs[0]
        w_refs = refs[1:1 + n_weight_refs]
        o_ref = refs[1 + n_weight_refs]
        x_scr = refs[2 + n_weight_refs]

        # Zero the padded staging buffer every grid step (scratch is per-core,
        # grid axis is parallel).  The halo rows stay zero for the whole step
        # because every layer only writes the interior rows [P, P+T).
        x_scr[...] = jnp.zeros_like(x_scr)

        ridx = [0]

        def next_ref():
            r = w_refs[ridx[0]]
            ridx[0] += 1
            return r

        def lrelu(v):
            return jnp.where(v >= 0, v, NEG_SLOPE * v)

        def conv_layer(h, m):
            cin, cout = m["Cin"], m["Cout"]
            k_taps, dil, pad = m["K"], m["dil"], m["pad"]
            w_ref = next_ref()
            b_ref = next_ref()
            if m["apply_ln"]:
                g_ref = next_ref()
                bt_ref = next_ref()

            if k_taps == 1 and pad == 0:
                # final 1x1 projection: plain matmul, no padding needed
                y = jnp.dot(h.astype(MXU_DTYPE), w_ref[0],
                            preferred_element_type=jnp.float32)
            else:
                # stage activation at the sublane-aligned interior offset P,
                # then one MXU matmul per (statically unrolled) dilated tap,
                # accumulating into an f32 register tile.
                x_scr[pl.ds(P, T), :cin] = h
                y = None
                for k in range(k_taps):
                    xk = x_scr[pl.ds(P - pad + k * dil, T), :cin]
                    yk = jnp.dot(xk.astype(MXU_DTYPE), w_ref[k],
                                 preferred_element_type=jnp.float32)
                    y = yk if y is None else y + yk
            y = y + b_ref[...]
            if m["apply_ln"]:
                # one-pass LayerNorm over channels: var = E[y^2] - mean^2
                mean = jnp.mean(y, axis=-1, keepdims=True)
                var = jnp.mean(y * y, axis=-1, keepdims=True) - mean * mean
                y = (y - mean) * lax.rsqrt(var + LN_EPS)
                y = y * g_ref[...] + bt_ref[...]
                y = lrelu(y)
            return y

        h = x_ref[...].astype(jnp.float32)
        for seg in plan:
            if seg[0] == "conv":
                h = conv_layer(h, seg[1])
            else:
                _, subs, post = seg
                r = h
                for m in subs:
                    h = conv_layer(h, m)
                h = h + r
                if post:                    # standalone LeakyReLU after the
                    h = lrelu(h)            # last residual block of each group
        assert ridx[0] == n_weight_refs
        o_ref[...] = h.astype(o_ref.dtype)

    return kernel


def _init_conv(key, cin, cout, k):
    """Deterministic kaiming-normal (relu) weight, small uniform bias."""
    kw, kb = jax.random.split(key)
    std = math.sqrt(2.0 / (cin * k))
    w = std * jax.random.normal(kw, (k, cin, cout), jnp.float32)
    bound = 1.0 / math.sqrt(cin * k)
    b = jax.random.uniform(kb, (1, cout), jnp.float32, -bound, bound)
    return w, b


class PallasEncoder:
    """Small-shape instantiation of vqvae.Encoder as ONE fused Pallas kernel."""

    def __init__(self, key,
                 in_channels=(16, 32), out_channels=(32, 16),
                 downsample_scales=(1, 1), kernel_size=3, z_channels=8,
                 dilation=True, stack_kernel_size=3, stack_layers=2,
                 stacks=(2, 2)):
        self.z_channels = z_channels
        self.segments = []                  # metas carry f32 weights (reference)
        keys = iter(jax.random.split(key, 256))

        for cin, cout, ds, stack in zip(in_channels, out_channels,
                                        downsample_scales, stacks):
            assert ds == 1, "strided downsample path not implemented"
            pad = (kernel_size - 1) // 2
            w, b = _init_conv(next(keys), cin, cout, kernel_size)
            self.segments.append(("conv", dict(
                w=w, b=b, Cin=cin, Cout=cout, K=kernel_size, dil=1, pad=pad,
                apply_ln=False)))
            for j in range(stack):
                d = (2 ** j) if dilation else 1
                subs = []
                for _ in range(stack_layers):
                    pad_r = (stack_kernel_size - 1) // 2 * d
                    w, b = _init_conv(next(keys), cout, cout, stack_kernel_size)
                    subs.append(dict(
                        w=w, b=b,
                        g=jnp.ones((1, cout), jnp.float32),
                        bt=jnp.zeros((1, cout), jnp.float32),
                        Cin=cout, Cout=cout, K=stack_kernel_size, dil=d,
                        pad=pad_r, apply_ln=True))
                # the nn.Sequential has one standalone LeakyReLU right after
                # the last residual block of each group -> fuse it there.
                self.segments.append(("resblock", subs, j == stack - 1))

        w, b = _init_conv(next(keys), out_channels[-1], z_channels, 1)
        self.segments.append(("conv", dict(
            w=w, b=b, Cin=out_channels[-1], Cout=z_channels, K=1, dil=1, pad=0,
            apply_ln=False)))

        # ---- flatten kernel inputs (bf16 weights) + static plan for the body
        self.weights = []
        self.plan = []
        max_pad, c_scr = 0, 1
        for seg in self.segments:
            metas = [seg[1]] if seg[0] == "conv" else list(seg[1])
            statics = []
            for m in metas:
                self.weights.append(m["w"].astype(MXU_DTYPE))   # (K, Cin, Cout)
                self.weights.append(m["b"])                     # (1, Cout) f32
                if m["apply_ln"]:
                    self.weights.append(m["g"])
                    self.weights.append(m["bt"])
                statics.append({k: m[k] for k in
                                ("Cin", "Cout", "K", "dil", "pad", "apply_ln")})
                if not (m["K"] == 1 and m["pad"] == 0):
                    max_pad = max(max_pad, m["pad"])
                    c_scr = max(c_scr, m["Cin"])
            if seg[0] == "conv":
                self.plan.append(("conv", statics[0]))
            else:
                self.plan.append(("resblock", statics, seg[2]))
        # halo width: >= max conv padding, rounded up to a sublane multiple so
        # the interior store is 8-row aligned.
        self.P = max(8, ((max_pad + 7) // 8) * 8)
        self.c_scr = c_scr

    def __call__(self, x_bct):
        B, c_in, T = x_bct.shape
        x = jnp.transpose(x_bct, (0, 2, 1))          # (B, C, T) -> (B, T, C)
        kernel = _make_encoder_kernel(self.plan, T=T, P=self.P,
                                      n_weight_refs=len(self.weights))
        in_specs = [pl.BlockSpec((None, T, c_in), lambda b: (b, 0, 0))]
        for arr in self.weights:
            in_specs.append(pl.BlockSpec(tuple(arr.shape), _zeros_map(arr.ndim)))
        out = pl.pallas_call(
            kernel,
            out_shape=jax.ShapeDtypeStruct((B, T, self.z_channels), jnp.float32),
            grid=(B,),
            in_specs=in_specs,
            out_specs=pl.BlockSpec((None, T, self.z_channels),
                                   lambda b: (b, 0, 0)),
            scratch_shapes=[
                pltpu.VMEM((T + 2 * self.P, self.c_scr), jnp.float32),
            ],
            compiler_params=pltpu.CompilerParams(
                dimension_semantics=("parallel",)),
        )(x, *self.weights)
        return jnp.transpose(out, (0, 2, 1))         # back to (B, z_channels, T)

    # ---- pure-JAX f32 reference (XLA conv) for the correctness check ----
    def reference(self, x_bct):
        def lrelu(v):
            return jnp.where(v >= 0, v, NEG_SLOPE * v)

        def one(m, h):
            y = lax.conv_general_dilated(
                h, m["w"], window_strides=(1,), padding=[(m["pad"], m["pad"])],
                rhs_dilation=(m["dil"],),
                dimension_numbers=("NWC", "WIO", "NWC"),
                precision=lax.Precision.HIGHEST)
            y = y + m["b"]
            if m["apply_ln"]:
                mean = y.mean(-1, keepdims=True)
                var = ((y - mean) ** 2).mean(-1, keepdims=True)
                y = (y - mean) / jnp.sqrt(var + LN_EPS) * m["g"] + m["bt"]
                y = lrelu(y)
            return y

        x = jnp.transpose(x_bct, (0, 2, 1)).astype(jnp.float32)
        for seg in self.segments:
            if seg[0] == "conv":
                x = one(seg[1], x)
            else:
                _, subs, post = seg
                h = x
                for m in subs:
                    h = one(m, h)
                x = x + h
                if post:
                    x = lrelu(x)
        return jnp.transpose(x, (0, 2, 1))


if __name__ == "__main__":
    key = jax.random.PRNGKey(0)
    pkey, xkey = jax.random.split(key)

    enc = PallasEncoder(pkey)

    B, C_in, T = 2, 16, 24          # small shapes consistent with (B, in_channels, T)
    x = jax.random.normal(xkey, (B, C_in, T), jnp.float32)

    fwd = jax.jit(enc.__call__)
    y = jax.block_until_ready(fwd(x))
    assert y.shape == (B, enc.z_channels, T), y.shape

    y_ref = jax.block_until_ready(enc.reference(x))
    err = float(jnp.max(jnp.abs(y - y_ref)))
    scale = float(jnp.max(jnp.abs(y_ref)))
    # bf16 MXU operands (f32 accumulation) vs. f32 reference over ~11 layers
    if not err <= 5e-2 * (1.0 + scale):
        raise AssertionError(f"mismatch vs reference: max abs err {err} (scale {scale})")

    print("KERNEL_OK")
</pallas_src>

<mosaic_0001>
module attributes {stable_mosaic.version = 11 : i64} {
  func.func @kernel(%arg0: i32, %arg1: memref<1x24x16xf32, #tpu.memory_space<vmem>>, %arg2: memref<3x16x32xbf16, #tpu.memory_space<vmem>>, %arg3: memref<1x32xf32, #tpu.memory_space<vmem>>, %arg4: memref<3x32x32xbf16, #tpu.memory_space<vmem>>, %arg5: memref<1x32xf32, #tpu.memory_space<vmem>>, %arg6: memref<1x32xf32, #tpu.memory_space<vmem>>, %arg7: memref<1x32xf32, #tpu.memory_space<vmem>>, %arg8: memref<3x32x32xbf16, #tpu.memory_space<vmem>>, %arg9: memref<1x32xf32, #tpu.memory_space<vmem>>, %arg10: memref<1x32xf32, #tpu.memory_space<vmem>>, %arg11: memref<1x32xf32, #tpu.memory_space<vmem>>, %arg12: memref<3x32x32xbf16, #tpu.memory_space<vmem>>, %arg13: memref<1x32xf32, #tpu.memory_space<vmem>>, %arg14: memref<1x32xf32, #tpu.memory_space<vmem>>, %arg15: memref<1x32xf32, #tpu.memory_space<vmem>>, %arg16: memref<3x32x32xbf16, #tpu.memory_space<vmem>>, %arg17: memref<1x32xf32, #tpu.memory_space<vmem>>, %arg18: memref<1x32xf32, #tpu.memory_space<vmem>>, %arg19: memref<1x32xf32, #tpu.memory_space<vmem>>, %arg20: memref<3x32x16xbf16, #tpu.memory_space<vmem>>, %arg21: memref<1x16xf32, #tpu.memory_space<vmem>>, %arg22: memref<3x16x16xbf16, #tpu.memory_space<vmem>>, %arg23: memref<1x16xf32, #tpu.memory_space<vmem>>, %arg24: memref<1x16xf32, #tpu.memory_space<vmem>>, %arg25: memref<1x16xf32, #tpu.memory_space<vmem>>, %arg26: memref<3x16x16xbf16, #tpu.memory_space<vmem>>, %arg27: memref<1x16xf32, #tpu.memory_space<vmem>>, %arg28: memref<1x16xf32, #tpu.memory_space<vmem>>, %arg29: memref<1x16xf32, #tpu.memory_space<vmem>>, %arg30: memref<3x16x16xbf16, #tpu.memory_space<vmem>>, %arg31: memref<1x16xf32, #tpu.memory_space<vmem>>, %arg32: memref<1x16xf32, #tpu.memory_space<vmem>>, %arg33: memref<1x16xf32, #tpu.memory_space<vmem>>, %arg34: memref<3x16x16xbf16, #tpu.memory_space<vmem>>, %arg35: memref<1x16xf32, #tpu.memory_space<vmem>>, %arg36: memref<1x16xf32, #tpu.memory_space<vmem>>, %arg37: memref<1x16xf32, #tpu.memory_space<vmem>>, %arg38: memref<1x16x8xbf16, #tpu.memory_space<vmem>>, %arg39: memref<1x8xf32, #tpu.memory_space<vmem>>, %arg40: memref<1x24x8xf32, #tpu.memory_space<vmem>>, %arg41: memref<40x32xf32, #tpu.memory_space<vmem>>) attributes {dimension_semantics = [#tpu.dimension_semantics<parallel>], iteration_bounds = array<i64: 2>, scalar_prefetch = 0 : i64, scratch_operands = 1 : i64, tpu.core_type = #tpu.core_type<tc>, window_params = [{transform_indices = @transform_0, window_bounds = array<i64: 1, 24, 16>}, {pipeline_mode = #tpu.pipeline_mode<synchronous>, transform_indices = @transform_1, window_bounds = array<i64: 3, 16, 32>}, {pipeline_mode = #tpu.pipeline_mode<synchronous>, transform_indices = @transform_2, window_bounds = array<i64: 1, 32>}, {pipeline_mode = #tpu.pipeline_mode<synchronous>, transform_indices = @transform_3, window_bounds = array<i64: 3, 32, 32>}, {pipeline_mode = #tpu.pipeline_mode<synchronous>, transform_indices = @transform_4, window_bounds = array<i64: 1, 32>}, {pipeline_mode = #tpu.pipeline_mode<synchronous>, transform_indices = @transform_5, window_bounds = array<i64: 1, 32>}, {pipeline_mode = #tpu.pipeline_mode<synchronous>, transform_indices = @transform_6, window_bounds = array<i64: 1, 32>}, {pipeline_mode = #tpu.pipeline_mode<synchronous>, transform_indices = @transform_7, window_bounds = array<i64: 3, 32, 32>}, {pipeline_mode = #tpu.pipeline_mode<synchronous>, transform_indices = @transform_8, window_bounds = array<i64: 1, 32>}, {pipeline_mode = #tpu.pipeline_mode<synchronous>, transform_indices = @transform_9, window_bounds = array<i64: 1, 32>}, {pipeline_mode = #tpu.pipeline_mode<synchronous>, transform_indices = @transform_10, window_bounds = array<i64: 1, 32>}, {pipeline_mode = #tpu.pipeline_mode<synchronous>, transform_indices = @transform_11, window_bounds = array<i64: 3, 32, 32>}, {pipeline_mode = #tpu.pipeline_mode<synchronous>, transform_indices = @transform_12, window_bounds = array<i64: 1, 32>}, {pipeline_mode = #tpu.pipeline_mode<synchronous>, transform_indices = @transform_13, window_bounds = array<i64: 1, 32>}, {pipeline_mode = #tpu.pipeline_mode<synchronous>, transform_indices = @transform_14, window_bounds = array<i64: 1, 32>}, {pipeline_mode = #tpu.pipeline_mode<synchronous>, transform_indices = @transform_15, window_bounds = array<i64: 3, 32, 32>}, {pipeline_mode = #tpu.pipeline_mode<synchronous>, transform_indices = @transform_16, window_bounds = array<i64: 1, 32>}, {pipeline_mode = #tpu.pipeline_mode<synchronous>, transform_indices = @transform_17, window_bounds = array<i64: 1, 32>}, {pipeline_mode = #tpu.pipeline_mode<synchronous>, transform_indices = @transform_18, window_bounds = array<i64: 1, 32>}, {pipeline_mode = #tpu.pipeline_mode<synchronous>, transform_indices = @transform_19, window_bounds = array<i64: 3, 32, 16>}, {pipeline_mode = #tpu.pipeline_mode<synchronous>, transform_indices = @transform_20, window_bounds = array<i64: 1, 16>}, {pipeline_mode = #tpu.pipeline_mode<synchronous>, transform_indices = @transform_21, window_bounds = array<i64: 3, 16, 16>}, {pipeline_mode = #tpu.pipeline_mode<synchronous>, transform_indices = @transform_22, window_bounds = array<i64: 1, 16>}, {pipeline_mode = #tpu.pipeline_mode<synchronous>, transform_indices = @transform_23, window_bounds = array<i64: 1, 16>}, {pipeline_mode = #tpu.pipeline_mode<synchronous>, transform_indices = @transform_24, window_bounds = array<i64: 1, 16>}, {pipeline_mode = #tpu.pipeline_mode<synchronous>, transform_indices = @transform_25, window_bounds = array<i64: 3, 16, 16>}, {pipeline_mode = #tpu.pipeline_mode<synchronous>, transform_indices = @transform_26, window_bounds = array<i64: 1, 16>}, {pipeline_mode = #tpu.pipeline_mode<synchronous>, transform_indices = @transform_27, window_bounds = array<i64: 1, 16>}, {pipeline_mode = #tpu.pipeline_mode<synchronous>, transform_indices = @transform_28, window_bounds = array<i64: 1, 16>}, {pipeline_mode = #tpu.pipeline_mode<synchronous>, transform_indices = @transform_29, window_bounds = array<i64: 3, 16, 16>}, {pipeline_mode = #tpu.pipeline_mode<synchronous>, transform_indices = @transform_30, window_bounds = array<i64: 1, 16>}, {pipeline_mode = #tpu.pipeline_mode<synchronous>, transform_indices = @transform_31, window_bounds = array<i64: 1, 16>}, {pipeline_mode = #tpu.pipeline_mode<synchronous>, transform_indices = @transform_32, window_bounds = array<i64: 1, 16>}, {pipeline_mode = #tpu.pipeline_mode<synchronous>, transform_indices = @transform_33, window_bounds = array<i64: 3, 16, 16>}, {pipeline_mode = #tpu.pipeline_mode<synchronous>, transform_indices = @transform_34, window_bounds = array<i64: 1, 16>}, {pipeline_mode = #tpu.pipeline_mode<synchronous>, transform_indices = @transform_35, window_bounds = array<i64: 1, 16>}, {pipeline_mode = #tpu.pipeline_mode<synchronous>, transform_indices = @transform_36, window_bounds = array<i64: 1, 16>}, {pipeline_mode = #tpu.pipeline_mode<synchronous>, transform_indices = @transform_37, window_bounds = array<i64: 1, 16, 8>}, {pipeline_mode = #tpu.pipeline_mode<synchronous>, transform_indices = @transform_38, window_bounds = array<i64: 1, 8>}, {transform_indices = @transform_39, window_bounds = array<i64: 1, 24, 8>}]} {
    %cst = arith.constant 0.000000e+00 : f32
    %0 = vector.broadcast %cst : f32 to vector<40x32xf32>
    %c0 = arith.constant 0 : index
    %c0_0 = arith.constant 0 : index
    %1 = vector.load %arg41[%c0, %c0_0] : memref<40x32xf32, #tpu.memory_space<vmem>>, vector<40x32xf32>
    tpu.vector_store %arg41[%c0, %c0_0], %0 {strides = array<i32>} : memref<40x32xf32, #tpu.memory_space<vmem>>, vector<40x32xf32>,
    %c0_1 = arith.constant 0 : index
    %c0_2 = arith.constant 0 : index
    %c0_3 = arith.constant 0 : index
    %2 = vector.load %arg1[%c0_1, %c0_2, %c0_3] : memref<1x24x16xf32, #tpu.memory_space<vmem>>, vector<1x24x16xf32>
    %3 = vector.shape_cast %2 : vector<1x24x16xf32> to vector<24x16xf32>
    %c8 = arith.constant 8 : index
    %c0_4 = arith.constant 0 : index
    %4 = vector.load %arg41[%c8, %c0_4] : memref<40x32xf32, #tpu.memory_space<vmem>>, vector<24x16xf32>
    tpu.vector_store %arg41[%c8, %c0_4], %3 {strides = array<i32>} : memref<40x32xf32, #tpu.memory_space<vmem>>, vector<24x16xf32>,
    %c7 = arith.constant 7 : index
    %c0_5 = arith.constant 0 : index
    %5 = vector.load %arg41[%c7, %c0_5] : memref<40x32xf32, #tpu.memory_space<vmem>>, vector<24x16xf32>
    %6 = arith.truncf %5 : vector<24x16xf32> to vector<24x16xbf16>
    %c0_6 = arith.constant 0 : index
    %c0_7 = arith.constant 0 : index
    %c0_8 = arith.constant 0 : index
    %7 = vector.load %arg2[%c0_6, %c0_7, %c0_8] : memref<3x16x32xbf16, #tpu.memory_space<vmem>>, vector<1x16x32xbf16>
    %8 = vector.shape_cast %7 : vector<1x16x32xbf16> to vector<16x32xbf16>
    %cst_9 = arith.constant dense<0.000000e+00> : vector<24x32xf32>
    %9 = tpu.matmul %6, %8, %cst_9 {dimension_numbers = #tpu.dot_dimension_numbers<[1], [0], [0], [1], [0, 0, 1, 1], [], []>} : vector<24x16xbf16>, vector<16x32xbf16>, vector<24x32xf32> -> vector<24x32xf32>
    %c8_10 = arith.constant 8 : index
    %c0_11 = arith.constant 0 : index
    %10 = vector.load %arg41[%c8_10, %c0_11] : memref<40x32xf32, #tpu.memory_space<vmem>>, vector<24x16xf32>
    %11 = arith.truncf %10 : vector<24x16xf32> to vector<24x16xbf16>
    %c1 = arith.constant 1 : index
    %c0_12 = arith.constant 0 : index
    %c0_13 = arith.constant 0 : index
    %12 = vector.load %arg2[%c1, %c0_12, %c0_13] : memref<3x16x32xbf16, #tpu.memory_space<vmem>>, vector<1x16x32xbf16>
    %13 = vector.shape_cast %12 : vector<1x16x32xbf16> to vector<16x32xbf16>
    %cst_14 = arith.constant dense<0.000000e+00> : vector<24x32xf32>
    %14 = tpu.matmul %11, %13, %cst_14 {dimension_numbers = #tpu.dot_dimension_numbers<[1], [0], [0], [1], [0, 0, 1, 1], [], []>} : vector<24x16xbf16>, vector<16x32xbf16>, vector<24x32xf32> -> vector<24x32xf32>
    %15 = arith.addf %9, %14 : vector<24x32xf32>
    %c9 = arith.constant 9 : index
    %c0_15 = arith.constant 0 : index
    %16 = vector.load %arg41[%c9, %c0_15] : memref<40x32xf32, #tpu.memory_space<vmem>>, vector<24x16xf32>
    %17 = arith.truncf %16 : vector<24x16xf32> to vector<24x16xbf16>
    %c2 = arith.constant 2 : index
    %c0_16 = arith.constant 0 : index
    %c0_17 = arith.constant 0 : index
    %18 = vector.load %arg2[%c2, %c0_16, %c0_17] : memref<3x16x32xbf16, #tpu.memory_space<vmem>>, vector<1x16x32xbf16>
    %19 = vector.shape_cast %18 : vector<1x16x32xbf16> to vector<16x32xbf16>
    %cst_18 = arith.constant dense<0.000000e+00> : vector<24x32xf32>
    %20 = tpu.matmul %17, %19, %cst_18 {dimension_numbers = #tpu.dot_dimension_numbers<[1], [0], [0], [1], [0, 0, 1, 1], [], []>} : vector<24x16xbf16>, vector<16x32xbf16>, vector<24x32xf32> -> vector<24x32xf32>
    %21 = arith.addf %15, %20 : vector<24x32xf32>
    %c0_19 = arith.constant 0 : index
    %c0_20 = arith.constant 0 : index
    %22 = vector.load %arg3[%c0_19, %c0_20] : memref<1x32xf32, #tpu.memory_space<vmem>>, vector<1x32xf32>
    %23 = vector.broadcast %22 : vector<1x32xf32> to vector<24x32xf32>
    %24 = arith.addf %21, %23 : vector<24x32xf32>
    %c8_21 = arith.constant 8 : index
    %c0_22 = arith.constant 0 : index
    %25 = vector.load %arg41[%c8_21, %c0_22] : memref<40x32xf32, #tpu.memory_space<vmem>>, vector<24x32xf32>
    tpu.vector_store %arg41[%c8_21, %c0_22], %24 {strides = array<i32>} : memref<40x32xf32, #tpu.memory_space<vmem>>, vector<24x32xf32>,
    %c7_23 = arith.constant 7 : index
    %c0_24 = arith.constant 0 : index
    %26 = vector.load %arg41[%c7_23, %c0_24] : memref<40x32xf32, #tpu.memory_space<vmem>>, vector<24x32xf32>
    %27 = arith.truncf %26 : vector<24x32xf32> to vector<24x32xbf16>
    %c0_25 = arith.constant 0 : index
    %c0_26 = arith.constant 0 : index
    %c0_27 = arith.constant 0 : index
    %28 = vector.load %arg4[%c0_25, %c0_26, %c0_27] : memref<3x32x32xbf16, #tpu.memory_space<vmem>>, vector<1x32x32xbf16>
    %29 = vector.shape_cast %28 : vector<1x32x32xbf16> to vector<32x32xbf16>
    %cst_28 = arith.constant dense<0.000000e+00> : vector<24x32xf32>
    %30 = tpu.matmul %27, %29, %cst_28 {dimension_numbers = #tpu.dot_dimension_numbers<[1], [0], [0], [1], [0, 0, 1, 1], [], []>} : vector<24x32xbf16>, vector<32x32xbf16>, vector<24x32xf32> -> vector<24x32xf32>
    %c8_29 = arith.constant 8 : index
    %c0_30 = arith.constant 0 : index
    %31 = vector.load %arg41[%c8_29, %c0_30] : memref<40x32xf32, #tpu.memory_space<vmem>>, vector<24x32xf32>
    %32 = arith.truncf %31 : vector<24x32xf32> to vector<24x32xbf16>
    %c1_31 = arith.constant 1 : index
    %c0_32 = arith.constant 0 : index
    %c0_33 = arith.constant 0 : index
    %33 = vector.load %arg4[%c1_31, %c0_32, %c0_33] : memref<3x32x32xbf16, #tpu.memory_space<vmem>>, vector<1x32x32xbf16>
    %34 = vector.shape_cast %33 : vector<1x32x32xbf16> to vector<32x32xbf16>
    %cst_34 = arith.constant dense<0.000000e+00> : vector<24x32xf32>
    %35 = tpu.matmul %32, %34, %cst_34 {dimension_numbers = #tpu.dot_dimension_numbers<[1], [0], [0], [1], [0, 0, 1, 1], [], []>} : vector<24x32xbf16>, vector<32x32xbf16>, vector<24x32xf32> -> vector<24x32xf32>
    %36 = arith.addf %30, %35 : vector<24x32xf32>
    %c9_35 = arith.constant 9 : index
    %c0_36 = arith.constant 0 : index
    %37 = vector.load %arg41[%c9_35, %c0_36] : memref<40x32xf32, #tpu.memory_space<vmem>>, vector<24x32xf32>
    %38 = arith.truncf %37 : vector<24x32xf32> to vector<24x32xbf16>
    %c2_37 = arith.constant 2 : index
    %c0_38 = arith.constant 0 : index
    %c0_39 = arith.constant 0 : index
    %39 = vector.load %arg4[%c2_37, %c0_38, %c0_39] : memref<3x32x32xbf16, #tpu.memory_space<vmem>>, vector<1x32x32xbf16>
    %40 = vector.shape_cast %39 : vector<1x32x32xbf16> to vector<32x32xbf16>
    %cst_40 = arith.constant dense<0.000000e+00> : vector<24x32xf32>
    %41 = tpu.matmul %38, %40, %cst_40 {dimension_numbers = #tpu.dot_dimension_numbers<[1], [0], [0], [1], [0, 0, 1, 1], [], []>} : vector<24x32xbf16>, vector<32x32xbf16>, vector<24x32xf32> -> vector<24x32xf32>
    %42 = arith.addf %36, %41 : vector<24x32xf32>
    %c0_41 = arith.constant 0 : index
    %c0_42 = arith.constant 0 : index
    %43 = vector.load %arg5[%c0_41, %c0_42] : memref<1x32xf32, #tpu.memory_space<vmem>>, vector<1x32xf32>
    %44 = vector.broadcast %43 : vector<1x32xf32> to vector<24x32xf32>
    %45 = arith.addf %42, %44 : vector<24x32xf32>
    %cst_43 = arith.constant dense<0.000000e+00> : vector<24xf32>
    %46 = vector.multi_reduction <add>, %45, %cst_43 [1] : vector<24x32xf32> to vector<24xf32>
    %47 = vector.shape_cast %46 : vector<24xf32> to vector<24x1xf32>
    %cst_44 = arith.constant 3.200000e+01 : f32
    %48 = vector.broadcast %cst_44 : f32 to vector<24x1xf32>
    %49 = arith.divf %47, %48 : vector<24x1xf32>
    %50 = arith.mulf %45, %45 : vector<24x32xf32>
    %cst_45 = arith.constant dense<0.000000e+00> : vector<24xf32>
    %51 = vector.multi_reduction <add>, %50, %cst_45 [1] : vector<24x32xf32> to vector<24xf32>
    %52 = vector.shape_cast %51 : vector<24xf32> to vector<24x1xf32>
    %cst_46 = arith.constant 3.200000e+01 : f32
    %53 = vector.broadcast %cst_46 : f32 to vector<24x1xf32>
    %54 = arith.divf %52, %53 : vector<24x1xf32>
    %55 = arith.mulf %49, %49 : vector<24x1xf32>
    %56 = arith.subf %54, %55 : vector<24x1xf32>
    %57 = vector.broadcast %49 : vector<24x1xf32> to vector<24x32xf32>
    %58 = arith.subf %45, %57 : vector<24x32xf32>
    %cst_47 = arith.constant 9.99999974E-6 : f32
    %59 = vector.broadcast %cst_47 : f32 to vector<24x1xf32>
    %60 = arith.addf %56, %59 : vector<24x1xf32>
    %61 = math.rsqrt %60 : vector<24x1xf32>
    %62 = vector.broadcast %61 : vector<24x1xf32> to vector<24x32xf32>
    %63 = arith.mulf %58, %62 : vector<24x32xf32>
    %c0_48 = arith.constant 0 : index
    %c0_49 = arith.constant 0 : index
    %64 = vector.load %arg6[%c0_48, %c0_49] : memref<1x32xf32, #tpu.memory_space<vmem>>, vector<1x32xf32>
    %65 = vector.broadcast %64 : vector<1x32xf32> to vector<24x32xf32>
    %66 = arith.mulf %63, %65 : vector<24x32xf32>
    %c0_50 = arith.constant 0 : index
    %c0_51 = arith.constant 0 : index
    %67 = vector.load %arg7[%c0_50, %c0_51] : memref<1x32xf32, #tpu.memory_space<vmem>>, vector<1x32xf32>
    %68 = vector.broadcast %67 : vector<1x32xf32> to vector<24x32xf32>
    %69 = arith.addf %66, %68 : vector<24x32xf32>
    %cst_52 = arith.constant 0.000000e+00 : f32
    %70 = vector.broadcast %cst_52 : f32 to vector<24x32xf32>
    %71 = arith.cmpf oge, %69, %70 : vector<24x32xf32>
    %cst_53 = arith.constant 2.000000e-01 : f32
    %72 = vector.broadcast %cst_53 : f32 to vector<24x32xf32>
    %73 = arith.mulf %72, %69 : vector<24x32xf32>
    %74 = arith.select %71, %69, %73 : vector<24x32xi1>, vector<24x32xf32>
    %c8_54 = arith.constant 8 : index
    %c0_55 = arith.constant 0 : index
    %75 = vector.load %arg41[%c8_54, %c0_55] : memref<40x32xf32, #tpu.memory_space<vmem>>, vector<24x32xf32>
    tpu.vector_store %arg41[%c8_54, %c0_55], %74 {strides = array<i32>} : memref<40x32xf32, #tpu.memory_space<vmem>>, vector<24x32xf32>,
    %c7_56 = arith.constant 7 : index
    %c0_57 = arith.constant 0 : index
    %76 = vector.load %arg41[%c7_56, %c0_57] : memref<40x32xf32, #tpu.memory_space<vmem>>, vector<24x32xf32>
    %77 = arith.truncf %76 : vector<24x32xf32> to vector<24x32xbf16>
    %c0_58 = arith.constant 0 : index
    %c0_59 = arith.constant 0 : index
    %c0_60 = arith.constant 0 : index
    %78 = vector.load %arg8[%c0_58, %c0_59, %c0_60] : memref<3x32x32xbf16, #tpu.memory_space<vmem>>, vector<1x32x32xbf16>
    %79 = vector.shape_cast %78 : vector<1x32x32xbf16> to vector<32x32xbf16>
    %cst_61 = arith.constant dense<0.000000e+00> : vector<24x32xf32>
    %80 = tpu.matmul %77, %79, %cst_61 {dimension_numbers = #tpu.dot_dimension_numbers<[1], [0], [0], [1], [0, 0, 1, 1], [], []>} : vector<24x32xbf16>, vector<32x32xbf16>, vector<24x32xf32> -> vector<24x32xf32>
    %c8_62 = arith.constant 8 : index
    %c0_63 = arith.constant 0 : index
    %81 = vector.load %arg41[%c8_62, %c0_63] : memref<40x32xf32, #tpu.memory_space<vmem>>, vector<24x32xf32>
    %82 = arith.truncf %81 : vector<24x32xf32> to vector<24x32xbf16>
    %c1_64 = arith.constant 1 : index
    %c0_65 = arith.constant 0 : index
    %c0_66 = arith.constant 0 : index
    %83 = vector.load %arg8[%c1_64, %c0_65, %c0_66] : memref<3x32x32xbf16, #tpu.memory_space<vmem>>, vector<1x32x32xbf16>
    %84 = vector.shape_cast %83 : vector<1x32x32xbf16> to vector<32x32xbf16>
    %cst_67 = arith.constant dense<0.000000e+00> : vector<24x32xf32>
    %85 = tpu.matmul %82, %84, %cst_67 {dimension_numbers = #tpu.dot_dimension_numbers<[1], [0], [0], [1], [0, 0, 1, 1], [], []>} : vector<24x32xbf16>, vector<32x32xbf16>, vector<24x32xf32> -> vector<24x32xf32>
    %86 = arith.addf %80, %85 : vector<24x32xf32>
    %c9_68 = arith.constant 9 : index
    %c0_69 = arith.constant 0 : index
    %87 = vector.load %arg41[%c9_68, %c0_69] : memref<40x32xf32, #tpu.memory_space<vmem>>, vector<24x32xf32>
    %88 = arith.truncf %87 : vector<24x32xf32> to vector<24x32xbf16>
    %c2_70 = arith.constant 2 : index
    %c0_71 = arith.constant 0 : index
    %c0_72 = arith.constant 0 : index
    %89 = vector.load %arg8[%c2_70, %c0_71, %c0_72] : memref<3x32x32xbf16, #tpu.memory_space<vmem>>, vector<1x32x32xbf16>
    %90 = vector.shape_cast %89 : vector<1x32x32xbf16> to vector<32x32xbf16>
    %cst_73 = arith.constant dense<0.000000e+00> : vector<24x32xf32>
    %91 = tpu.matmul %88, %90, %cst_73 {dimension_numbers = #tpu.dot_dimension_numbers<[1], [0], [0], [1], [0, 0, 1, 1], [], []>} : vector<24x32xbf16>, vector<32x32xbf16>, vector<24x32xf32> -> vector<24x32xf32>
    %92 = arith.addf %86, %91 : vector<24x32xf32>
    %c0_74 = arith.constant 0 : index
    %c0_75 = arith.constant 0 : index
    %93 = vector.load %arg9[%c0_74, %c0_75] : memref<1x32xf32, #tpu.memory_space<vmem>>, vector<1x32xf32>
    %94 = vector.broadcast %93 : vector<1x32xf32> to vector<24x32xf32>
    %95 = arith.addf %92, %94 : vector<24x32xf32>
    %cst_76 = arith.constant dense<0.000000e+00> : vector<24xf32>
    %96 = vector.multi_reduction <add>, %95, %cst_76 [1] : vector<24x32xf32> to vector<24xf32>
    %97 = vector.shape_cast %96 : vector<24xf32> to vector<24x1xf32>
    %cst_77 = arith.constant 3.200000e+01 : f32
    %98 = vector.broadcast %cst_77 : f32 to vector<24x1xf32>
    %99 = arith.divf %97, %98 : vector<24x1xf32>
    %100 = arith.mulf %95, %95 : vector<24x32xf32>
    %cst_78 = arith.constant dense<0.000000e+00> : vector<24xf32>
    %101 = vector.multi_reduction <add>, %100, %cst_78 [1] : vector<24x32xf32> to vector<24xf32>
    %102 = vector.shape_cast %101 : vector<24xf32> to vector<24x1xf32>
    %cst_79 = arith.constant 3.200000e+01 : f32
    %103 = vector.broadcast %cst_79 : f32 to vector<24x1xf32>
    %104 = arith.divf %102, %103 : vector<24x1xf32>
    %105 = arith.mulf %99, %99 : vector<24x1xf32>
    %106 = arith.subf %104, %105 : vector<24x1xf32>
    %107 = vector.broadcast %99 : vector<24x1xf32> to vector<24x32xf32>
    %108 = arith.subf %95, %107 : vector<24x32xf32>
    %cst_80 = arith.constant 9.99999974E-6 : f32
    %109 = vector.broadcast %cst_80 : f32 to vector<24x1xf32>
    %110 = arith.addf %106, %109 : vector<24x1xf32>
    %111 = math.rsqrt %110 : vector<24x1xf32>
    %112 = vector.broadcast %111 : vector<24x1xf32> to vector<24x32xf32>
    %113 = arith.mulf %108, %112 : vector<24x32xf32>
    %c0_81 = arith.constant 0 : index
    %c0_82 = arith.constant 0 : index
    %114 = vector.load %arg10[%c0_81, %c0_82] : memref<1x32xf32, #tpu.memory_space<vmem>>, vector<1x32xf32>
    %115 = vector.broadcast %114 : vector<1x32xf32> to vector<24x32xf32>
    %116 = arith.mulf %113, %115 : vector<24x32xf32>
    %c0_83 = arith.constant 0 : index
    %c0_84 = arith.constant 0 : index
    %117 = vector.load %arg11[%c0_83, %c0_84] : memref<1x32xf32, #tpu.memory_space<vmem>>, vector<1x32xf32>
    %118 = vector.broadcast %117 : vector<1x32xf32> to vector<24x32xf32>
    %119 = arith.addf %116, %118 : vector<24x32xf32>
    %cst_85 = arith.constant 0.000000e+00 : f32
    %120 = vector.broadcast %cst_85 : f32 to vector<24x32xf32>
    %121 = arith.cmpf oge, %119, %120 : vector<24x32xf32>
    %cst_86 = arith.constant 2.000000e-01 : f32
    %122 = vector.broadcast %cst_86 : f32 to vector<24x32xf32>
    %123 = arith.mulf %122, %119 : vector<24x32xf32>
    %124 = arith.select %121, %119, %123 : vector<24x32xi1>, vector<24x32xf32>
    %125 = arith.addf %124, %24 : vector<24x32xf32>
    %c8_87 = arith.constant 8 : index
    %c0_88 = arith.constant 0 : index
    %126 = vector.load %arg41[%c8_87, %c0_88] : memref<40x32xf32, #tpu.memory_space<vmem>>, vector<24x32xf32>
    tpu.vector_store %arg41[%c8_87, %c0_88], %125 {strides = array<i32>} : memref<40x32xf32, #tpu.memory_space<vmem>>, vector<24x32xf32>,
    %c6 = arith.constant 6 : index
    %c0_89 = arith.constant 0 : index
    %127 = vector.load %arg41[%c6, %c0_89] : memref<40x32xf32, #tpu.memory_space<vmem>>, vector<24x32xf32>
    %128 = arith.truncf %127 : vector<24x32xf32> to vector<24x32xbf16>
    %c0_90 = arith.constant 0 : index
    %c0_91 = arith.constant 0 : index
    %c0_92 = arith.constant 0 : index
    %129 = vector.load %arg12[%c0_90, %c0_91, %c0_92] : memref<3x32x32xbf16, #tpu.memory_space<vmem>>, vector<1x32x32xbf16>
    %130 = vector.shape_cast %129 : vector<1x32x32xbf16> to vector<32x32xbf16>
    %cst_93 = arith.constant dense<0.000000e+00> : vector<24x32xf32>
    %131 = tpu.matmul %128, %130, %cst_93 {dimension_numbers = #tpu.dot_dimension_numbers<[1], [0], [0], [1], [0, 0, 1, 1], [], []>} : vector<24x32xbf16>, vector<32x32xbf16>, vector<24x32xf32> -> vector<24x32xf32>
    %c8_94 = arith.constant 8 : index
    %c0_95 = arith.constant 0 : index
    %132 = vector.load %arg41[%c8_94, %c0_95] : memref<40x32xf32, #tpu.memory_space<vmem>>, vector<24x32xf32>
    %133 = arith.truncf %132 : vector<24x32xf32> to vector<24x32xbf16>
    %c1_96 = arith.constant 1 : index
    %c0_97 = arith.constant 0 : index
    %c0_98 = arith.constant 0 : index
    %134 = vector.load %arg12[%c1_96, %c0_97, %c0_98] : memref<3x32x32xbf16, #tpu.memory_space<vmem>>, vector<1x32x32xbf16>
    %135 = vector.shape_cast %134 : vector<1x32x32xbf16> to vector<32x32xbf16>
    %cst_99 = arith.constant dense<0.000000e+00> : vector<24x32xf32>
    %136 = tpu.matmul %133, %135, %cst_99 {dimension_numbers = #tpu.dot_dimension_numbers<[1], [0], [0], [1], [0, 0, 1, 1], [], []>} : vector<24x32xbf16>, vector<32x32xbf16>, vector<24x32xf32> -> vector<24x32xf32>
    %137 = arith.addf %131, %136 : vector<24x32xf32>
    %c10 = arith.constant 10 : index
    %c0_100 = arith.constant 0 : index
    %138 = vector.load %arg41[%c10, %c0_100] : memref<40x32xf32, #tpu.memory_space<vmem>>, vector<24x32xf32>
    %139 = arith.truncf %138 : vector<24x32xf32> to vector<24x32xbf16>
    %c2_101 = arith.constant 2 : index
    %c0_102 = arith.constant 0 : index
    %c0_103 = arith.constant 0 : index
    %140 = vector.load %arg12[%c2_101, %c0_102, %c0_103] : memref<3x32x32xbf16, #tpu.memory_space<vmem>>, vector<1x32x32xbf16>
    %141 = vector.shape_cast %140 : vector<1x32x32xbf16> to vector<32x32xbf16>
    %cst_104 = arith.constant dense<0.000000e+00> : vector<24x32xf32>
    %142 = tpu.matmul %139, %141, %cst_104 {dimension_numbers = #tpu.dot_dimension_numbers<[1], [0], [0], [1], [0, 0, 1, 1], [], []>} : vector<24x32xbf16>, vector<32x32xbf16>, vector<24x32xf32> -> vector<24x32xf32>
    %143 = arith.addf %137, %142 : vector<24x32xf32>
    %c0_105 = arith.constant 0 : index
    %c0_106 = arith.constant 0 : index
    %144 = vector.load %arg13[%c0_105, %c0_106] : memref<1x32xf32, #tpu.memory_space<vmem>>, vector<1x32xf32>
    %145 = vector.broadcast %144 : vector<1x32xf32> to vector<24x32xf32>
    %146 = arith.addf %143, %145 : vector<24x32xf32>
    %cst_107 = arith.constant dense<0.000000e+00> : vector<24xf32>
    %147 = vector.multi_reduction <add>, %146, %cst_107 [1] : vector<24x32xf32> to vector<24xf32>
    %148 = vector.shape_cast %147 : vector<24xf32> to vector<24x1xf32>
    %cst_108 = arith.constant 3.200000e+01 : f32
    %149 = vector.broadcast %cst_108 : f32 to vector<24x1xf32>
    %150 = arith.divf %148, %149 : vector<24x1xf32>
    %151 = arith.mulf %146, %146 : vector<24x32xf32>
    %cst_109 = arith.constant dense<0.000000e+00> : vector<24xf32>
    %152 = vector.multi_reduction <add>, %151, %cst_109 [1] : vector<24x32xf32> to vector<24xf32>
    %153 = vector.shape_cast %152 : vector<24xf32> to vector<24x1xf32>
    %cst_110 = arith.constant 3.200000e+01 : f32
    %154 = vector.broadcast %cst_110 : f32 to vector<24x1xf32>
    %155 = arith.divf %153, %154 : vector<24x1xf32>
    %156 = arith.mulf %150, %150 : vector<24x1xf32>
    %157 = arith.subf %155, %156 : vector<24x1xf32>
    %158 = vector.broadcast %150 : vector<24x1xf32> to vector<24x32xf32>
    %159 = arith.subf %146, %158 : vector<24x32xf32>
    %cst_111 = arith.constant 9.99999974E-6 : f32
    %160 = vector.broadcast %cst_111 : f32 to vector<24x1xf32>
    %161 = arith.addf %157, %160 : vector<24x1xf32>
    %162 = math.rsqrt %161 : vector<24x1xf32>
    %163 = vector.broadcast %162 : vector<24x1xf32> to vector<24x32xf32>
    %164 = arith.mulf %159, %163 : vector<24x32xf32>
    %c0_112 = arith.constant 0 : index
    %c0_113 = arith.constant 0 : index
    %165 = vector.load %arg14[%c0_112, %c0_113] : memref<1x32xf32, #tpu.memory_space<vmem>>, vector<1x32xf32>
    %166 = vector.broadcast %165 : vector<1x32xf32> to vector<24x32xf32>
    %167 = arith.mulf %164, %166 : vector<24x32xf32>
    %c0_114 = arith.constant 0 : index
    %c0_115 = arith.constant 0 : index
    %168 = vector.load %arg15[%c0_114, %c0_115] : memref<1x32xf32, #tpu.memory_space<vmem>>, vector<1x32xf32>
    %169 = vector.broadcast %168 : vector<1x32xf32> to vector<24x32xf32>
    %170 = arith.addf %167, %169 : vector<24x32xf32>
    %cst_116 = arith.constant 0.000000e+00 : f32
    %171 = vector.broadcast %cst_116 : f32 to vector<24x32xf32>
    %172 = arith.cmpf oge, %170, %171 : vector<24x32xf32>
    %cst_117 = arith.constant 2.000000e-01 : f32
    %173 = vector.broadcast %cst_117 : f32 to vector<24x32xf32>
    %174 = arith.mulf %173, %170 : vector<24x32xf32>
    %175 = arith.select %172, %170, %174 : vector<24x32xi1>, vector<24x32xf32>
    %c8_118 = arith.constant 8 : index
    %c0_119 = arith.constant 0 : index
    %176 = vector.load %arg41[%c8_118, %c0_119] : memref<40x32xf32, #tpu.memory_space<vmem>>, vector<24x32xf32>
    tpu.vector_store %arg41[%c8_118, %c0_119], %175 {strides = array<i32>} : memref<40x32xf32, #tpu.memory_space<vmem>>, vector<24x32xf32>,
    %c6_120 = arith.constant 6 : index
    %c0_121 = arith.constant 0 : index
    %177 = vector.load %arg41[%c6_120, %c0_121] : memref<40x32xf32, #tpu.memory_space<vmem>>, vector<24x32xf32>
    %178 = arith.truncf %177 : vector<24x32xf32> to vector<24x32xbf16>
    %c0_122 = arith.constant 0 : index
    %c0_123 = arith.constant 0 : index
    %c0_124 = arith.constant 0 : index
    %179 = vector.load %arg16[%c0_122, %c0_123, %c0_124] : memref<3x32x32xbf16, #tpu.memory_space<vmem>>, vector<1x32x32xbf16>
    %180 = vector.shape_cast %179 : vector<1x32x32xbf16> to vector<32x32xbf16>
    %cst_125 = arith.constant dense<0.000000e+00> : vector<24x32xf32>
    %181 = tpu.matmul %178, %180, %cst_125 {dimension_numbers = #tpu.dot_dimension_numbers<[1], [0], [0], [1], [0, 0, 1, 1], [], []>} : vector<24x32xbf16>, vector<32x32xbf16>, vector<24x32xf32> -> vector<24x32xf32>
    %c8_126 = arith.constant 8 : index
    %c0_127 = arith.constant 0 : index
    %182 = vector.load %arg41[%c8_126, %c0_127] : memref<40x32xf32, #tpu.memory_space<vmem>>, vector<24x32xf32>
    %183 = arith.truncf %182 : vector<24x32xf32> to vector<24x32xbf16>
    %c1_128 = arith.constant 1 : index
    %c0_129 = arith.constant 0 : index
    %c0_130 = arith.constant 0 : index
    %184 = vector.load %arg16[%c1_128, %c0_129, %c0_130] : memref<3x32x32xbf16, #tpu.memory_space<vmem>>, vector<1x32x32xbf16>
    %185 = vector.shape_cast %184 : vector<1x32x32xbf16> to vector<32x32xbf16>
    %cst_131 = arith.constant dense<0.000000e+00> : vector<24x32xf32>
    %186 = tpu.matmul %183, %185, %cst_131 {dimension_numbers = #tpu.dot_dimension_numbers<[1], [0], [0], [1], [0, 0, 1, 1], [], []>} : vector<24x32xbf16>, vector<32x32xbf16>, vector<24x32xf32> -> vector<24x32xf32>
    %187 = arith.addf %181, %186 : vector<24x32xf32>
    %c10_132 = arith.constant 10 : index
    %c0_133 = arith.constant 0 : index
    %188 = vector.load %arg41[%c10_132, %c0_133] : memref<40x32xf32, #tpu.memory_space<vmem>>, vector<24x32xf32>
    %189 = arith.truncf %188 : vector<24x32xf32> to vector<24x32xbf16>
    %c2_134 = arith.constant 2 : index
    %c0_135 = arith.constant 0 : index
    %c0_136 = arith.constant 0 : index
    %190 = vector.load %arg16[%c2_134, %c0_135, %c0_136] : memref<3x32x32xbf16, #tpu.memory_space<vmem>>, vector<1x32x32xbf16>
    %191 = vector.shape_cast %190 : vector<1x32x32xbf16> to vector<32x32xbf16>
    %cst_137 = arith.constant dense<0.000000e+00> : vector<24x32xf32>
    %192 = tpu.matmul %189, %191, %cst_137 {dimension_numbers = #tpu.dot_dimension_numbers<[1], [0], [0], [1], [0, 0, 1, 1], [], []>} : vector<24x32xbf16>, vector<32x32xbf16>, vector<24x32xf32> -> vector<24x32xf32>
    %193 = arith.addf %187, %192 : vector<24x32xf32>
    %c0_138 = arith.constant 0 : index
    %c0_139 = arith.constant 0 : index
    %194 = vector.load %arg17[%c0_138, %c0_139] : memref<1x32xf32, #tpu.memory_space<vmem>>, vector<1x32xf32>
    %195 = vector.broadcast %194 : vector<1x32xf32> to vector<24x32xf32>
    %196 = arith.addf %193, %195 : vector<24x32xf32>
    %cst_140 = arith.constant dense<0.000000e+00> : vector<24xf32>
    %197 = vector.multi_reduction <add>, %196, %cst_140 [1] : vector<24x32xf32> to vector<24xf32>
    %198 = vector.shape_cast %197 : vector<24xf32> to vector<24x1xf32>
    %cst_141 = arith.constant 3.200000e+01 : f32
    %199 = vector.broadcast %cst_141 : f32 to vector<24x1xf32>
    %200 = arith.divf %198, %199 : vector<24x1xf32>
    %201 = arith.mulf %196, %196 : vector<24x32xf32>
    %cst_142 = arith.constant dense<0.000000e+00> : vector<24xf32>
    %202 = vector.multi_reduction <add>, %201, %cst_142 [1] : vector<24x32xf32> to vector<24xf32>
    %203 = vector.shape_cast %202 : vector<24xf32> to vector<24x1xf32>
    %cst_143 = arith.constant 3.200000e+01 : f32
    %204 = vector.broadcast %cst_143 : f32 to vector<24x1xf32>
    %205 = arith.divf %203, %204 : vector<24x1xf32>
    %206 = arith.mulf %200, %200 : vector<24x1xf32>
    %207 = arith.subf %205, %206 : vector<24x1xf32>
    %208 = vector.broadcast %200 : vector<24x1xf32> to vector<24x32xf32>
    %209 = arith.subf %196, %208 : vector<24x32xf32>
    %cst_144 = arith.constant 9.99999974E-6 : f32
    %210 = vector.broadcast %cst_144 : f32 to vector<24x1xf32>
    %211 = arith.addf %207, %210 : vector<24x1xf32>
    %212 = math.rsqrt %211 : vector<24x1xf32>
    %213 = vector.broadcast %212 : vector<24x1xf32> to vector<24x32xf32>
    %214 = arith.mulf %209, %213 : vector<24x32xf32>
    %c0_145 = arith.constant 0 : index
    %c0_146 = arith.constant 0 : index
    %215 = vector.load %arg18[%c0_145, %c0_146] : memref<1x32xf32, #tpu.memory_space<vmem>>, vector<1x32xf32>
    %216 = vector.broadcast %215 : vector<1x32xf32> to vector<24x32xf32>
    %217 = arith.mulf %214, %216 : vector<24x32xf32>
    %c0_147 = arith.constant 0 : index
    %c0_148 = arith.constant 0 : index
    %218 = vector.load %arg19[%c0_147, %c0_148] : memref<1x32xf32, #tpu.memory_space<vmem>>, vector<1x32xf32>
    %219 = vector.broadcast %218 : vector<1x32xf32> to vector<24x32xf32>
    %220 = arith.addf %217, %219 : vector<24x32xf32>
    %cst_149 = arith.constant 0.000000e+00 : f32
    %221 = vector.broadcast %cst_149 : f32 to vector<24x32xf32>
    %222 = arith.cmpf oge, %220, %221 : vector<24x32xf32>
    %cst_150 = arith.constant 2.000000e-01 : f32
    %223 = vector.broadcast %cst_150 : f32 to vector<24x32xf32>
    %224 = arith.mulf %223, %220 : vector<24x32xf32>
    %225 = arith.select %222, %220, %224 : vector<24x32xi1>, vector<24x32xf32>
    %226 = arith.addf %225, %125 : vector<24x32xf32>
    %cst_151 = arith.constant 0.000000e+00 : f32
    %227 = vector.broadcast %cst_151 : f32 to vector<24x32xf32>
    %228 = arith.cmpf oge, %226, %227 : vector<24x32xf32>
    %cst_152 = arith.constant 2.000000e-01 : f32
    %229 = vector.broadcast %cst_152 : f32 to vector<24x32xf32>
    %230 = arith.mulf %229, %226 : vector<24x32xf32>
    %231 = arith.select %228, %226, %230 : vector<24x32xi1>, vector<24x32xf32>
    %c8_153 = arith.constant 8 : index
    %c0_154 = arith.constant 0 : index
    %232 = vector.load %arg41[%c8_153, %c0_154] : memref<40x32xf32, #tpu.memory_space<vmem>>, vector<24x32xf32>
    tpu.vector_store %arg41[%c8_153, %c0_154], %231 {strides = array<i32>} : memref<40x32xf32, #tpu.memory_space<vmem>>, vector<24x32xf32>,
    %c7_155 = arith.constant 7 : index
    %c0_156 = arith.constant 0 : index
    %233 = vector.load %arg41[%c7_155, %c0_156] : memref<40x32xf32, #tpu.memory_space<vmem>>, vector<24x32xf32>
    %234 = arith.truncf %233 : vector<24x32xf32> to vector<24x32xbf16>
    %c0_157 = arith.constant 0 : index
    %c0_158 = arith.constant 0 : index
    %c0_159 = arith.constant 0 : index
    %235 = vector.load %arg20[%c0_157, %c0_158, %c0_159] : memref<3x32x16xbf16, #tpu.memory_space<vmem>>, vector<1x32x16xbf16>
    %236 = vector.shape_cast %235 : vector<1x32x16xbf16> to vector<32x16xbf16>
    %cst_160 = arith.constant dense<0.000000e+00> : vector<24x16xf32>
    %237 = tpu.matmul %234, %236, %cst_160 {dimension_numbers = #tpu.dot_dimension_numbers<[1], [0], [0], [1], [0, 0, 1, 1], [], []>} : vector<24x32xbf16>, vector<32x16xbf16>, vector<24x16xf32> -> vector<24x16xf32>
    %c8_161 = arith.constant 8 : index
    %c0_162 = arith.constant 0 : index
    %238 = vector.load %arg41[%c8_161, %c0_162] : memref<40x32xf32, #tpu.memory_space<vmem>>, vector<24x32xf32>
    %239 = arith.truncf %238 : vector<24x32xf32> to vector<24x32xbf16>
    %c1_163 = arith.constant 1 : index
    %c0_164 = arith.constant 0 : index
    %c0_165 = arith.constant 0 : index
    %240 = vector.load %arg20[%c1_163, %c0_164, %c0_165] : memref<3x32x16xbf16, #tpu.memory_space<vmem>>, vector<1x32x16xbf16>
    %241 = vector.shape_cast %240 : vector<1x32x16xbf16> to vector<32x16xbf16>
    %cst_166 = arith.constant dense<0.000000e+00> : vector<24x16xf32>
    %242 = tpu.matmul %239, %241, %cst_166 {dimension_numbers = #tpu.dot_dimension_numbers<[1], [0], [0], [1], [0, 0, 1, 1], [], []>} : vector<24x32xbf16>, vector<32x16xbf16>, vector<24x16xf32> -> vector<24x16xf32>
    %243 = arith.addf %237, %242 : vector<24x16xf32>
    %c9_167 = arith.constant 9 : index
    %c0_168 = arith.constant 0 : index
    %244 = vector.load %arg41[%c9_167, %c0_168] : memref<40x32xf32, #tpu.memory_space<vmem>>, vector<24x32xf32>
    %245 = arith.truncf %244 : vector<24x32xf32> to vector<24x32xbf16>
    %c2_169 = arith.constant 2 : index
    %c0_170 = arith.constant 0 : index
    %c0_171 = arith.constant 0 : index
    %246 = vector.load %arg20[%c2_169, %c0_170, %c0_171] : memref<3x32x16xbf16, #tpu.memory_space<vmem>>, vector<1x32x16xbf16>
    %247 = vector.shape_cast %246 : vector<1x32x16xbf16> to vector<32x16xbf16>
    %cst_172 = arith.constant dense<0.000000e+00> : vector<24x16xf32>
    %248 = tpu.matmul %245, %247, %cst_172 {dimension_numbers = #tpu.dot_dimension_numbers<[1], [0], [0], [1], [0, 0, 1, 1], [], []>} : vector<24x32xbf16>, vector<32x16xbf16>, vector<24x16xf32> -> vector<24x16xf32>
    %249 = arith.addf %243, %248 : vector<24x16xf32>
    %c0_173 = arith.constant 0 : index
    %c0_174 = arith.constant 0 : index
    %250 = vector.load %arg21[%c0_173, %c0_174] : memref<1x16xf32, #tpu.memory_space<vmem>>, vector<1x16xf32>
    %251 = vector.broadcast %250 : vector<1x16xf32> to vector<24x16xf32>
    %252 = arith.addf %249, %251 : vector<24x16xf32>
    %c8_175 = arith.constant 8 : index
    %c0_176 = arith.constant 0 : index
    %253 = vector.load %arg41[%c8_175, %c0_176] : memref<40x32xf32, #tpu.memory_space<vmem>>, vector<24x16xf32>
    tpu.vector_store %arg41[%c8_175, %c0_176], %252 {strides = array<i32>} : memref<40x32xf32, #tpu.memory_space<vmem>>, vector<24x16xf32>,
    %c7_177 = arith.constant 7 : index
    %c0_178 = arith.constant 0 : index
    %254 = vector.load %arg41[%c7_177, %c0_178] : memref<40x32xf32, #tpu.memory_space<vmem>>, vector<24x16xf32>
    %255 = arith.truncf %254 : vector<24x16xf32> to vector<24x16xbf16>
    %c0_179 = arith.constant 0 : index
    %c0_180 = arith.constant 0 : index
    %c0_181 = arith.constant 0 : index
    %256 = vector.load %arg22[%c0_179, %c0_180, %c0_181] : memref<3x16x16xbf16, #tpu.memory_space<vmem>>, vector<1x16x16xbf16>
    %257 = vector.shape_cast %256 : vector<1x16x16xbf16> to vector<16x16xbf16>
    %cst_182 = arith.constant dense<0.000000e+00> : vector<24x16xf32>
    %258 = tpu.matmul %255, %257, %cst_182 {dimension_numbers = #tpu.dot_dimension_numbers<[1], [0], [0], [1], [0, 0, 1, 1], [], []>} : vector<24x16xbf16>, vector<16x16xbf16>, vector<24x16xf32> -> vector<24x16xf32>
    %c8_183 = arith.constant 8 : index
    %c0_184 = arith.constant 0 : index
    %259 = vector.load %arg41[%c8_183, %c0_184] : memref<40x32xf32, #tpu.memory_space<vmem>>, vector<24x16xf32>
    %260 = arith.truncf %259 : vector<24x16xf32> to vector<24x16xbf16>
    %c1_185 = arith.constant 1 : index
    %c0_186 = arith.constant 0 : index
    %c0_187 = arith.constant 0 : index
    %261 = vector.load %arg22[%c1_185, %c0_186, %c0_187] : memref<3x16x16xbf16, #tpu.memory_space<vmem>>, vector<1x16x16xbf16>
    %262 = vector.shape_cast %261 : vector<1x16x16xbf16> to vector<16x16xbf16>
    %cst_188 = arith.constant dense<0.000000e+00> : vector<24x16xf32>
    %263 = tpu.matmul %260, %262, %cst_188 {dimension_numbers = #tpu.dot_dimension_numbers<[1], [0], [0], [1], [0, 0, 1, 1], [], []>} : vector<24x16xbf16>, vector<16x16xbf16>, vector<24x16xf32> -> vector<24x16xf32>
    %264 = arith.addf %258, %263 : vector<24x16xf32>
    %c9_189 = arith.constant 9 : index
    %c0_190 = arith.constant 0 : index
    %265 = vector.load %arg41[%c9_189, %c0_190] : memref<40x32xf32, #tpu.memory_space<vmem>>, vector<24x16xf32>
    %266 = arith.truncf %265 : vector<24x16xf32> to vector<24x16xbf16>
    %c2_191 = arith.constant 2 : index
    %c0_192 = arith.constant 0 : index
    %c0_193 = arith.constant 0 : index
    %267 = vector.load %arg22[%c2_191, %c0_192, %c0_193] : memref<3x16x16xbf16, #tpu.memory_space<vmem>>, vector<1x16x16xbf16>
    %268 = vector.shape_cast %267 : vector<1x16x16xbf16> to vector<16x16xbf16>
    %cst_194 = arith.constant dense<0.000000e+00> : vector<24x16xf32>
    %269 = tpu.matmul %266, %268, %cst_194 {dimension_numbers = #tpu.dot_dimension_numbers<[1], [0], [0], [1], [0, 0, 1, 1], [], []>} : vector<24x16xbf16>, vector<16x16xbf16>, vector<24x16xf32> -> vector<24x16xf32>
    %270 = arith.addf %264, %269 : vector<24x16xf32>
    %c0_195 = arith.constant 0 : index
    %c0_196 = arith.constant 0 : index
    %271 = vector.load %arg23[%c0_195, %c0_196] : memref<1x16xf32, #tpu.memory_space<vmem>>, vector<1x16xf32>
    %272 = vector.broadcast %271 : vector<1x16xf32> to vector<24x16xf32>
    %273 = arith.addf %270, %272 : vector<24x16xf32>
    %cst_197 = arith.constant dense<0.000000e+00> : vector<24xf32>
    %274 = vector.multi_reduction <add>, %273, %cst_197 [1] : vector<24x16xf32> to vector<24xf32>
    %275 = vector.shape_cast %274 : vector<24xf32> to vector<24x1xf32>
    %cst_198 = arith.constant 1.600000e+01 : f32
    %276 = vector.broadcast %cst_198 : f32 to vector<24x1xf32>
    %277 = arith.divf %275, %276 : vector<24x1xf32>
    %278 = arith.mulf %273, %273 : vector<24x16xf32>
    %cst_199 = arith.constant dense<0.000000e+00> : vector<24xf32>
    %279 = vector.multi_reduction <add>, %278, %cst_199 [1] : vector<24x16xf32> to vector<24xf32>
    %280 = vector.shape_cast %279 : vector<24xf32> to vector<24x1xf32>
    %cst_200 = arith.constant 1.600000e+01 : f32
    %281 = vector.broadcast %cst_200 : f32 to vector<24x1xf32>
    %282 = arith.divf %280, %281 : vector<24x1xf32>
    %283 = arith.mulf %277, %277 : vector<24x1xf32>
    %284 = arith.subf %282, %283 : vector<24x1xf32>
    %285 = vector.broadcast %277 : vector<24x1xf32> to vector<24x16xf32>
    %286 = arith.subf %273, %285 : vector<24x16xf32>
    %cst_201 = arith.constant 9.99999974E-6 : f32
    %287 = vector.broadcast %cst_201 : f32 to vector<24x1xf32>
    %288 = arith.addf %284, %287 : vector<24x1xf32>
    %289 = math.rsqrt %288 : vector<24x1xf32>
    %290 = vector.broadcast %289 : vector<24x1xf32> to vector<24x16xf32>
    %291 = arith.mulf %286, %290 : vector<24x16xf32>
    %c0_202 = arith.constant 0 : index
    %c0_203 = arith.constant 0 : index
    %292 = vector.load %arg24[%c0_202, %c0_203] : memref<1x16xf32, #tpu.memory_space<vmem>>, vector<1x16xf32>
    %293 = vector.broadcast %292 : vector<1x16xf32> to vector<24x16xf32>
    %294 = arith.mulf %291, %293 : vector<24x16xf32>
    %c0_204 = arith.constant 0 : index
    %c0_205 = arith.constant 0 : index
    %295 = vector.load %arg25[%c0_204, %c0_205] : memref<1x16xf32, #tpu.memory_space<vmem>>, vector<1x16xf32>
    %296 = vector.broadcast %295 : vector<1x16xf32> to vector<24x16xf32>
    %297 = arith.addf %294, %296 : vector<24x16xf32>
    %cst_206 = arith.constant 0.000000e+00 : f32
    %298 = vector.broadcast %cst_206 : f32 to vector<24x16xf32>
    %299 = arith.cmpf oge, %297, %298 : vector<24x16xf32>
    %cst_207 = arith.constant 2.000000e-01 : f32
    %300 = vector.broadcast %cst_207 : f32 to vector<24x16xf32>
    %301 = arith.mulf %300, %297 : vector<24x16xf32>
    %302 = arith.select %299, %297, %301 : vector<24x16xi1>, vector<24x16xf32>
    %c8_208 = arith.constant 8 : index
    %c0_209 = arith.constant 0 : index
    %303 = vector.load %arg41[%c8_208, %c0_209] : memref<40x32xf32, #tpu.memory_space<vmem>>, vector<24x16xf32>
    tpu.vector_store %arg41[%c8_208, %c0_209], %302 {strides = array<i32>} : memref<40x32xf32, #tpu.memory_space<vmem>>, vector<24x16xf32>,
    %c7_210 = arith.constant 7 : index
    %c0_211 = arith.constant 0 : index
    %304 = vector.load %arg41[%c7_210, %c0_211] : memref<40x32xf32, #tpu.memory_space<vmem>>, vector<24x16xf32>
    %305 = arith.truncf %304 : vector<24x16xf32> to vector<24x16xbf16>
    %c0_212 = arith.constant 0 : index
    %c0_213 = arith.constant 0 : index
    %c0_214 = arith.constant 0 : index
    %306 = vector.load %arg26[%c0_212, %c0_213, %c0_214] : memref<3x16x16xbf16, #tpu.memory_space<vmem>>, vector<1x16x16xbf16>
    %307 = vector.shape_cast %306 : vector<1x16x16xbf16> to vector<16x16xbf16>
    %cst_215 = arith.constant dense<0.000000e+00> : vector<24x16xf32>
    %308 = tpu.matmul %305, %307, %cst_215 {dimension_numbers = #tpu.dot_dimension_numbers<[1], [0], [0], [1], [0, 0, 1, 1], [], []>} : vector<24x16xbf16>, vector<16x16xbf16>, vector<24x16xf32> -> vector<24x16xf32>
    %c8_216 = arith.constant 8 : index
    %c0_217 = arith.constant 0 : index
    %309 = vector.load %arg41[%c8_216, %c0_217] : memref<40x32xf32, #tpu.memory_space<vmem>>, vector<24x16xf32>
    %310 = arith.truncf %309 : vector<24x16xf32> to vector<24x16xbf16>
    %c1_218 = arith.constant 1 : index
    %c0_219 = arith.constant 0 : index
    %c0_220 = arith.constant 0 : index
    %311 = vector.load %arg26[%c1_218, %c0_219, %c0_220] : memref<3x16x16xbf16, #tpu.memory_space<vmem>>, vector<1x16x16xbf16>
    %312 = vector.shape_cast %311 : vector<1x16x16xbf16> to vector<16x16xbf16>
    %cst_221 = arith.constant dense<0.000000e+00> : vector<24x16xf32>
    %313 = tpu.matmul %310, %312, %cst_221 {dimension_numbers = #tpu.dot_dimension_numbers<[1], [0], [0], [1], [0, 0, 1, 1], [], []>} : vector<24x16xbf16>, vector<16x16xbf16>, vector<24x16xf32> -> vector<24x16xf32>
    %314 = arith.addf %308, %313 : vector<24x16xf32>
    %c9_222 = arith.constant 9 : index
    %c0_223 = arith.constant 0 : index
    %315 = vector.load %arg41[%c9_222, %c0_223] : memref<40x32xf32, #tpu.memory_space<vmem>>, vector<24x16xf32>
    %316 = arith.truncf %315 : vector<24x16xf32> to vector<24x16xbf16>
    %c2_224 = arith.constant 2 : index
    %c0_225 = arith.constant 0 : index
    %c0_226 = arith.constant 0 : index
    %317 = vector.load %arg26[%c2_224, %c0_225, %c0_226] : memref<3x16x16xbf16, #tpu.memory_space<vmem>>, vector<1x16x16xbf16>
    %318 = vector.shape_cast %317 : vector<1x16x16xbf16> to vector<16x16xbf16>
    %cst_227 = arith.constant dense<0.000000e+00> : vector<24x16xf32>
    %319 = tpu.matmul %316, %318, %cst_227 {dimension_numbers = #tpu.dot_dimension_numbers<[1], [0], [0], [1], [0, 0, 1, 1], [], []>} : vector<24x16xbf16>, vector<16x16xbf16>, vector<24x16xf32> -> vector<24x16xf32>
    %320 = arith.addf %314, %319 : vector<24x16xf32>
    %c0_228 = arith.constant 0 : index
    %c0_229 = arith.constant 0 : index
    %321 = vector.load %arg27[%c0_228, %c0_229] : memref<1x16xf32, #tpu.memory_space<vmem>>, vector<1x16xf32>
    %322 = vector.broadcast %321 : vector<1x16xf32> to vector<24x16xf32>
    %323 = arith.addf %320, %322 : vector<24x16xf32>
    %cst_230 = arith.constant dense<0.000000e+00> : vector<24xf32>
    %324 = vector.multi_reduction <add>, %323, %cst_230 [1] : vector<24x16xf32> to vector<24xf32>
    %325 = vector.shape_cast %324 : vector<24xf32> to vector<24x1xf32>
    %cst_231 = arith.constant 1.600000e+01 : f32
    %326 = vector.broadcast %cst_231 : f32 to vector<24x1xf32>
    %327 = arith.divf %325, %326 : vector<24x1xf32>
    %328 = arith.mulf %323, %323 : vector<24x16xf32>
    %cst_232 = arith.constant dense<0.000000e+00> : vector<24xf32>
    %329 = vector.multi_reduction <add>, %328, %cst_232 [1] : vector<24x16xf32> to vector<24xf32>
    %330 = vector.shape_cast %329 : vector<24xf32> to vector<24x1xf32>
    %cst_233 = arith.constant 1.600000e+01 : f32
    %331 = vector.broadcast %cst_233 : f32 to vector<24x1xf32>
    %332 = arith.divf %330, %331 : vector<24x1xf32>
    %333 = arith.mulf %327, %327 : vector<24x1xf32>
    %334 = arith.subf %332, %333 : vector<24x1xf32>
    %335 = vector.broadcast %327 : vector<24x1xf32> to vector<24x16xf32>
    %336 = arith.subf %323, %335 : vector<24x16xf32>
    %cst_234 = arith.constant 9.99999974E-6 : f32
    %337 = vector.broadcast %cst_234 : f32 to vector<24x1xf32>
    %338 = arith.addf %334, %337 : vector<24x1xf32>
    %339 = math.rsqrt %338 : vector<24x1xf32>
    %340 = vector.broadcast %339 : vector<24x1xf32> to vector<24x16xf32>
    %341 = arith.mulf %336, %340 : vector<24x16xf32>
    %c0_235 = arith.constant 0 : index
    %c0_236 = arith.constant 0 : index
    %342 = vector.load %arg28[%c0_235, %c0_236] : memref<1x16xf32, #tpu.memory_space<vmem>>, vector<1x16xf32>
    %343 = vector.broadcast %342 : vector<1x16xf32> to vector<24x16xf32>
    %344 = arith.mulf %341, %343 : vector<24x16xf32>
    %c0_237 = arith.constant 0 : index
    %c0_238 = arith.constant 0 : index
    %345 = vector.load %arg29[%c0_237, %c0_238] : memref<1x16xf32, #tpu.memory_space<vmem>>, vector<1x16xf32>
    %346 = vector.broadcast %345 : vector<1x16xf32> to vector<24x16xf32>
    %347 = arith.addf %344, %346 : vector<24x16xf32>
    %cst_239 = arith.constant 0.000000e+00 : f32
    %348 = vector.broadcast %cst_239 : f32 to vector<24x16xf32>
    %349 = arith.cmpf oge, %347, %348 : vector<24x16xf32>
    %cst_240 = arith.constant 2.000000e-01 : f32
    %350 = vector.broadcast %cst_240 : f32 to vector<24x16xf32>
    %351 = arith.mulf %350, %347 : vector<24x16xf32>
    %352 = arith.select %349, %347, %351 : vector<24x16xi1>, vector<24x16xf32>
    %353 = arith.addf %352, %252 : vector<24x16xf32>
    %c8_241 = arith.constant 8 : index
    %c0_242 = arith.constant 0 : index
    %354 = vector.load %arg41[%c8_241, %c0_242] : memref<40x32xf32, #tpu.memory_space<vmem>>, vector<24x16xf32>
    tpu.vector_store %arg41[%c8_241, %c0_242], %353 {strides = array<i32>} : memref<40x32xf32, #tpu.memory_space<vmem>>, vector<24x16xf32>,
    %c6_243 = arith.constant 6 : index
    %c0_244 = arith.constant 0 : index
    %355 = vector.load %arg41[%c6_243, %c0_244] : memref<40x32xf32, #tpu.memory_space<vmem>>, vector<24x16xf32>
    %356 = arith.truncf %355 : vector<24x16xf32> to vector<24x16xbf16>
    %c0_245 = arith.constant 0 : index
    %c0_246 = arith.constant 0 : index
    %c0_247 = arith.constant 0 : index
    %357 = vector.load %arg30[%c0_245, %c0_246, %c0_247] : memref<3x16x16xbf16, #tpu.memory_space<vmem>>, vector<1x16x16xbf16>
    %358 = vector.shape_cast %357 : vector<1x16x16xbf16> to vector<16x16xbf16>
    %cst_248 = arith.constant dense<0.000000e+00> : vector<24x16xf32>
    %359 = tpu.matmul %356, %358, %cst_248 {dimension_numbers = #tpu.dot_dimension_numbers<[1], [0], [0], [1], [0, 0, 1, 1], [], []>} : vector<24x16xbf16>, vector<16x16xbf16>, vector<24x16xf32> -> vector<24x16xf32>
    %c8_249 = arith.constant 8 : index
    %c0_250 = arith.constant 0 : index
    %360 = vector.load %arg41[%c8_249, %c0_250] : memref<40x32xf32, #tpu.memory_space<vmem>>, vector<24x16xf32>
    %361 = arith.truncf %360 : vector<24x16xf32> to vector<24x16xbf16>
    %c1_251 = arith.constant 1 : index
    %c0_252 = arith.constant 0 : index
    %c0_253 = arith.constant 0 : index
    %362 = vector.load %arg30[%c1_251, %c0_252, %c0_253] : memref<3x16x16xbf16, #tpu.memory_space<vmem>>, vector<1x16x16xbf16>
    %363 = vector.shape_cast %362 : vector<1x16x16xbf16> to vector<16x16xbf16>
    %cst_254 = arith.constant dense<0.000000e+00> : vector<24x16xf32>
    %364 = tpu.matmul %361, %363, %cst_254 {dimension_numbers = #tpu.dot_dimension_numbers<[1], [0], [0], [1], [0, 0, 1, 1], [], []>} : vector<24x16xbf16>, vector<16x16xbf16>, vector<24x16xf32> -> vector<24x16xf32>
    %365 = arith.addf %359, %364 : vector<24x16xf32>
    %c10_255 = arith.constant 10 : index
    %c0_256 = arith.constant 0 : index
    %366 = vector.load %arg41[%c10_255, %c0_256] : memref<40x32xf32, #tpu.memory_space<vmem>>, vector<24x16xf32>
    %367 = arith.truncf %366 : vector<24x16xf32> to vector<24x16xbf16>
    %c2_257 = arith.constant 2 : index
    %c0_258 = arith.constant 0 : index
    %c0_259 = arith.constant 0 : index
    %368 = vector.load %arg30[%c2_257, %c0_258, %c0_259] : memref<3x16x16xbf16, #tpu.memory_space<vmem>>, vector<1x16x16xbf16>
    %369 = vector.shape_cast %368 : vector<1x16x16xbf16> to vector<16x16xbf16>
    %cst_260 = arith.constant dense<0.000000e+00> : vector<24x16xf32>
    %370 = tpu.matmul %367, %369, %cst_260 {dimension_numbers = #tpu.dot_dimension_numbers<[1], [0], [0], [1], [0, 0, 1, 1], [], []>} : vector<24x16xbf16>, vector<16x16xbf16>, vector<24x16xf32> -> vector<24x16xf32>
    %371 = arith.addf %365, %370 : vector<24x16xf32>
    %c0_261 = arith.constant 0 : index
    %c0_262 = arith.constant 0 : index
    %372 = vector.load %arg31[%c0_261, %c0_262] : memref<1x16xf32, #tpu.memory_space<vmem>>, vector<1x16xf32>
    %373 = vector.broadcast %372 : vector<1x16xf32> to vector<24x16xf32>
    %374 = arith.addf %371, %373 : vector<24x16xf32>
    %cst_263 = arith.constant dense<0.000000e+00> : vector<24xf32>
    %375 = vector.multi_reduction <add>, %374, %cst_263 [1] : vector<24x16xf32> to vector<24xf32>
    %376 = vector.shape_cast %375 : vector<24xf32> to vector<24x1xf32>
    %cst_264 = arith.constant 1.600000e+01 : f32
    %377 = vector.broadcast %cst_264 : f32 to vector<24x1xf32>
    %378 = arith.divf %376, %377 : vector<24x1xf32>
    %379 = arith.mulf %374, %374 : vector<24x16xf32>
    %cst_265 = arith.constant dense<0.000000e+00> : vector<24xf32>
    %380 = vector.multi_reduction <add>, %379, %cst_265 [1] : vector<24x16xf32> to vector<24xf32>
    %381 = vector.shape_cast %380 : vector<24xf32> to vector<24x1xf32>
    %cst_266 = arith.constant 1.600000e+01 : f32
    %382 = vector.broadcast %cst_266 : f32 to vector<24x1xf32>
    %383 = arith.divf %381, %382 : vector<24x1xf32>
    %384 = arith.mulf %378, %378 : vector<24x1xf32>
    %385 = arith.subf %383, %384 : vector<24x1xf32>
    %386 = vector.broadcast %378 : vector<24x1xf32> to vector<24x16xf32>
    %387 = arith.subf %374, %386 : vector<24x16xf32>
    %cst_267 = arith.constant 9.99999974E-6 : f32
    %388 = vector.broadcast %cst_267 : f32 to vector<24x1xf32>
    %389 = arith.addf %385, %388 : vector<24x1xf32>
    %390 = math.rsqrt %389 : vector<24x1xf32>
    %391 = vector.broadcast %390 : vector<24x1xf32> to vector<24x16xf32>
    %392 = arith.mulf %387, %391 : vector<24x16xf32>
    %c0_268 = arith.constant 0 : index
    %c0_269 = arith.constant 0 : index
    %393 = vector.load %arg32[%c0_268, %c0_269] : memref<1x16xf32, #tpu.memory_space<vmem>>, vector<1x16xf32>
    %394 = vector.broadcast %393 : vector<1x16xf32> to vector<24x16xf32>
    %395 = arith.mulf %392, %394 : vector<24x16xf32>
    %c0_270 = arith.constant 0 : index
    %c0_271 = arith.constant 0 : index
    %396 = vector.load %arg33[%c0_270, %c0_271] : memref<1x16xf32, #tpu.memory_space<vmem>>, vector<1x16xf32>
    %397 = vector.broadcast %396 : vector<1x16xf32> to vector<24x16xf32>
    %398 = arith.addf %395, %397 : vector<24x16xf32>
    %cst_272 = arith.constant 0.000000e+00 : f32
    %399 = vector.broadcast %cst_272 : f32 to vector<24x16xf32>
    %400 = arith.cmpf oge, %398, %399 : vector<24x16xf32>
    %cst_273 = arith.constant 2.000000e-01 : f32
    %401 = vector.broadcast %cst_273 : f32 to vector<24x16xf32>
    %402 = arith.mulf %401, %398 : vector<24x16xf32>
    %403 = arith.select %400, %398, %402 : vector<24x16xi1>, vector<24x16xf32>
    %c8_274 = arith.constant 8 : index
    %c0_275 = arith.constant 0 : index
    %404 = vector.load %arg41[%c8_274, %c0_275] : memref<40x32xf32, #tpu.memory_space<vmem>>, vector<24x16xf32>
    tpu.vector_store %arg41[%c8_274, %c0_275], %403 {strides = array<i32>} : memref<40x32xf32, #tpu.memory_space<vmem>>, vector<24x16xf32>,
    %c6_276 = arith.constant 6 : index
    %c0_277 = arith.constant 0 : index
    %405 = vector.load %arg41[%c6_276, %c0_277] : memref<40x32xf32, #tpu.memory_space<vmem>>, vector<24x16xf32>
    %406 = arith.truncf %405 : vector<24x16xf32> to vector<24x16xbf16>
    %c0_278 = arith.constant 0 : index
    %c0_279 = arith.constant 0 : index
    %c0_280 = arith.constant 0 : index
    %407 = vector.load %arg34[%c0_278, %c0_279, %c0_280] : memref<3x16x16xbf16, #tpu.memory_space<vmem>>, vector<1x16x16xbf16>
    %408 = vector.shape_cast %407 : vector<1x16x16xbf16> to vector<16x16xbf16>
    %cst_281 = arith.constant dense<0.000000e+00> : vector<24x16xf32>
    %409 = tpu.matmul %406, %408, %cst_281 {dimension_numbers = #tpu.dot_dimension_numbers<[1], [0], [0], [1], [0, 0, 1, 1], [], []>} : vector<24x16xbf16>, vector<16x16xbf16>, vector<24x16xf32> -> vector<24x16xf32>
    %c8_282 = arith.constant 8 : index
    %c0_283 = arith.constant 0 : index
    %410 = vector.load %arg41[%c8_282, %c0_283] : memref<40x32xf32, #tpu.memory_space<vmem>>, vector<24x16xf32>
    %411 = arith.truncf %410 : vector<24x16xf32> to vector<24x16xbf16>
    %c1_284 = arith.constant 1 : index
    %c0_285 = arith.constant 0 : index
    %c0_286 = arith.constant 0 : index
    %412 = vector.load %arg34[%c1_284, %c0_285, %c0_286] : memref<3x16x16xbf16, #tpu.memory_space<vmem>>, vector<1x16x16xbf16>
    %413 = vector.shape_cast %412 : vector<1x16x16xbf16> to vector<16x16xbf16>
    %cst_287 = arith.constant dense<0.000000e+00> : vector<24x16xf32>
    %414 = tpu.matmul %411, %413, %cst_287 {dimension_numbers = #tpu.dot_dimension_numbers<[1], [0], [0], [1], [0, 0, 1, 1], [], []>} : vector<24x16xbf16>, vector<16x16xbf16>, vector<24x16xf32> -> vector<24x16xf32>
    %415 = arith.addf %409, %414 : vector<24x16xf32>
    %c10_288 = arith.constant 10 : index
    %c0_289 = arith.constant 0 : index
    %416 = vector.load %arg41[%c10_288, %c0_289] : memref<40x32xf32, #tpu.memory_space<vmem>>, vector<24x16xf32>
    %417 = arith.truncf %416 : vector<24x16xf32> to vector<24x16xbf16>
    %c2_290 = arith.constant 2 : index
    %c0_291 = arith.constant 0 : index
    %c0_292 = arith.constant 0 : index
    %418 = vector.load %arg34[%c2_290, %c0_291, %c0_292] : memref<3x16x16xbf16, #tpu.memory_space<vmem>>, vector<1x16x16xbf16>
    %419 = vector.shape_cast %418 : vector<1x16x16xbf16> to vector<16x16xbf16>
    %cst_293 = arith.constant dense<0.000000e+00> : vector<24x16xf32>
    %420 = tpu.matmul %417, %419, %cst_293 {dimension_numbers = #tpu.dot_dimension_numbers<[1], [0], [0], [1], [0, 0, 1, 1], [], []>} : vector<24x16xbf16>, vector<16x16xbf16>, vector<24x16xf32> -> vector<24x16xf32>
    %421 = arith.addf %415, %420 : vector<24x16xf32>
    %c0_294 = arith.constant 0 : index
    %c0_295 = arith.constant 0 : index
    %422 = vector.load %arg35[%c0_294, %c0_295] : memref<1x16xf32, #tpu.memory_space<vmem>>, vector<1x16xf32>
    %423 = vector.broadcast %422 : vector<1x16xf32> to vector<24x16xf32>
    %424 = arith.addf %421, %423 : vector<24x16xf32>
    %cst_296 = arith.constant dense<0.000000e+00> : vector<24xf32>
    %425 = vector.multi_reduction <add>, %424, %cst_296 [1] : vector<24x16xf32> to vector<24xf32>
    %426 = vector.shape_cast %425 : vector<24xf32> to vector<24x1xf32>
    %cst_297 = arith.constant 1.600000e+01 : f32
    %427 = vector.broadcast %cst_297 : f32 to vector<24x1xf32>
    %428 = arith.divf %426, %427 : vector<24x1xf32>
    %429 = arith.mulf %424, %424 : vector<24x16xf32>
    %cst_298 = arith.constant dense<0.000000e+00> : vector<24xf32>
    %430 = vector.multi_reduction <add>, %429, %cst_298 [1] : vector<24x16xf32> to vector<24xf32>
    %431 = vector.shape_cast %430 : vector<24xf32> to vector<24x1xf32>
    %cst_299 = arith.constant 1.600000e+01 : f32
    %432 = vector.broadcast %cst_299 : f32 to vector<24x1xf32>
    %433 = arith.divf %431, %432 : vector<24x1xf32>
    %434 = arith.mulf %428, %428 : vector<24x1xf32>
    %435 = arith.subf %433, %434 : vector<24x1xf32>
    %436 = vector.broadcast %428 : vector<24x1xf32> to vector<24x16xf32>
    %437 = arith.subf %424, %436 : vector<24x16xf32>
    %cst_300 = arith.constant 9.99999974E-6 : f32
    %438 = vector.broadcast %cst_300 : f32 to vector<24x1xf32>
    %439 = arith.addf %435, %438 : vector<24x1xf32>
    %440 = math.rsqrt %439 : vector<24x1xf32>
    %441 = vector.broadcast %440 : vector<24x1xf32> to vector<24x16xf32>
    %442 = arith.mulf %437, %441 : vector<24x16xf32>
    %c0_301 = arith.constant 0 : index
    %c0_302 = arith.constant 0 : index
    %443 = vector.load %arg36[%c0_301, %c0_302] : memref<1x16xf32, #tpu.memory_space<vmem>>, vector<1x16xf32>
    %444 = vector.broadcast %443 : vector<1x16xf32> to vector<24x16xf32>
    %445 = arith.mulf %442, %444 : vector<24x16xf32>
    %c0_303 = arith.constant 0 : index
    %c0_304 = arith.constant 0 : index
    %446 = vector.load %arg37[%c0_303, %c0_304] : memref<1x16xf32, #tpu.memory_space<vmem>>, vector<1x16xf32>
    %447 = vector.broadcast %446 : vector<1x16xf32> to vector<24x16xf32>
    %448 = arith.addf %445, %447 : vector<24x16xf32>
    %cst_305 = arith.constant 0.000000e+00 : f32
    %449 = vector.broadcast %cst_305 : f32 to vector<24x16xf32>
    %450 = arith.cmpf oge, %448, %449 : vector<24x16xf32>
    %cst_306 = arith.constant 2.000000e-01 : f32
    %451 = vector.broadcast %cst_306 : f32 to vector<24x16xf32>
    %452 = arith.mulf %451, %448 : vector<24x16xf32>
    %453 = arith.select %450, %448, %452 : vector<24x16xi1>, vector<24x16xf32>
    %454 = arith.addf %453, %353 : vector<24x16xf32>
    %cst_307 = arith.constant 0.000000e+00 : f32
    %455 = vector.broadcast %cst_307 : f32 to vector<24x16xf32>
    %456 = arith.cmpf oge, %454, %455 : vector<24x16xf32>
    %cst_308 = arith.constant 2.000000e-01 : f32
    %457 = vector.broadcast %cst_308 : f32 to vector<24x16xf32>
    %458 = arith.mulf %457, %454 : vector<24x16xf32>
    %459 = arith.select %456, %454, %458 : vector<24x16xi1>, vector<24x16xf32>
    %460 = arith.truncf %459 : vector<24x16xf32> to vector<24x16xbf16>
    %c0_309 = arith.constant 0 : index
    %c0_310 = arith.constant 0 : index
    %c0_311 = arith.constant 0 : index
    %461 = vector.load %arg38[%c0_309, %c0_310, %c0_311] : memref<1x16x8xbf16, #tpu.memory_space<vmem>>, vector<1x16x8xbf16>
    %462 = vector.shape_cast %461 : vector<1x16x8xbf16> to vector<16x8xbf16>
    %cst_312 = arith.constant dense<0.000000e+00> : vector<24x8xf32>
    %463 = tpu.matmul %460, %462, %cst_312 {dimension_numbers = #tpu.dot_dimension_numbers<[1], [0], [0], [1], [0, 0, 1, 1], [], []>} : vector<24x16xbf16>, vector<16x8xbf16>, vector<24x8xf32> -> vector<24x8xf32>
    %c0_313 = arith.constant 0 : index
    %c0_314 = arith.constant 0 : index
    %464 = vector.load %arg39[%c0_313, %c0_314] : memref<1x8xf32, #tpu.memory_space<vmem>>, vector<1x8xf32>
    %465 = vector.broadcast %464 : vector<1x8xf32> to vector<24x8xf32>
    %466 = arith.addf %463, %465 : vector<24x8xf32>
    %c0_315 = arith.constant 0 : index
    %c0_316 = arith.constant 0 : index
    %c0_317 = arith.constant 0 : index
    %467 = vector.load %arg40[%c0_315, %c0_316, %c0_317] : memref<1x24x8xf32, #tpu.memory_space<vmem>>, vector<1x24x8xf32>
    %468 = vector.shape_cast %467 : vector<1x24x8xf32> to vector<24x8xf32>
    %469 = vector.shape_cast %466 : vector<24x8xf32> to vector<1x24x8xf32>
    tpu.vector_store %arg40[%c0_315, %c0_316, %c0_317], %469 {strides = array<i32>} : memref<1x24x8xf32, #tpu.memory_space<vmem>>, vector<1x24x8xf32>,
    return
  }
  func.func @transform_0(%arg0: i32) -> (i32, i32, i32) {
    %c0_i32 = arith.constant 0 : i32
    %c0_i32_0 = arith.constant 0 : i32
    %c0_i32_1 = arith.constant 0 : i32
    return %arg0, %c0_i32, %c0_i32_0 : i32, i32, i32
  }
  func.func @transform_1(%arg0: i32) -> (i32, i32, i32) {
    %c0_i32 = arith.constant 0 : i32
    %c0_i32_0 = arith.constant 0 : i32
    %c0_i32_1 = arith.constant 0 : i32
    %c0_i32_2 = arith.constant 0 : i32
    return %c0_i32, %c0_i32_0, %c0_i32_1 : i32, i32, i32
  }
  func.func @transform_2(%arg0: i32) -> (i32, i32) {
    %c0_i32 = arith.constant 0 : i32
    %c0_i32_0 = arith.constant 0 : i32
    %c0_i32_1 = arith.constant 0 : i32
    return %c0_i32, %c0_i32_0 : i32, i32
  }
  func.func @transform_3(%arg0: i32) -> (i32, i32, i32) {
    %c0_i32 = arith.constant 0 : i32
    %c0_i32_0 = arith.constant 0 : i32
    %c0_i32_1 = arith.constant 0 : i32
    %c0_i32_2 = arith.constant 0 : i32
    return %c0_i32, %c0_i32_0, %c0_i32_1 : i32, i32, i32
  }
  func.func @transform_4(%arg0: i32) -> (i32, i32) {
    %c0_i32 = arith.constant 0 : i32
    %c0_i32_0 = arith.constant 0 : i32
    %c0_i32_1 = arith.constant 0 : i32
    return %c0_i32, %c0_i32_0 : i32, i32
  }
  func.func @transform_5(%arg0: i32) -> (i32, i32) {
    %c0_i32 = arith.constant 0 : i32
    %c0_i32_0 = arith.constant 0 : i32
    %c0_i32_1 = arith.constant 0 : i32
    return %c0_i32, %c0_i32_0 : i32, i32
  }
  func.func @transform_6(%arg0: i32) -> (i32, i32) {
    %c0_i32 = arith.constant 0 : i32
    %c0_i32_0 = arith.constant 0 : i32
    %c0_i32_1 = arith.constant 0 : i32
    return %c0_i32, %c0_i32_0 : i32, i32
  }
  func.func @transform_7(%arg0: i32) -> (i32, i32, i32) {
    %c0_i32 = arith.constant 0 : i32
    %c0_i32_0 = arith.constant 0 : i32
    %c0_i32_1 = arith.constant 0 : i32
    %c0_i32_2 = arith.constant 0 : i32
    return %c0_i32, %c0_i32_0, %c0_i32_1 : i32, i32, i32
  }
  func.func @transform_8(%arg0: i32) -> (i32, i32) {
    %c0_i32 = arith.constant 0 : i32
    %c0_i32_0 = arith.constant 0 : i32
    %c0_i32_1 = arith.constant 0 : i32
    return %c0_i32, %c0_i32_0 : i32, i32
  }
  func.func @transform_9(%arg0: i32) -> (i32, i32) {
    %c0_i32 = arith.constant 0 : i32
    %c0_i32_0 = arith.constant 0 : i32
    %c0_i32_1 = arith.constant 0 : i32
    return %c0_i32, %c0_i32_0 : i32, i32
  }
  func.func @transform_10(%arg0: i32) -> (i32, i32) {
    %c0_i32 = arith.constant 0 : i32
    %c0_i32_0 = arith.constant 0 : i32
    %c0_i32_1 = arith.constant 0 : i32
    return %c0_i32, %c0_i32_0 : i32, i32
  }
  func.func @transform_11(%arg0: i32) -> (i32, i32, i32) {
    %c0_i32 = arith.constant 0 : i32
    %c0_i32_0 = arith.constant 0 : i32
    %c0_i32_1 = arith.constant 0 : i32
    %c0_i32_2 = arith.constant 0 : i32
    return %c0_i32, %c0_i32_0, %c0_i32_1 : i32, i32, i32
  }
  func.func @transform_12(%arg0: i32) -> (i32, i32) {
    %c0_i32 = arith.constant 0 : i32
    %c0_i32_0 = arith.constant 0 : i32
    %c0_i32_1 = arith.constant 0 : i32
    return %c0_i32, %c0_i32_0 : i32, i32
  }
  func.func @transform_13(%arg0: i32) -> (i32, i32) {
    %c0_i32 = arith.constant 0 : i32
    %c0_i32_0 = arith.constant 0 : i32
    %c0_i32_1 = arith.constant 0 : i32
    return %c0_i32, %c0_i32_0 : i32, i32
  }
  func.func @transform_14(%arg0: i32) -> (i32, i32) {
    %c0_i32 = arith.constant 0 : i32
    %c0_i32_0 = arith.constant 0 : i32
    %c0_i32_1 = arith.constant 0 : i32
    return %c0_i32, %c0_i32_0 : i32, i32
  }
  func.func @transform_15(%arg0: i32) -> (i32, i32, i32) {
    %c0_i32 = arith.constant 0 : i32
    %c0_i32_0 = arith.constant 0 : i32
    %c0_i32_1 = arith.constant 0 : i32
    %c0_i32_2 = arith.constant 0 : i32
    return %c0_i32, %c0_i32_0, %c0_i32_1 : i32, i32, i32
  }
  func.func @transform_16(%arg0: i32) -> (i32, i32) {
    %c0_i32 = arith.constant 0 : i32
    %c0_i32_0 = arith.constant 0 : i32
    %c0_i32_1 = arith.constant 0 : i32
    return %c0_i32, %c0_i32_0 : i32, i32
  }
  func.func @transform_17(%arg0: i32) -> (i32, i32) {
    %c0_i32 = arith.constant 0 : i32
    %c0_i32_0 = arith.constant 0 : i32
    %c0_i32_1 = arith.constant 0 : i32
    return %c0_i32, %c0_i32_0 : i32, i32
  }
  func.func @transform_18(%arg0: i32) -> (i32, i32) {
    %c0_i32 = arith.constant 0 : i32
    %c0_i32_0 = arith.constant 0 : i32
    %c0_i32_1 = arith.constant 0 : i32
    return %c0_i32, %c0_i32_0 : i32, i32
  }
  func.func @transform_19(%arg0: i32) -> (i32, i32, i32) {
    %c0_i32 = arith.constant 0 : i32
    %c0_i32_0 = arith.constant 0 : i32
    %c0_i32_1 = arith.constant 0 : i32
    %c0_i32_2 = arith.constant 0 : i32
    return %c0_i32, %c0_i32_0, %c0_i32_1 : i32, i32, i32
  }
  func.func @transform_20(%arg0: i32) -> (i32, i32) {
    %c0_i32 = arith.constant 0 : i32
    %c0_i32_0 = arith.constant 0 : i32
    %c0_i32_1 = arith.constant 0 : i32
    return %c0_i32, %c0_i32_0 : i32, i32
  }
  func.func @transform_21(%arg0: i32) -> (i32, i32, i32) {
    %c0_i32 = arith.constant 0 : i32
    %c0_i32_0 = arith.constant 0 : i32
    %c0_i32_1 = arith.constant 0 : i32
    %c0_i32_2 = arith.constant 0 : i32
    return %c0_i32, %c0_i32_0, %c0_i32_1 : i32, i32, i32
  }
  func.func @transform_22(%arg0: i32) -> (i32, i32) {
    %c0_i32 = arith.constant 0 : i32
    %c0_i32_0 = arith.constant 0 : i32
    %c0_i32_1 = arith.constant 0 : i32
    return %c0_i32, %c0_i32_0 : i32, i32
  }
  func.func @transform_23(%arg0: i32) -> (i32, i32) {
    %c0_i32 = arith.constant 0 : i32
    %c0_i32_0 = arith.constant 0 : i32
    %c0_i32_1 = arith.constant 0 : i32
    return %c0_i32, %c0_i32_0 : i32, i32
  }
  func.func @transform_24(%arg0: i32) -> (i32, i32) {
    %c0_i32 = arith.constant 0 : i32
    %c0_i32_0 = arith.constant 0 : i32
    %c0_i32_1 = arith.constant 0 : i32
    return %c0_i32, %c0_i32_0 : i32, i32
  }
  func.func @transform_25(%arg0: i32) -> (i32, i32, i32) {
    %c0_i32 = arith.constant 0 : i32
    %c0_i32_0 = arith.constant 0 : i32
    %c0_i32_1 = arith.constant 0 : i32
    %c0_i32_2 = arith.constant 0 : i32
    return %c0_i32, %c0_i32_0, %c0_i32_1 : i32, i32, i32
  }
  func.func @transform_26(%arg0: i32) -> (i32, i32) {
    %c0_i32 = arith.constant 0 : i32
    %c0_i32_0 = arith.constant 0 : i32
    %c0_i32_1 = arith.constant 0 : i32
    return %c0_i32, %c0_i32_0 : i32, i32
  }
  func.func @transform_27(%arg0: i32) -> (i32, i32) {
    %c0_i32 = arith.constant 0 : i32
    %c0_i32_0 = arith.constant 0 : i32
    %c0_i32_1 = arith.constant 0 : i32
    return %c0_i32, %c0_i32_0 : i32, i32
  }
  func.func @transform_28(%arg0: i32) -> (i32, i32) {
    %c0_i32 = arith.constant 0 : i32
    %c0_i32_0 = arith.constant 0 : i32
    %c0_i32_1 = arith.constant 0 : i32
    return %c0_i32, %c0_i32_0 : i32, i32
  }
  func.func @transform_29(%arg0: i32) -> (i32, i32, i32) {
    %c0_i32 = arith.constant 0 : i32
    %c0_i32_0 = arith.constant 0 : i32
    %c0_i32_1 = arith.constant 0 : i32
    %c0_i32_2 = arith.constant 0 : i32
    return %c0_i32, %c0_i32_0, %c0_i32_1 : i32, i32, i32
  }
  func.func @transform_30(%arg0: i32) -> (i32, i32) {
    %c0_i32 = arith.constant 0 : i32
    %c0_i32_0 = arith.constant 0 : i32
    %c0_i32_1 = arith.constant 0 : i32
    return %c0_i32, %c0_i32_0 : i32, i32
  }
  func.func @transform_31(%arg0: i32) -> (i32, i32) {
    %c0_i32 = arith.constant 0 : i32
    %c0_i32_0 = arith.constant 0 : i32
    %c0_i32_1 = arith.constant 0 : i32
    return %c0_i32, %c0_i32_0 : i32, i32
  }
  func.func @transform_32(%arg0: i32) -> (i32, i32) {
    %c0_i32 = arith.constant 0 : i32
    %c0_i32_0 = arith.constant 0 : i32
    %c0_i32_1 = arith.constant 0 : i32
    return %c0_i32, %c0_i32_0 : i32, i32
  }
  func.func @transform_33(%arg0: i32) -> (i32, i32, i32) {
    %c0_i32 = arith.constant 0 : i32
    %c0_i32_0 = arith.constant 0 : i32
    %c0_i32_1 = arith.constant 0 : i32
    %c0_i32_2 = arith.constant 0 : i32
    return %c0_i32, %c0_i32_0, %c0_i32_1 : i32, i32, i32
  }
  func.func @transform_34(%arg0: i32) -> (i32, i32) {
    %c0_i32 = arith.constant 0 : i32
    %c0_i32_0 = arith.constant 0 : i32
    %c0_i32_1 = arith.constant 0 : i32
    return %c0_i32, %c0_i32_0 : i32, i32
  }
  func.func @transform_35(%arg0: i32) -> (i32, i32) {
    %c0_i32 = arith.constant 0 : i32
    %c0_i32_0 = arith.constant 0 : i32
    %c0_i32_1 = arith.constant 0 : i32
    return %c0_i32, %c0_i32_0 : i32, i32
  }
  func.func @transform_36(%arg0: i32) -> (i32, i32) {
    %c0_i32 = arith.constant 0 : i32
    %c0_i32_0 = arith.constant 0 : i32
    %c0_i32_1 = arith.constant 0 : i32
    return %c0_i32, %c0_i32_0 : i32, i32
  }
  func.func @transform_37(%arg0: i32) -> (i32, i32, i32) {
    %c0_i32 = arith.constant 0 : i32
    %c0_i32_0 = arith.constant 0 : i32
    %c0_i32_1 = arith.constant 0 : i32
    %c0_i32_2 = arith.constant 0 : i32
    return %c0_i32, %c0_i32_0, %c0_i32_1 : i32, i32, i32
  }
  func.func @transform_38(%arg0: i32) -> (i32, i32) {
    %c0_i32 = arith.constant 0 : i32
    %c0_i32_0 = arith.constant 0 : i32
    %c0_i32_1 = arith.constant 0 : i32
    return %c0_i32, %c0_i32_0 : i32, i32
  }
  func.func @transform_39(%arg0: i32) -> (i32, i32, i32) {
    %c0_i32 = arith.constant 0 : i32
    %c0_i32_0 = arith.constant 0 : i32
    %c0_i32_1 = arith.constant 0 : i32
    return %arg0, %c0_i32, %c0_i32_0 : i32, i32, i32
  }
}

</mosaic_0001>

<bundles_post_ra>
// kernel: a_call__.1
= control target key start
LH: loop header
LB: loop body
LE: loop exit
PB: predicated region body
PF: predicated region fallthrough
CT: control target
= control target key end

     0   :  { %s5953_s6 = smov 1   ;;  %s5954_s10 = smov 2   ;;  %s6731_s0 = inlined_call_operand.smem [shape: u32[40], index: -1, kind: input, shape index: {}] }
   0x1   :  { %s6019_s5 = sld [smem:[%s6731_s0]]   ;;  %s5955_s14 = smov 3  }
   0x2   :  { %s6024_s9 = sld [smem:[%s6731_s0 + %s5953_s6]]   ;;  %s5956_s18 = smov 4  }
   0x3   :  { %s6029_s13 = sld [smem:[%s6731_s0 + %s5954_s10]]   ;;  %s5957_s22 = smov 5  }
   0x4   :  { %s6034_s17 = sld [smem:[%s6731_s0 + %s5955_s14]]   ;;  %s5958_s26 = smov 6  }
   0x5   :  { %s6039_s21 = sld [smem:[%s6731_s0 + %s5956_s18]]   ;;  %s5959_s30 = smov 7  }
   0x6   :  { %s6044_s25 = sld [smem:[%s6731_s0 + %s5957_s22]]   ;;  %s5960_s4 = smov 8  }
   0x7   :  { %6739 = sst [smem:[#allocation37_spill]] %s6019_s5  ;;  %s5961_s10 = smov 9  }
   0x8   :  { %s6049_s29 = sld [smem:[%s6731_s0 + %s5958_s26]]   ;;  %s5962_s15 = smov 10  }
   0x9   :  { %s6054_s3 = sld [smem:[%s6731_s0 + %s5959_s30]]   ;;  %s5963_s20 = smov 11  }
   0xa   :  { %s6059_s8 = sld [smem:[%s6731_s0 + %s5960_s4]]   ;;  %s5964_s26 = smov 12  }
   0xb   :  { %s6064_s14 = sld [smem:[%s6731_s0 + %s5961_s10]]   ;;  %s5965_s1 = smov 13  }
   0xc   :  { %6740 = sst [smem:[#allocation38_spill]] %s6044_s25  ;;  %s5966_s7 = smov 14  }
   0xd   :  { %s6069_s19 = sld [smem:[%s6731_s0 + %s5962_s15]]   ;;  %s5967_s15 = smov 15  }
   0xe   :  { %6741 = sst [smem:[#allocation39_spill]] %s6049_s29  ;;  %s5968_s22 = smov 16  }
   0xf   :  { %s6074_s24 = sld [smem:[%s6731_s0 + %s5963_s20]]   ;;  %s5969_s28 = smov 17  }
  0x10   :  { %6742 = sst [smem:[#allocation40_spill]] %s6059_s8 }
  0x11   :  { %6743 = sst [smem:[#allocation41_spill]] %s6064_s14 }
  0x12   :  { %s6079_s30 = sld [smem:[%s6731_s0 + %s5964_s26]]  }
  0x13   :  { %6744 = sst [smem:[#allocation42_spill]] %s6069_s19 }
  0x14   :  { %s6084_s6 = sld [smem:[%s6731_s0 + %s5965_s1]]  }
  0x15   :  { %s6089_s12 = sld [smem:[%s6731_s0 + %s5966_s7]]   ;;  %s5970_s7 = smov 18  }
  0x16   :  { %s6094_s20 = sld [smem:[%s6731_s0 + %s5967_s15]]   ;;  %s5971_s15 = smov 19  }
  0x17   :  { %s6099_s27 = sld [smem:[%s6731_s0 + %s5968_s22]]   ;;  %s5972_s22 = smov 20  }
  0x18   :  { %s6104_s4 = sld [smem:[%s6731_s0 + %s5969_s28]]   ;;  %s5973_s28 = smov 21  }
  0x1a   :  { %6745 = sst [smem:[#allocation43_spill]] %s6084_s6 }
  0x1b   :  { %6746 = sst [smem:[#allocation44_spill]] %s6089_s12 }
  0x1c   :  { %6747 = sst [smem:[#allocation45_spill]] %s6094_s20 }
  0x1d   :  { %s6109_s12 = sld [smem:[%s6731_s0 + %s5970_s7]]   ;;  %s5974_s7 = smov 22  }
  0x1e   :  { %6748 = sst [smem:[#allocation46_spill]] %s6104_s4 }
  0x1f   :  { %s6114_s6 = sld [smem:[%s6731_s0 + %s5971_s15]]   ;;  %s5975_s15 = smov 23  }
  0x20   :  { %s6119_s20 = sld [smem:[%s6731_s0 + %s5972_s22]]   ;;  %s5976_s22 = smov 24  }
  0x21   :  { %s6124_s4 = sld [smem:[%s6731_s0 + %s5973_s28]]   ;;  %s5977_s28 = smov 25  }
  0x22   :  { %s6139_s19 = sld [smem:[%s6731_s0 + %s5976_s22]]   ;;  %s5980_s22 = smov 28  }
  0x23   :  { %6749 = sst [smem:[#allocation47_spill]] %s6109_s12 }
  0x24   :  { %s6129_s12 = sld [smem:[%s6731_s0 + %s5974_s7]]   ;;  %s5978_s7 = smov 26  }
  0x25   :  { %6750 = sst [smem:[#allocation48_spill]] %s6114_s6 }
  0x26   :  { %s6134_s6 = sld [smem:[%s6731_s0 + %s5975_s15]]   ;;  %s5979_s15 = smov 27  }
  0x27   :  { %s6144_s14 = sld [smem:[%s6731_s0 + %s5977_s28]]   ;;  %s5981_s28 = smov 29  }
  0x28   :  { %6752 = sst [smem:[#allocation50_spill]] %s6139_s19 }
  0x29   :  { %s6149_s29 = sld [smem:[%s6731_s0 + %s5978_s7]]   ;;  %s5982_s7 = smov 30  }
  0x2a   :  { %s6159_s19 = sld [smem:[%s6731_s0 + %s5980_s22]]   ;;  %s5984_s22 = smov 32  }
  0x2b   :  { %s6164_s25 = sld [smem:[%s6731_s0 + %s5981_s28]]   ;;  %s5985_s28 = smov 33  }
  0x2c   :  { %6751 = sst [smem:[#allocation49_spill]] %s6134_s6 }
  0x2d   :  { %s6154_s6 = sld [smem:[%s6731_s0 + %s5979_s15]]   ;;  %s5983_s15 = smov 31  }
  0x2e   :  { %s6169_s5 = sld [smem:[%s6731_s0 + %s5982_s7]]   ;;  %s5986_s7 = smov 34  }
  0x30   :  { %6754 = sst [smem:[#allocation52_spill]] %s6159_s19 }
  0x31   :  { %6755 = sst [smem:[#allocation53_spill]] %s6164_s25 }
  0x32   :  { %s6179_s19 = sld [smem:[%s6731_s0 + %s5984_s22]]   ;;  %s5988_s22 = smov 36  }
  0x33   :  { %6753 = sst [smem:[#allocation51_spill]] %s6154_s6 }
  0x34   :  { %6756 = sst [smem:[#allocation54_spill]] %s6169_s5 }
  0x35   :  { %s6174_s6 = sld [smem:[%s6731_s0 + %s5983_s15]]   ;;  %s5987_s15 = smov 35  }
  0x36   :  { %s6184_s25 = sld [smem:[%s6731_s0 + %s5985_s28]]   ;;  %s5989_s28 = smov 37  }
  0x37   :  { %s6189_s5 = sld [smem:[%s6731_s0 + %s5986_s7]]   ;;  %s5990_s7 = smov 38  }
  0x38   :  { %6758 = sst [smem:[#allocation56_spill]] %s6179_s19 }
  0x39   :  { %s6199_s19 = sld [smem:[%s6731_s0 + %s5988_s22]]  }
  0x3b   :  { %6757 = sst [smem:[#allocation55_spill]] %s6174_s6 }
  0x3c   :  { %6759 = sst [smem:[#allocation57_spill]] %s6184_s25 }
  0x3d   :  { %6760 = sst [smem:[#allocation58_spill]] %s6189_s5 }
  0x3e   :  { %s6194_s6 = sld [smem:[%s6731_s0 + %s5987_s15]]   ;;  %s5991_s15 = smov 39  }
  0x3f   :  { %s6204_s25 = sld [smem:[%s6731_s0 + %s5989_s28]]  }
  0x40   :  { %s6209_s5 = sld [smem:[%s6731_s0 + %s5990_s7]]  }
  0x44   :  { %6761 = sst [smem:[#allocation59_spill]] %s6194_s6 }
  0x45   :  { %s6214_s6 = sld [smem:[%s6731_s0 + %s5991_s15]]  }
  0x46   :  { %84 = vsyncpa [#allocation4], 0 }
  0x47   :  { %85 = vsyncpa [#allocation6], 0 }
  0x48   :  { %86 = vsyncpa [#allocation9], 0 }
  0x49   :  { %87 = vsyncpa [#allocation12], 0 }
  0x4a   :  { %88 = vsyncpa [#allocation15], 0 }
  0x4b   :  { %89 = vsyncpa [#allocation18], 0 }
  0x4c   :  { %90 = vsyncpa [#allocation21], 0 }
  0x4d   :  { %91 = vsyncpa [#allocation24], 0 }
  0x4e   :  { %92 = vsyncpa [#allocation27], 0  ;;  %s6216_s22 = smov 0  }
  0x4f LB: > { %s5992_s0 = smov [#allocation5]   ;;  %s6222_s26 = sadd.s32 4294967295, %s5951_s22   ;;  %s5951_s22 = sphi %s6216_s22, %s98_s22  }
  0x50   : > { %s979_s23 = sshll.u32 %s5992_s0, 4  ;;  %p4669_p0 = scmp.ge.s32.totalorder %s5951_s22, 1  ;;  %s980_s23 = int_to_ptr.vmem [resolvable:$true] %s979_s23 }
  0x51   : > { %p953_p1 = scmp.lt.s32.totalorder %s5951_s22, 3  ;;  %p6735_p2 = scmp.eq.s32.totalorder %s6222_s26, 0 }
  0x52   : > { %s5993_s1 = smov [#allocation8]   ;;  %s5994_s7 = smov [#allocation11]  }
  0x53   : > { %p6227_p3 = pnand %p4669_p0, %p953_p1  ;;  %s1003_s2 = sshll.u32 %s5993_s1, 4  ;;  %s6233_s2 = int_to_ptr.vmem [resolvable:$true] %s1003_s2 }
  0x54   : > { %s1033_s10 = sshll.u32 %s5994_s7, 4  ;;  %s5995_s15 = smov [#allocation14]   ;;  %s6241_s10 = int_to_ptr.vmem [resolvable:$true] %s1033_s10 }
  0x55   : > { %s6762_s28 = scalar_select %p6227_p3, 1, 0 }
  0x56   : > { %p5252_p4 = pneg %p6227_p3  ;;  %s1063_s16 = sshll.u32 %s5995_s15, 4  ;;  %s6243_s16 = int_to_ptr.vmem [resolvable:$true] %s1063_s16 }
  0x57   : > { %s5504_s0 = scalar_lea.vmem %s980_s23, 16  ;;  %s5511_s1 = scalar_lea.vmem %s980_s23, 32 }
  0x58   : > { %p6237_p5 = pnand %p6735_p2, %p5252_p4  ;;  %p5505_p7 = scmp.ne.s32.totalorder %s980_s23, %s5504_s0 }
  0x59   : > { %p5512_p10 = scmp.lt.s32.totalorder %s980_s23, %s980_s23  ;;  %p5513_p11 = scmp.lt.s32.totalorder %s5511_s1, %s5504_s0 }
  0x5a   : > { %p6247_p6 = pneg %p6237_p5 }
  0x5b   : > { %p5514_p12 = por %p5513_p11, %p5512_p10 }
  0x5c   : > { %p5507_p8 = pnand %p5505_p7, %p6247_p6 }
  0x5e   : > { %p5508_p9 = pneg %p5507_p8 }
  0x60   : > { %p5515_p13 = pnand %p5514_p12, %p5508_p9 }
  0x62   : > { %5518 = shalt.err (!%p5515_p13)
}
  0x63   : > { %5258 = dma.hbm_to_vmem [thread:$0]  (!%p6237_p5), %s6029_s13, 16, %s980_s23, [#allocation6]  }
  0x64   : > { %s5530_s7 = scalar_lea.vmem %s6233_s2, 16  ;;  %s5537_s15 = scalar_lea.vmem %s6233_s2, 32 }
  0x65   : > { %p5531_p0 = scmp.ne.s32.totalorder %s6233_s2, %s5530_s7  ;;  %p5538_p7 = scmp.lt.s32.totalorder %s6233_s2, %s6233_s2 }
  0x66   : > { %p5539_p8 = scmp.lt.s32.totalorder %s5537_s15, %s5530_s7 }
  0x67   : > { %p5533_p1 = pnand %p5531_p0, %p6247_p6 }
  0x68   : > { %p5540_p9 = por %p5539_p8, %p5538_p7 }
  0x69   : > { %p5534_p4 = pneg %p5533_p1 }
  0x6b   : > { %p5541_p10 = pnand %p5540_p9, %p5534_p4 }
  0x6d   : > { %5544 = shalt.err (!%p5541_p10)
}
  0x6e   : > { %5264 = dma.hbm_to_vmem [thread:$0]  (!%p6237_p5), %s6039_s21, 16, %s6233_s2, [#allocation9]  }
  0x6f   : > { %s5556_s23 = scalar_lea.vmem %s6241_s10, 16  ;;  %s5563_s0 = scalar_lea.vmem %s6241_s10, 32 }
  0x70   : > { %p5557_p11 = scmp.ne.s32.totalorder %s6241_s10, %s5556_s23  ;;  %p5564_p0 = scmp.lt.s32.totalorder %s6241_s10, %s6241_s10 }
  0x71   : > { %p5565_p1 = scmp.lt.s32.totalorder %s5563_s0, %s5556_s23 }
  0x72   : > { %p5559_p12 = pnand %p5557_p11, %p6247_p6 }
  0x73   : > { %p5566_p4 = por %p5565_p1, %p5564_p0 }
  0x74   : > { %p5560_p13 = pneg %p5559_p12 }
  0x76   : > { %p5567_p7 = pnand %p5566_p4, %p5560_p13 }
  0x78   : > { %5570 = shalt.err (!%p5567_p7)
}
  0x79   : > { %s6765_s8 = sld [smem:[#allocation40_spill]]  ;;  %s5582_s2 = scalar_lea.vmem %s6243_s16, 16 }
  0x7a   : > { %p5583_p8 = scmp.ne.s32.totalorder %s6243_s16, %s5582_s2  ;;  %s5589_s1 = scalar_lea.vmem %s6243_s16, 32 }
  0x7b   : > { %p5590_p11 = scmp.lt.s32.totalorder %s6243_s16, %s6243_s16  ;;  %p5591_p12 = scmp.lt.s32.totalorder %s5589_s1, %s5582_s2 }
  0x7c   : > { %p5585_p9 = pnand %p5583_p8, %p6247_p6 }
  0x7d   : > { %p5592_p13 = por %p5591_p12, %p5590_p11 }
  0x7e   : > { %p5586_p10 = pneg %p5585_p9 }
  0x7f   : > { %5270 = dma.hbm_to_vmem [thread:$0]  (!%p6237_p5), %s6765_s8, 16, %s6241_s10, [#allocation12]  }
  0x80   : > { %p5593_p0 = pnand %p5592_p13, %p5586_p10 }
  0x82   : > { %5596 = shalt.err (!%p5593_p0)
}
  0x83   : > { %5276 = dma.hbm_to_vmem [thread:$0]  (!%p6237_p5), %s6079_s30, 16, %s6243_s16, [#allocation15]  }
  0x84   : > { %s5996_s7 = smov [#allocation17]   ;;  %s5997_s15 = smov [#allocation20]  }
  0x85   : > { %s1103_s10 = sshll.u32 %s5996_s7, 4  ;;  %s1127_s23 = sshll.u32 %s5997_s15, 4  ;;  %s1104_s10 = int_to_ptr.vmem [resolvable:$true] %s1103_s10  ;;  %s1128_s23 = int_to_ptr.vmem [resolvable:$true] %s1127_s23 }
  0x86   : > { %s5608_s0 = scalar_lea.vmem %s1104_s10, 16  ;;  %s5615_s2 = scalar_lea.vmem %s1104_s10, 32 }
  0x87   : > { %p5609_p1 = scmp.ne.s32.totalorder %s1104_s10, %s5608_s0  ;;  %p5616_p8 = scmp.lt.s32.totalorder %s1104_s10, %s1104_s10 }
  0x88   : > { %p5617_p9 = scmp.lt.s32.totalorder %s5615_s2, %s5608_s0 }
  0x89   : > { %p5611_p4 = pnand %p5609_p1, %p6247_p6 }
  0x8a   : > { %p5618_p10 = por %p5617_p9, %p5616_p8 }
  0x8b   : > { %p5612_p7 = pneg %p5611_p4 }
  0x8d   : > { %p5619_p11 = pnand %p5618_p10, %p5612_p7 }
  0x8f   : > { %5622 = shalt.err (!%p5619_p11)
}
  0x90   : > { %5282 = dma.hbm_to_vmem [thread:$0]  (!%p6237_p5), %s6119_s20, 16, %s1104_s10, [#allocation18]  }
  0x91   : > { %s5634_s16 = scalar_lea.vmem %s1128_s23, 16  ;;  %s5641_s1 = scalar_lea.vmem %s1128_s23, 32 }
  0x92   : > { %p5635_p12 = scmp.ne.s32.totalorder %s1128_s23, %s5634_s16  ;;  %p5642_p1 = scmp.lt.s32.totalorder %s1128_s23, %s1128_s23 }
  0x93   : > { %p5643_p4 = scmp.lt.s32.totalorder %s5641_s1, %s5634_s16 }
  0x94   : > { %p5637_p13 = pnand %p5635_p12, %p6247_p6 }
  0x95   : > { %p5644_p2 = por %p5643_p4, %p5642_p1 }
  0x96   : > { %p5638_p0 = pneg %p5637_p13 }
  0x98   : > { %p5645_p3 = pnand %p5644_p2, %p5638_p0 }
  0x9a   : > { %5648 = shalt.err (!%p5645_p3)
}
  0x9b   : > { %5288 = dma.hbm_to_vmem [thread:$0]  (!%p6237_p5), %s6129_s12, 16, %s1128_s23, [#allocation21]  }
  0x9c   : > { %s5998_s7 = smov [#allocation23]   ;;  %s5999_s10 = smov [#allocation3]  }
  0x9d   : > { %s1157_s15 = sshll.u32 %s5998_s7, 4  ;;  %s965_s0 = sshll.u32 %s5999_s10, 4  ;;  %s1158_s15 = int_to_ptr.vmem [resolvable:$true] %s1157_s15  ;;  %s966_s0 = int_to_ptr.vmem [resolvable:$true] %s965_s0 }
  0x9e   : > { %s5660_s2 = scalar_lea.vmem %s1158_s15, 16  ;;  %s5667_s8 = scalar_lea.vmem %s1158_s15, 32 }
  0x9f   : > { %p5661_p7 = scmp.ne.s32.totalorder %s1158_s15, %s5660_s2  ;;  %p5668_p10 = scmp.lt.s32.totalorder %s1158_s15, %s1158_s15 }
  0xa0   : > { %p5669_p11 = scmp.lt.s32.totalorder %s5667_s8, %s5660_s2 }
  0xa1   : > { %p5663_p8 = pnand %p5661_p7, %p6247_p6 }
  0xa2   : > { %p5670_p2 = por %p5669_p11, %p5668_p10 }
  0xa3   : > { %p5664_p9 = pneg %p5663_p8 }
  0xa5   : > { %p5671_p3 = pnand %p5670_p2, %p5664_p9 }
  0xa7   : > { %5674 = shalt.err (!%p5671_p3)
}
  0xa8   : > { %5294 = dma.hbm_to_vmem [thread:$0]  (!%p6237_p5), %s6149_s29, 16, %s1158_s15, [#allocation24]  }
  0xa9   : > { %s5686_s23 = scalar_lea.vmem %s966_s0, 384  ;;  %p5694_p1 = scmp.lt.s32.totalorder %s966_s0, %s966_s0 }
  0xaa   : > { %p5687_p12 = scmp.ne.s32.totalorder %s966_s0, %s5686_s23  ;;  %p5695_p4 = scmp.lt.s32.totalorder %s5686_s23, %s5686_s23 }
  0xac   : > { %p5689_p13 = pnand %p5687_p12, %p6247_p6  ;;  %p5696_p7 = por %p5695_p4, %p5694_p1 }
  0xae   : > { %p5690_p0 = pneg %p5689_p13 }
  0xb0   : > { %p5697_p8 = pnand %p5696_p7, %p5690_p0 }
  0xb2   : > { %5700 = shalt.err (!%p5697_p8)
}
  0xb3   : > { %s6737_s8 = smov 64   ;;  %s6001_s16 = smov 4  }
  0xb4   : > { %5255 = dma.hbm_to_vmem [thread:$0]  (!%p6237_p5), %s6024_s9, 384, %s966_s0, [#allocation4], %s6737_s8, %s6737_s8, %s6001_s16  }
  0xb5   : > { %s6002_s1 = smov [#allocation7]   ;;  %s6003_s15 = smov [#allocation10]  }
  0xb6   : > { %s989_s7 = sshll.u32 %s6002_s1, 4  ;;  %s1019_s10 = sshll.u32 %s6003_s15, 4  ;;  %s990_s7 = int_to_ptr.vmem [resolvable:$true] %s989_s7  ;;  %s1020_s10 = int_to_ptr.vmem [resolvable:$true] %s1019_s10 }
  0xb7   : > { %s5712_s2 = scalar_lea.vmem %s990_s7, 768  ;;  %p5720_p2 = scmp.lt.s32.totalorder %s990_s7, %s990_s7 }
  0xb8   : > { %p5713_p9 = scmp.ne.s32.totalorder %s990_s7, %s5712_s2  ;;  %p5721_p3 = scmp.lt.s32.totalorder %s5712_s2, %s5712_s2 }
  0xba   : > { %p5715_p10 = pnand %p5713_p9, %p6247_p6  ;;  %p5722_p12 = por %p5721_p3, %p5720_p2 }
  0xbc   : > { %p5716_p11 = pneg %p5715_p10 }
  0xbe   : > { %p5723_p13 = pnand %p5722_p12, %p5716_p11 }
  0xc0   : > { %5726 = shalt.err (!%p5723_p13)
}
  0xc1   : > { %5261 = dma.hbm_to_vmem [thread:$0]  (!%p6237_p5), %s6034_s17, 768, %s990_s7, [#allocation6], %s6737_s8, %s6737_s8, %s6001_s16  }
  0xc2   : > { %s5738_s0 = scalar_lea.vmem %s1020_s10, 768  ;;  %p5746_p7 = scmp.lt.s32.totalorder %s1020_s10, %s1020_s10 }
  0xc3   : > { %p5739_p0 = scmp.ne.s32.totalorder %s1020_s10, %s5738_s0  ;;  %p5747_p8 = scmp.lt.s32.totalorder %s5738_s0, %s5738_s0 }
  0xc5   : > { %p5741_p1 = pnand %p5739_p0, %p6247_p6  ;;  %p5748_p9 = por %p5747_p8, %p5746_p7 }
  0xc7   : > { %p5742_p4 = pneg %p5741_p1 }
  0xc9   : > { %p5749_p10 = pnand %p5748_p9, %p5742_p4 }
  0xcb   : > { %5752 = shalt.err (!%p5749_p10)
}
  0xcc   : > { %5267 = dma.hbm_to_vmem [thread:$0]  (!%p6237_p5), %s6054_s3, 768, %s1020_s10, [#allocation9], %s6737_s8, %s6737_s8, %s6001_s16  }
  0xcd   : > { %s6004_s23 = smov [#allocation13]   ;;  %s6005_s7 = smov [#allocation16]  }
  0xce   : > { %s1049_s1 = sshll.u32 %s6004_s23, 4  ;;  %s1083_s15 = sshll.u32 %s6005_s7, 4  ;;  %s1050_s1 = int_to_ptr.vmem [resolvable:$true] %s1049_s1  ;;  %s1084_s15 = int_to_ptr.vmem [resolvable:$true] %s1083_s15 }
  0xcf   : > { %s5764_s2 = scalar_lea.vmem %s1050_s1, 768  ;;  %p5772_p12 = scmp.lt.s32.totalorder %s1050_s1, %s1050_s1 }
  0xd0   : > { %p5765_p11 = scmp.ne.s32.totalorder %s1050_s1, %s5764_s2  ;;  %p5773_p13 = scmp.lt.s32.totalorder %s5764_s2, %s5764_s2 }
  0xd2   : > { %p5767_p2 = pnand %p5765_p11, %p6247_p6  ;;  %p5774_p0 = por %p5773_p13, %p5772_p12 }
  0xd4   : > { %p5768_p3 = pneg %p5767_p2 }
  0xd6   : > { %p5775_p1 = pnand %p5774_p0, %p5768_p3 }
  0xd8   : > { %5778 = shalt.err (!%p5775_p1)
}
  0xd9   : > { %5273 = dma.hbm_to_vmem [thread:$0]  (!%p6237_p5), %s6074_s24, 768, %s1050_s1, [#allocation12], %s6737_s8, %s6737_s8, %s6001_s16  }
  0xda   : > { %s5790_s10 = scalar_lea.vmem %s1084_s15, 16  ;;  %s5797_s0 = scalar_lea.vmem %s1084_s15, 32 }
  0xdb   : > { %p5791_p4 = scmp.ne.s32.totalorder %s1084_s15, %s5790_s10  ;;  %p5798_p9 = scmp.lt.s32.totalorder %s1084_s15, %s1084_s15 }
  0xdc   : > { %p5799_p10 = scmp.lt.s32.totalorder %s5797_s0, %s5790_s10 }
  0xdd   : > { %p5793_p7 = pnand %p5791_p4, %p6247_p6 }
  0xde   : > { %p5800_p11 = por %p5799_p10, %p5798_p9 }
  0xdf   : > { %p5794_p8 = pneg %p5793_p7 }
  0xe1   : > { %p5801_p2 = pnand %p5800_p11, %p5794_p8 }
  0xe3   : > { %5804 = shalt.err (!%p5801_p2)
}
  0xe4   : > { %5279 = dma.hbm_to_vmem [thread:$0]  (!%p6237_p5), %s6099_s27, 16, %s1084_s15, [#allocation15]  }
  0xe5   : > { %s6006_s23 = smov [#allocation19]   ;;  %s6007_s1 = smov [#allocation22]  }
  0xe6   : > { %s1113_s7 = sshll.u32 %s6006_s23, 4  ;;  %s1143_s2 = sshll.u32 %s6007_s1, 4  ;;  %s1114_s7 = int_to_ptr.vmem [resolvable:$true] %s1113_s7  ;;  %s1144_s2 = int_to_ptr.vmem [resolvable:$true] %s1143_s2 }
  0xe7   : > { %s5816_s8 = scalar_lea.vmem %s1114_s7, 384  ;;  %p5824_p0 = scmp.lt.s32.totalorder %s1114_s7, %s1114_s7 }
  0xe8   : > { %p5817_p3 = scmp.ne.s32.totalorder %s1114_s7, %s5816_s8  ;;  %p5825_p1 = scmp.lt.s32.totalorder %s5816_s8, %s5816_s8 }
  0xea   : > { %p5819_p12 = pnand %p5817_p3, %p6247_p6  ;;  %p5826_p4 = por %p5825_p1, %p5824_p0 }
  0xec   : > { %p5820_p13 = pneg %p5819_p12 }
  0xee   : > { %p5827_p7 = pnand %p5826_p4, %p5820_p13 }
  0xf0   : > { %5830 = shalt.err (!%p5827_p7)
}
  0xf1   : > { %s6766_s10 = smov 64   ;;  %s5842_s15 = scalar_lea.vmem %s1144_s2, 384 }
  0xf2   : > { %5285 = dma.hbm_to_vmem [thread:$0]  (!%p6237_p5), %s6124_s4, 384, %s1114_s7, [#allocation18], %s6766_s10, %s6766_s10, %s6001_s16  }
  0xf3   : > { %p5843_p8 = scmp.ne.s32.totalorder %s1144_s2, %s5842_s15  ;;  %p5850_p11 = scmp.lt.s32.totalorder %s1144_s2, %s1144_s2 }
  0xf4   : > { %p5851_p2 = scmp.lt.s32.totalorder %s5842_s15, %s5842_s15 }
  0xf5   : > { %p5845_p9 = pnand %p5843_p8, %p6247_p6 }
  0xf6   : > { %p5852_p3 = por %p5851_p2, %p5850_p11 }
  0xf7   : > { %p5846_p10 = pneg %p5845_p9 }
  0xf9   : > { %p5853_p12 = pnand %p5852_p3, %p5846_p10 }
  0xfb   : > { %5856 = shalt.err (!%p5853_p12)
}
  0xfc   : > { %5291 = dma.hbm_to_vmem [thread:$0]  (!%p6237_p5), %s6144_s14, 384, %s1144_s2, [#allocation21], %s6766_s10, %s6766_s10, %s6001_s16  }
  0xfd   : > { %s6008_s8 = smov [#allocation25]   ;;  %s6009_s23 = smov [#allocation26]  }
  0xfe   : > { %s1173_s0 = sshll.u32 %s6008_s8, 4  ;;  %s1187_s7 = sshll.u32 %s6009_s23, 4  ;;  %s1174_s0 = int_to_ptr.vmem [resolvable:$true] %s1173_s0  ;;  %s1188_s7 = int_to_ptr.vmem [resolvable:$true] %s1187_s7 }
  0xff   : > { %s5868_s1 = scalar_lea.vmem %s1174_s0, 384  ;;  %p5876_p4 = scmp.lt.s32.totalorder %s1174_s0, %s1174_s0 }
 0x100   : > { %p5869_p13 = scmp.ne.s32.totalorder %s1174_s0, %s5868_s1  ;;  %p5877_p7 = scmp.lt.s32.totalorder %s5868_s1, %s5868_s1 }
 0x102   : > { %p5871_p0 = pnand %p5869_p13, %p6247_p6  ;;  %p5878_p8 = por %p5877_p7, %p5876_p4 }
 0x104   : > { %p5872_p1 = pneg %p5871_p0 }
 0x106   : > { %p5879_p9 = pnand %p5878_p8, %p5872_p1 }
 0x108   : > { %5882 = shalt.err (!%p5879_p9)
}
 0x109   : > { %s6767_s2 = sld [smem:[#allocation53_spill]]  ;;  %s5894_s15 = scalar_lea.vmem %s1188_s7, 16 }
 0x10a   : > { %p5895_p10 = scmp.ne.s32.totalorder %s1188_s7, %s5894_s15  ;;  %s5901_s8 = scalar_lea.vmem %s1188_s7, 32 }
 0x10b   : > { %p5902_p3 = scmp.lt.s32.totalorder %s1188_s7, %s1188_s7  ;;  %p5903_p12 = scmp.lt.s32.totalorder %s5901_s8, %s5894_s15 }
 0x10c   : > { %p5897_p11 = pnand %p5895_p10, %p6247_p6 }
 0x10d   : > { %p5904_p13 = por %p5903_p12, %p5902_p3 }
 0x10e   : > { %p5898_p2 = pneg %p5897_p11 }
 0x10f   : > { %5297 = dma.hbm_to_vmem [thread:$0]  (!%p6237_p5), %s6767_s2, 384, %s1174_s0, [#allocation24], %s6766_s10, %s6766_s10, %s6001_s16  }
 0x110   : > { %p5905_p0 = pnand %p5904_p13, %p5898_p2 }
 0x112   : > { %5908 = shalt.err (!%p5905_p0)
}
 0x113   : > { %s6768_s23 = sld [smem:[#allocation54_spill]]  ;;  %p6769_p1 = scmp.ne.s32.totalorder %s6762_s28, 0 }
 0x114   : > { %p6770_p4 = scmp.eq.s32.totalorder (!%p6769_p1), %s6222_s26, 0 }
 0x115   : > { %1232 = sbr.rel (%p6769_p1) target bundleno = 4139 (0x102b), region = 176 }
 0x119   : > { %5300 = dma.hbm_to_vmem [thread:$0]  (!%p6237_p5), %s6768_s23, 16, %s1188_s7, [#allocation27]  }
 0x11a   : > { %5914 = dma.done.wait (%p6770_p4), [#allocation4], 384   ;;  %p6771_p7 = pmov %p6770_p4 }
 0x11b   : > { %p6772_p6 = pmov %p6770_p4 }
 0x11c   : > { %5916 = vsyncadd (%p6771_p7), [#allocation4], 4294966912 }
 0x11d   : > { %5918 = dma.done.wait (%p6772_p6), [#allocation6], 784   ;;  %p6773_p8 = pmov %p6770_p4 }
 0x11e   : > { %p6774_p9 = pmov %p6770_p4 }
 0x11f   : > { %5920 = vsyncadd (%p6773_p8), [#allocation6], 4294966512 }
 0x120   : > { %5922 = dma.done.wait (%p6774_p9), [#allocation9], 784   ;;  %p6775_p5 = pmov %p6770_p4 }
 0x121   : > { %p6776_p10 = pmov %p6770_p4 }
 0x122   : > { %5924 = vsyncadd (%p6775_p5), [#allocation9], 4294966512 }
 0x123   : > { %5926 = dma.done.wait (%p6776_p10), [#allocation12], 784   ;;  %p6777_p11 = pmov %p6770_p4 }
 0x124   : > { %p6778_p2 = pmov %p6770_p4 }
 0x125   : > { %5928 = vsyncadd (%p6777_p11), [#allocation12], 4294966512 }
 0x126   : > { %5930 = dma.done.wait (%p6778_p2), [#allocation15], 32   ;;  %p6779_p3 = pmov %p6778_p2 }
 0x127   : > { %p6780_p12 = pmov %p6778_p2 }
 0x128   : > { %5932 = vsyncadd (%p6779_p3), [#allocation15], 4294967264 }
 0x129   : > { %5934 = dma.done.wait (%p6780_p12), [#allocation18], 400   ;;  %p6781_p13 = pmov %p6778_p2 }
 0x12a   : > { %p6782_p0 = pmov %p6778_p2 }
 0x12b   : > { %5936 = vsyncadd (%p6781_p13), [#allocation18], 4294966896 }
 0x12c   : > { %5938 = dma.done.wait (%p6782_p0), [#allocation21], 400   ;;  %p6783_p1 = pmov %p6782_p0 }
 0x12d   : > { %p6784_p4 = pmov %p6782_p0 }
 0x12e   : > { %5940 = vsyncadd (%p6783_p1), [#allocation21], 4294966896 }
 0x12f   : > { %5942 = dma.done.wait (%p6784_p4), [#allocation24], 400   ;;  %p6785_p7 = pmov %p6782_p0 }
 0x130   : > { %p6786_p6 = pmov %p6782_p0 }
 0x131   : > { %5944 = vsyncadd (%p6785_p7), [#allocation24], 4294966896 }
 0x132   : > { %5946 = dma.done.wait (%p6786_p6), [#allocation27], 16   ;;  %p6787_p8 = pmov %p6782_p0 }
 0x133   : > { %s6788_s28 = sld [smem:[#allocation37_spill]]  ;;  %p1388_p9 = scmp.lt.s32.totalorder %s6222_s26, 1  ;;  %vm1399_vm0 = vcmask 261120   ;;  %v6010_v0 = vmov 0.0   ;;  %v5399_v1 = vld [vmem:[#allocation3 + $0x8] sm:$0xff]   ;;  %vm1408_vm1 = vcmask 130048  }
 0x134   : > { %5948 = vsyncadd (%p6787_p8), [#allocation27], 4294967280  ;;  %1400 = vst.msk [vmem:[#allocation2] sm:$0xff] %vm1399_vm0, %v6010_v0  ;;  %v5400_v2 = vld [vmem:[#allocation3] sm:$0xff]   ;;  %4971 = vmatprep.subr.bf16.mxu0 %v5399_v1  ;;  %v5401_v6 = vld [vmem:[#allocation3 + $0x10] sm:$0xff]   ;;  %s6789_s16 = sld [smem:[#allocation38_spill]] }
 0x135   : > { %1401 = vst.msk [vmem:[#allocation2 + $0x8] sm:$0xff] %vm1399_vm0, %v6010_v0  ;;  %1402 = vst.msk [vmem:[#allocation2 + $0x10] sm:$0xff] %vm1399_vm0, %v6010_v0  ;;  %s6809_s26 = smov (!%p1388_p9, %s6222_s26), 1  ;;  %4972 = vmatpush3.bf16.msra.mxu0 %v5399_v1  ;;  %4977 = vmatprep.subr.bf16.mxu1 %v5400_v2  ;;  %v5402_v22 = vld [vmem:[#allocation7 + $0x18] sm:$0xff]   ;;  %v5403_v23 = vld [vmem:[#allocation7 + $0x8] sm:$0xff]   ;;  %s6790_s10 = sld [smem:[#allocation39_spill]] }
 0x136   : > { %1404 = vst.msk [vmem:[#allocation2 + $0x20] sm:$0xff] %vm1399_vm0, %v6010_v0  ;;  %1403 = vst.msk [vmem:[#allocation2 + $0x18] sm:$0xff] %vm1399_vm0, %v6010_v0  ;;  %s5187_s11 = smul.u32 24, %s6809_s26  ;;  %4978 = vmatpush3.bf16.msra.mxu1 %v5400_v2  ;;  %4983 = vmatprep.subr.bf16.mxu0 %v5401_v6  ;;  %v5404_v24 = vld [vmem:[#allocation7 + $0x10] sm:$0xff]   ;;  %v5405_v25 = vld [vmem:[#allocation7] sm:$0xff]   ;;  %s6791_s0 = sld [smem:[#allocation41_spill]] }
 0x137   : > { %4989 = vmatprep.subr.bf16.mxu1 %v5402_v22  ;;  %v5406_v26 = vld [vmem:[#allocation7 + $0x28] sm:$0xff]   ;;  %v4715_v36 = vld [vmem:[#allocation5] ss:$0 sm:$0xff]  ;;  %v5407_v61 = vld [vmem:[#allocation7 + $0x20] sm:$0xff]   ;;  %s6792_s7 = sld [smem:[#allocation42_spill]] }
 0x138   : > { %s6793_s1 = sld [smem:[#allocation45_spill]] }
 0x139   : > { %s1392_s18 = scalar_lea.vmem %s6788_s28, %s5187_s11  ;;  %s6794_s2 = sld [smem:[#allocation43_spill]] }
 0x13a   : > { %v1405_v3 = vld [vmem:[%s1392_s18] sm:$0xff]  ;;  %v1406_v4 = vld [vmem:[%s1392_s18 + $0x8] sm:$0xff]  ;;  %v1407_v5 = vld [vmem:[%s1392_s18 + $0x10] sm:$0xff]  ;;  %s6795_s15 = sld [smem:[#allocation44_spill]] }
 0x13b   : > { %1409 = vst.msk [vmem:[#allocation2 + $0x8] sm:$0xff] %vm1408_vm1, %v1405_v3  ;;  %1410 = vst.msk [vmem:[#allocation2 + $0x10] sm:$0xff] %vm1408_vm1, %v1406_v4  ;;  %s6796_s8 = sld [smem:[#allocation48_spill]] }
 0x13c   : > { %1411 = vst.msk [vmem:[#allocation2 + $0x18] sm:$0xff] %vm1408_vm1, %v1407_v5  ;;  %s6797_s23 = sld [smem:[#allocation46_spill]] }
 0x13d   : > { %s6798_s28 = sld [smem:[#allocation47_spill]] }
 0x13e   : > { %s6799_s18 = sld [smem:[#allocation49_spill]] }
 0x142   : > { %v1413_v7 = vld [vmem:[#allocation2 + $0xf] sm:$0xff]  ;;  %v1412_v12 = vld [vmem:[#allocation2 + $0x7] sm:$0xff] }
 0x143   : > { %v1419_v8 = vld [vmem:[#allocation2 + $0x8] sm:$0xff]  ;;  %v1420_v9 = vld [vmem:[#allocation2 + $0x10] sm:$0xff]  ;;  %v1415_v14 = vpack.c.bf16 %v1413_v7, %v1412_v12  ;;  %v1421_v15 = vld [vmem:[#allocation2 + $0x18] sm:$0xff] }
 0x144   : > { %v1422_v10 = vpack.c.bf16 %v1420_v9, %v1419_v8  ;;  %v1547_v11 = vld [vmem:[#allocation2 + $0x9] sm:$0xff]  ;;  %v1414_v13 = vld [vmem:[#allocation2 + $0x17] sm:$0xff]  ;;  %v1423_v18 = vpack.c.bf16 %v1421_v15, %v1421_v15 }
 0x145   : > { %v1548_v16 = vld [vmem:[#allocation2 + $0x11] sm:$0xff]  ;;  %v1416_v17 = vpack.c.bf16 %v1414_v13, %v1414_v13  ;;  %4979 = vmatprep.mubr.msk.bf16.mxu1 %vm1408_vm1, %v1415_v14  ;;  %v1549_v20 = vld [vmem:[#allocation2 + $0x19] sm:$0xff] }
 0x146   : > { %4973 = vmatprep.mubr.msk.bf16.mxu0 %vm1408_vm1, %v1422_v10  ;;  %v1550_v19 = vpack.c.bf16 %v1548_v16, %v1547_v11  ;;  %v1551_v21 = vpack.c.bf16 %v1549_v20, %v1549_v20  ;;  %v4728_v10 = vld [vmem:[#allocation8] ss:$0 sm:$0xff] }
 0x147   : > { %4974 = vmatmul.mubr.msk.bf16.vlgmr.msra.gmra.mxu0 %vm1408_vm1, %v1423_v18  ;;  %4980 = vmatmul.mubr.msk.bf16.vlgmr.msra.gmra.mxu1 %vm1408_vm1, %v1416_v17 }
 0x148   : > { %4984 = vmatpush3.bf16.msra.mxu0 %v5401_v6  ;;  %4985 = vmatprep.mubr.msk.bf16.mxu0 %vm1408_vm1, %v1550_v19 }
 0x149   : > { %4997 = vmatprep.subr.bf16.mxu0 %v5403_v23  ;;  %4990 = vmatpush3.bf16.msra.mxu1 %v5402_v22 }
 0x14a   : > { %4991 = vmatprep.subr.bf16.mxu1 %v5404_v24 }
 0x14d   : > { %4992 = vmatpush3.bf16.msra.mxu1 %v5404_v24 }
 0x14e   : > { %5005 = vmatprep.subr.bf16.mxu1 %v5406_v26 }
 0x14f   : > { %4986 = vmatmul.mubr.msk.bf16.vlgmr.msra.gmra.mxu0 %vm1408_vm1, %v1551_v21 }
 0x150   : > { %4998 = vmatpush3.bf16.msra.mxu0 %v5403_v23 }
 0x151   : > { %4999 = vmatprep.subr.bf16.mxu0 %v5405_v25 }
 0x154   : > { %5000 = vmatpush3.bf16.msra.mxu0 %v5405_v25 }
 0x207   : > { %v4975_v27 = vpop.f32.mrf.mxu0  ;;  %v4981_v28 = vpop.f32.mrf.mxu1 }
 0x208   : > { %v1542_v34 = vadd.f32 %v4981_v28, %v4975_v27 }
 0x209   : > { %v1473_v29 = vpop.f32.mrf.mxu0  ;;  %v1533_v30 = vpop.f32.mrf.mxu1 }
 0x20a   : > { %v1534_v37 = vadd.f32 %v1533_v30, %v1473_v29 }
 0x20b   : > { %v4976_v31 = vpop.f32.mrf.mxu0  ;;  %v4982_v32 = vpop.f32.mrf.mxu1 }
 0x20c   : > { %v5408_v32 = vld [vmem:[#allocation10 + $0x18] sm:$0xff]  }
 0x20d   : > { %v1476_v33 = vpop.f32.mrf.mxu0  ;;  %v1536_v39 = vpop.f32.mrf.mxu1  ;;  %5013 = vmatprep.subr.bf16.mxu0 %v5408_v32 }
 0x20e   : > { %v1537_v44 = vadd.f32 %v1536_v39, %v1476_v33  ;;  %v5409_v33 = vld [vmem:[#allocation10 + $0x8] sm:$0xff]  }
 0x20f   : > { %v4987_v35 = vpop.f32.mrf.mxu0 }
 0x210   : > { %v1617_v38 = vadd.f32 %v4987_v35, %v1542_v34  ;;  %v5410_v34 = vld [vmem:[#allocation10 + $0x10] sm:$0xff]   ;;  %v5411_v35 = vld [vmem:[#allocation10] sm:$0xff]  }
 0x211   : > { %v1601_v40 = vpop.f32.mrf.mxu0 }
 0x212   : > { %v6430_v41 = vadd.f32 %v4715_v36, %v1617_v38  ;;  %v1615_v42 = vadd.f32 %v1601_v40, %v1534_v37 }
 0x213   : > { %v4988_v43 = vpop.f32.mrf.mxu0 }
 0x214   : > { %1630 = vst.msk [vmem:[#allocation2 + $0x18] sm:$0xff] %vm1399_vm0, %v6430_v41  ;;  %v6434_v45 = vadd.f32 %v4715_v36, %v1615_v42 }
 0x215   : > { %v1604_v46 = vpop.f32.mrf.mxu0 }
 0x216   : > { %1628 = vst.msk [vmem:[#allocation2 + $0x8] sm:$0xff] %vm1399_vm0, %v6434_v45  ;;  %v1616_v47 = vadd.f32 %v1604_v46, %v1537_v44 }
 0x218   : > { %v6438_v48 = vadd.f32 %v4715_v36, %v1616_v47  ;;  %v6464_v36 = vld [vmem:[#allocation10 + $0x28] sm:$0xff]  }
 0x21a   : > { %1629 = vst.msk [vmem:[#allocation2 + $0x10] sm:$0xff] %vm1399_vm0, %v6438_v48 }
 0x21b   : > { %v1642_v51 = vld [vmem:[#allocation2 + $0x18] sm:$0xff] }
 0x21c   : > { %v1644_v60 = vpack.c.bf16 %v1642_v51, %v1642_v51  ;;  %v1784_v63 = vld [vmem:[#allocation2 + $0x19] sm:$0xff] }
 0x21d   : > { %v1640_v49 = vld [vmem:[#allocation2 + $0x8] sm:$0xff]  ;;  %v1786_v0 = vpack.c.bf16 %v1784_v63, %v1784_v63  ;;  %v4729_v63 = vld [vmem:[%s6789_s16] ss:$0 sm:$0xff]  ;;  %s6800_s16 = sld [smem:[#allocation50_spill]] }
 0x21e   : > { %v1631_v50 = vld [vmem:[#allocation2 + $0x7] sm:$0xff] }
 0x221   : > { %v1632_v52 = vld [vmem:[#allocation2 + $0xf] sm:$0xff]  ;;  %v1633_v53 = vld [vmem:[#allocation2 + $0x17] sm:$0xff] }
 0x222   : > { %v1641_v54 = vld [vmem:[#allocation2 + $0x10] sm:$0xff]  ;;  %v1634_v58 = vpack.c.bf16 %v1632_v52, %v1631_v50  ;;  %v1635_v59 = vpack.c.bf16 %v1633_v53, %v1633_v53 }
 0x223   : > { %v1643_v55 = vpack.c.bf16 %v1641_v54, %v1640_v49  ;;  %v1782_v56 = vld [vmem:[#allocation2 + $0x9] sm:$0xff]  ;;  %v1783_v57 = vld [vmem:[#allocation2 + $0x11] sm:$0xff] }
 0x224   : > { %5001 = vmatprep.mubr.msk.bf16.mxu0 %vm1399_vm0, %v1634_v58  ;;  %v1785_v62 = vpack.c.bf16 %v1783_v57, %v1782_v56 }
 0x225   : > { %4993 = vmatprep.mubr.msk.bf16.mxu1 %vm1399_vm0, %v1643_v55  ;;  %5002 = vmatmul.mubr.msk.bf16.vlgmr.msra.gmra.mxu0 %vm1399_vm0, %v1635_v59 }
 0x226   : > { %4994 = vmatmul.mubr.msk.bf16.vlgmr.msra.gmra.mxu1 %vm1399_vm0, %v1644_v60  ;;  %5014 = vmatpush3.bf16.msra.mxu0 %v5408_v32  ;;  %v5413_v32 = vld [vmem:[#allocation10 + $0x20] sm:$0xff]  }
 0x227   : > { %5006 = vmatpush3.bf16.msra.mxu1 %v5406_v26  ;;  %5009 = vmatprep.mubr.msk.bf16.mxu1 %vm1399_vm0, %v1785_v62 }
 0x228   : > { %5007 = vmatprep.subr.bf16.mxu1 %v5407_v61  ;;  %5015 = vmatprep.subr.bf16.mxu0 %v5410_v34 }
 0x22a   : > { %5016 = vmatpush3.bf16.msra.mxu0 %v5410_v34 }
 0x22b   : > { %5008 = vmatpush3.bf16.msra.mxu1 %v5407_v61  ;;  %5029 = vmatprep.subr.bf16.mxu0 %v6464_v36 }
 0x22c   : > { %5021 = vmatprep.subr.bf16.mxu1 %v5409_v33 }
 0x22e   : > { %5010 = vmatmul.mubr.msk.bf16.vlgmr.msra.gmra.mxu1 %vm1399_vm0, %v1786_v0 }
 0x22f   : > { %5022 = vmatpush3.bf16.msra.mxu1 %v5409_v33 }
 0x230   : > { %5023 = vmatprep.subr.bf16.mxu1 %v5411_v35 }
 0x233   : > { %5024 = vmatpush3.bf16.msra.mxu1 %v5411_v35 }
 0x2e5   : > { %v5003_v2 = vpop.f32.mrf.mxu0 }
 0x2e6   : > { %v4995_v1 = vpop.f32.mrf.mxu1 }
 0x2e7   : > { %v1768_v4 = vpop.f32.mrf.mxu0  ;;  %v1777_v8 = vadd.f32 %v5003_v2, %v4995_v1  ;;  %v4730_v1 = vld [vmem:[%s6790_s10] ss:$0 sm:$0xff]  ;;  %s6801_s10 = sld [smem:[#allocation51_spill]] }
 0x2e8   : > { %v1702_v3 = vpop.f32.mrf.mxu1 }
 0x2e9   : > { %v5004_v6 = vpop.f32.mrf.mxu0  ;;  %v1769_v11 = vadd.f32 %v1768_v4, %v1702_v3 }
 0x2ea   : > { %v4996_v5 = vpop.f32.mrf.mxu1 }
 0x2eb   : > { %v1771_v13 = vpop.f32.mrf.mxu0 }
 0x2ec   : > { %v1705_v7 = vpop.f32.mrf.mxu1 }
 0x2ed   : > { %v1772_v18 = vadd.f32 %v1771_v13, %v1705_v7 }
 0x2ee   : > { %v5011_v9 = vpop.f32.mrf.mxu1 }
 0x2ef   : > { %v1860_v12 = vadd.f32 %v5011_v9, %v1777_v8 }
 0x2f0   : > { %v1844_v14 = vpop.f32.mrf.mxu1 }
 0x2f1   : > { %v6448_v15 = vadd.f32 %v4728_v10, %v1860_v12  ;;  %v1858_v16 = vadd.f32 %v1844_v14, %v1769_v11 }
 0x2f2   : > { %v5012_v17 = vpop.f32.mrf.mxu1 }
 0x2f3   : > { %v1868_v19 = vadd.f32 %v4728_v10, %v1858_v16  ;;  %v1877_v20 = vsel %vm1399_vm0, %v6448_v15, 0.0  ;;  %v1886_v27 = vmul.f32 %v6448_v15, %v6448_v15 }
 0x2f4   : > { %v1847_v21 = vpop.f32.mrf.mxu1  ;;  %1878 = vadd.xlane.f32.xlu1 %v1877_v20 }
 0x2f5   : > { %v1859_v22 = vadd.f32 %v1847_v21, %v1772_v18  ;;  %v1871_v23 = vsel %vm1399_vm0, %v1868_v19, 0.0  ;;  %v1884_v24 = vmul.f32 %v1868_v19, %v1868_v19  ;;  %v1893_v30 = vsel %vm1399_vm0, %v1886_v27, 0.0 }
 0x2f6   : > { %1872 = vadd.xlane.f32.xlu0 %v1871_v23 }
 0x2f7   : > { %v6453_v25 = vadd.f32 %v4728_v10, %v1859_v22  ;;  %v1887_v26 = vsel %vm1399_vm0, %v1884_v24, 0.0 }
 0x2f8   : > { %1888 = vadd.xlane.f32.xlu1 %v1887_v26 }
 0x2f9   : > { %v1874_v28 = vsel %vm1399_vm0, %v6453_v25, 0.0  ;;  %v1885_v29 = vmul.f32 %v6453_v25, %v6453_v25 }
 0x2fa   : > { %1875 = vadd.xlane.f32.xlu0 %v1874_v28 }
 0x2fb   : > { %v1890_v31 = vsel %vm1399_vm0, %v1885_v29, 0.0 }
 0x2fc   : > { %1894 = vadd.xlane.f32.xlu1 %v1893_v30 }
 0x2fe   : > { %1891 = vadd.xlane.f32.xlu0 %v1890_v31 }
 0x37d   : > { %v1879_v37 = vpop.xlane.xlu1 %1878 }
 0x37e   : > { %v1883_v42 = vmul.f32 0.03125, %v1879_v37 }
 0x37f   : > { %v1873_v38 = vpop.xlane.xlu0 %1872 }
 0x380   : > { %v1881_v39 = vmul.f32 0.03125, %v1873_v38  ;;  %v1901_v51 = vmul.f32 %v1883_v42, %v1883_v42  ;;  %v1907_v2 = vsub.f32 %v6448_v15, %v1883_v42 }
 0x381   : > { %v1889_v40 = vpop.xlane.xlu1 %1888 }
 0x382   : > { %v1899_v43 = vmul.f32 %v1881_v39, %v1881_v39  ;;  %v1896_v44 = vmul.f32 0.03125, %v1889_v40  ;;  %v1905_v61 = vsub.f32 %v1868_v19, %v1881_v39 }
 0x383   : > { %v1876_v46 = vpop.xlane.xlu0 %1875 }
 0x384   : > { %v1902_v47 = vsub.f32 %v1896_v44, %v1899_v43  ;;  %v1882_v49 = vmul.f32 0.03125, %v1876_v46 }
 0x385   : > { %v1895_v50 = vpop.xlane.xlu1 %1894 }
 0x386   : > { %v1908_v52 = vadd.f32 1e-05, %v1902_v47  ;;  %v1898_v53 = vmul.f32 0.03125, %v1895_v50  ;;  %v1900_v55 = vmul.f32 %v1882_v49, %v1882_v49  ;;  %v1906_v6 = vsub.f32 %v6453_v25, %v1882_v49  ;;  %v4743_v49 = vld [vmem:[#allocation11] ss:$0 sm:$0xff] }
 0x387   : > { %v1892_v54 = vpop.xlane.xlu0 %1891 }
 0x388   : > { %5445 = vrsqrt.f32 %v1908_v52  ;;  %v1904_v56 = vsub.f32 %v1898_v53, %v1901_v51  ;;  %v1897_v57 = vmul.f32 0.03125, %v1892_v54 }
 0x38a   : > { %v1910_v58 = vadd.f32 1e-05, %v1904_v56  ;;  %v1903_v59 = vsub.f32 %v1897_v57, %v1900_v55 }
 0x38c   : > { %5447 = vrsqrt.f32 %v1910_v58  ;;  %v1909_v60 = vadd.f32 1e-05, %v1903_v59 }
 0x38e   : > { %5449 = vrsqrt.f32 %v1909_v60 }
 0x395   : > { %v5446_v62 = vpop.eup %5445 }
 0x396   : > { %v1914_v0 = vmul.f32 %v5446_v62, %v1905_v61 }
 0x398   : > { %v1924_v3 = vmul.f32 %v4729_v63, %v1914_v0 }
 0x399   : > { %v5448_v4 = vpop.eup %5447 }
 0x39a   : > { %v1934_v5 = vadd.f32 %v4730_v1, %v1924_v3  ;;  %v1916_v7 = vmul.f32 %v5448_v4, %v1907_v2 }
 0x39b   : > { %v5450_v8 = vpop.eup %5449 }
 0x39c   : > { %vm1937_vm2 = vcmp.ge.f32.partialorder %v1934_v5, 0.0  ;;  %v1940_v9 = vmul.f32 0.2, %v1934_v5  ;;  %v1926_v10 = vmul.f32 %v4729_v63, %v1916_v7  ;;  %v1915_v11 = vmul.f32 %v5450_v8, %v1906_v6  ;;  %v5414_v6 = vld [vmem:[#allocation13 + $0x18] sm:$0xff]   ;;  %v5415_v7 = vld [vmem:[#allocation13 + $0x8] sm:$0xff]   ;;  %v5416_v8 = vld [vmem:[#allocation13 + $0x10] sm:$0xff]  }
 0x39d   : > { %5037 = vmatprep.subr.bf16.mxu1 %v5414_v6 }
 0x39e   : > { %v1943_v12 = vsel %vm1937_vm2, %v1934_v5, %v1940_v9  ;;  %v1936_v13 = vadd.f32 %v4730_v1, %v1926_v10  ;;  %v1925_v14 = vmul.f32 %v4729_v63, %v1915_v11  ;;  %v5417_v9 = vld [vmem:[#allocation13] sm:$0xff]   ;;  %v6492_v10 = vld [vmem:[#allocation13 + $0x28] sm:$0xff]  }
 0x39f   : > { %1946 = vst.msk [vmem:[#allocation2 + $0x8] sm:$0xff] %vm1399_vm0, %v1943_v12 }
 0x3a0   : > { %vm1939_vm3 = vcmp.ge.f32.partialorder %v1936_v13, 0.0  ;;  %v1942_v16 = vmul.f32 0.2, %v1936_v13  ;;  %v1935_v17 = vadd.f32 %v4730_v1, %v1925_v14 }
 0x3a2   : > { %v1945_v15 = vsel %vm1939_vm3, %v1936_v13, %v1942_v16  ;;  %vm1938_vm4 = vcmp.ge.f32.partialorder %v1935_v17, 0.0  ;;  %v1941_v18 = vmul.f32 0.2, %v1935_v17 }
 0x3a3   : > { %1948 = vst.msk [vmem:[#allocation2 + $0x18] sm:$0xff] %vm1399_vm0, %v1945_v15 }
 0x3a4   : > { %v1944_v19 = vsel %vm1938_vm4, %v1935_v17, %v1941_v18 }
 0x3a5   : > { %1947 = vst.msk [vmem:[#allocation2 + $0x10] sm:$0xff] %vm1399_vm0, %v1944_v19 }
 0x3a6   : > { %v1958_v20 = vld [vmem:[#allocation2 + $0x8] sm:$0xff] }
 0x3a7   : > { %v1949_v21 = vld [vmem:[#allocation2 + $0x7] sm:$0xff] }
 0x3aa   : > { %v1960_v22 = vld [vmem:[#allocation2 + $0x18] sm:$0xff] }
 0x3ab   : > { %v1962_v31 = vpack.c.bf16 %v1960_v22, %v1960_v22  ;;  %v2102_v34 = vld [vmem:[#allocation2 + $0x19] sm:$0xff] }
 0x3ac   : > { %v1959_v23 = vld [vmem:[#allocation2 + $0x10] sm:$0xff]  ;;  %v2104_v35 = vpack.c.bf16 %v2102_v34, %v2102_v34  ;;  %v4744_v34 = vld [vmem:[%s6791_s0] ss:$0 sm:$0xff]  ;;  %s6802_s0 = sld [smem:[#allocation52_spill]] }
 0x3ad   : > { %v1950_v24 = vld [vmem:[#allocation2 + $0xf] sm:$0xff]  ;;  %v1951_v25 = vld [vmem:[#allocation2 + $0x17] sm:$0xff]  ;;  %v1961_v26 = vpack.c.bf16 %v1959_v23, %v1958_v20 }
 0x3ae   : > { %v1952_v27 = vpack.c.bf16 %v1950_v24, %v1949_v21  ;;  %v1953_v28 = vpack.c.bf16 %v1951_v25, %v1951_v25  ;;  %v2100_v29 = vld [vmem:[#allocation2 + $0x9] sm:$0xff]  ;;  %v2101_v30 = vld [vmem:[#allocation2 + $0x11] sm:$0xff] }
 0x3af   : > { %5017 = vmatprep.mubr.msk.bf16.mxu0 %vm1399_vm0, %v1961_v26  ;;  %v2103_v33 = vpack.c.bf16 %v2101_v30, %v2100_v29 }
 0x3b0   : > { %5025 = vmatprep.mubr.msk.bf16.mxu1 %vm1399_vm0, %v1952_v27  ;;  %5018 = vmatmul.mubr.msk.bf16.vlgmr.msra.gmra.mxu0 %vm1399_vm0, %v1962_v31 }
 0x3b1   : > { %5026 = vmatmul.mubr.msk.bf16.vlgmr.msra.gmra.mxu1 %vm1399_vm0, %v1953_v28  ;;  %5030 = vmatpush3.bf16.msra.mxu0 %v6464_v36 }
 0x3b2   : > { %5033 = vmatprep.mubr.msk.bf16.mxu0 %vm1399_vm0, %v2103_v33  ;;  %5031 = vmatprep.subr.bf16.mxu0 %v5413_v32 }
 0x3b3   : > { %5038 = vmatpush3.bf16.msra.mxu1 %v5414_v6 }
 0x3b4   : > { %5039 = vmatprep.subr.bf16.mxu1 %v5416_v8 }
 0x3b5   : > { %5032 = vmatpush3.bf16.msra.mxu0 %v5413_v32 }
 0x3b6   : > { %5045 = vmatprep.subr.bf16.mxu0 %v5415_v7 }
 0x3b7   : > { %5040 = vmatpush3.bf16.msra.mxu1 %v5416_v8 }
 0x3b8   : > { %5034 = vmatmul.mubr.msk.bf16.vlgmr.msra.gmra.mxu0 %vm1399_vm0, %v2104_v35  ;;  %5053 = vmatprep.subr.bf16.mxu1 %v6492_v10 }
 0x3b9   : > { %5046 = vmatpush3.bf16.msra.mxu0 %v5415_v7  ;;  %v5419_v7 = vld [vmem:[#allocation13 + $0x20] sm:$0xff]  }
 0x3ba   : > { %5047 = vmatprep.subr.bf16.mxu0 %v5417_v9 }
 0x3bd   : > { %5048 = vmatpush3.bf16.msra.mxu0 %v5417_v9 }
 0x470   : > { %v5019_v37 = vpop.f32.mrf.mxu0 }
 0x471   : > { %v5027_v38 = vpop.f32.mrf.mxu1 }
 0x472   : > { %v2020_v39 = vpop.f32.mrf.mxu0  ;;  %v2095_v46 = vadd.f32 %v5027_v38, %v5019_v37  ;;  %v4745_v37 = vld [vmem:[%s6792_s7] ss:$0 sm:$0xff]  ;;  %s6803_s7 = sld [smem:[#allocation57_spill]] }
 0x473   : > { %v2086_v40 = vpop.f32.mrf.mxu1 }
 0x474   : > { %v5020_v42 = vpop.f32.mrf.mxu0  ;;  %v2087_v50 = vadd.f32 %v2086_v40, %v2020_v39 }
 0x475   : > { %v5028_v43 = vpop.f32.mrf.mxu1 }
 0x476   : > { %v2023_v44 = vpop.f32.mrf.mxu0 }
 0x477   : > { %v2089_v51 = vpop.f32.mrf.mxu1 }
 0x478   : > { %v5035_v47 = vpop.f32.mrf.mxu0  ;;  %v2090_v56 = vadd.f32 %v2089_v51, %v2023_v44 }
 0x479   : > { %v2178_v36 = vadd.f32 %v5035_v47, %v2095_v46 }
 0x47a   : > { %v2162_v52 = vpop.f32.mrf.mxu0 }
 0x47b   : > { %v6481_v53 = vadd.f32 %v4743_v49, %v2178_v36  ;;  %v2176_v54 = vadd.f32 %v2162_v52, %v2087_v50 }
 0x47c   : > { %v5036_v55 = vpop.f32.mrf.mxu0 }
 0x47d   : > { %v2186_v57 = vadd.f32 %v4743_v49, %v2176_v54  ;;  %v2195_v58 = vsel %vm1399_vm0, %v6481_v53, 0.0  ;;  %v2203_v4 = vmul.f32 %v6481_v53, %v6481_v53 }
 0x47e   : > { %v2165_v59 = vpop.f32.mrf.mxu0  ;;  %2196 = vadd.xlane.f32.xlu0 %v2195_v58 }
 0x47f   : > { %v2177_v60 = vadd.f32 %v2165_v59, %v2090_v56  ;;  %v2201_v61 = vmul.f32 %v2186_v57, %v2186_v57  ;;  %v2189_v0 = vsel %vm1399_vm0, %v2186_v57, 0.0  ;;  %v2210_v5 = vsel %vm1399_vm0, %v2203_v4, 0.0 }
 0x481   : > { %v2187_v62 = vadd.f32 %v4743_v49, %v2177_v60  ;;  %v2204_v63 = vsel %vm1399_vm0, %v2201_v61, 0.0 }
 0x482   : > { %2205 = vadd.xlane.f32.xlu1 %v2204_v63  ;;  %2190 = vadd.xlane.f32.xlu0 %v2189_v0 }
 0x483   : > { %v2202_v1 = vmul.f32 %v2187_v62, %v2187_v62  ;;  %v2192_v2 = vsel %vm1399_vm0, %v2187_v62, 0.0 }
 0x485   : > { %v2207_v3 = vsel %vm1399_vm0, %v2202_v1, 0.0 }
 0x486   : > { %2193 = vadd.xlane.f32.xlu1 %v2192_v2  ;;  %2208 = vadd.xlane.f32.xlu0 %v2207_v3 }
 0x48a   : > { %2211 = vadd.xlane.f32.xlu1 %v2210_v5 }
 0x507   : > { %v2197_v11 = vpop.xlane.xlu0 %2196 }
 0x508   : > { %v2200_v19 = vmul.f32 0.03125, %v2197_v11 }
 0x50a   : > { %v2218_v26 = vmul.f32 %v2200_v19, %v2200_v19  ;;  %v2224_v42 = vsub.f32 %v6481_v53, %v2200_v19 }
 0x50b   : > { %v2206_v12 = vpop.xlane.xlu1 %2205  ;;  %v2191_v13 = vpop.xlane.xlu0 %2190 }
 0x50c   : > { %v2198_v14 = vmul.f32 0.03125, %v2191_v13  ;;  %v2213_v16 = vmul.f32 0.03125, %v2206_v12 }
 0x50e   : > { %v2216_v17 = vmul.f32 %v2198_v14, %v2198_v14  ;;  %v2222_v32 = vsub.f32 %v2186_v57, %v2198_v14 }
 0x50f   : > { %v2194_v15 = vpop.xlane.xlu1 %2193  ;;  %v2209_v18 = vpop.xlane.xlu0 %2208 }
 0x510   : > { %v2219_v20 = vsub.f32 %v2213_v16, %v2216_v17  ;;  %v2199_v21 = vmul.f32 0.03125, %v2194_v15  ;;  %v2214_v24 = vmul.f32 0.03125, %v2209_v18 }
 0x512   : > { %v2225_v22 = vadd.f32 1e-05, %v2219_v20  ;;  %v2217_v23 = vmul.f32 %v2199_v21, %v2199_v21  ;;  %v2223_v39 = vsub.f32 %v2187_v62, %v2199_v21  ;;  %v4758_v20 = vld [vmem:[#allocation14] ss:$0 sm:$0xff] }
 0x513   : > { %v2212_v25 = vpop.xlane.xlu1 %2211 }
 0x514   : > { %5451 = vrsqrt.f32 %v2225_v22  ;;  %v2220_v27 = vsub.f32 %v2214_v24, %v2217_v23  ;;  %v2215_v28 = vmul.f32 0.03125, %v2212_v25 }
 0x516   : > { %v2226_v29 = vadd.f32 1e-05, %v2220_v27  ;;  %v2221_v30 = vsub.f32 %v2215_v28, %v2218_v26 }
 0x518   : > { %5453 = vrsqrt.f32 %v2226_v29  ;;  %v2227_v31 = vadd.f32 1e-05, %v2221_v30 }
 0x51a   : > { %5455 = vrsqrt.f32 %v2227_v31 }
 0x521   : > { %v5452_v33 = vpop.eup %5451 }
 0x522   : > { %v2231_v35 = vmul.f32 %v5452_v33, %v2222_v32 }
 0x524   : > { %v2241_v38 = vmul.f32 %v4744_v34, %v2231_v35 }
 0x525   : > { %v5454_v40 = vpop.eup %5453 }
 0x526   : > { %v2251_v43 = vadd.f32 %v4745_v37, %v2241_v38  ;;  %v2232_v44 = vmul.f32 %v5454_v40, %v2223_v39 }
 0x527   : > { %v5456_v46 = vpop.eup %5455 }
 0x528   : > { %vm2254_vm5 = vcmp.ge.f32.partialorder %v2251_v43, 0.0  ;;  %v2257_v47 = vmul.f32 0.2, %v2251_v43  ;;  %v2242_v49 = vmul.f32 %v4744_v34, %v2232_v44  ;;  %v2233_v50 = vmul.f32 %v5456_v46, %v2224_v42  ;;  %v5421_v44 = vld [vmem:[%s6793_s1 + $0x8] sm:$0xff]   ;;  %v5422_v46 = vld [vmem:[%s6793_s1 + $0x10] sm:$0xff]  }
 0x52a   : > { %v2260_v36 = vsel %vm2254_vm5, %v2251_v43, %v2257_v47  ;;  %v2252_v51 = vadd.f32 %v4745_v37, %v2242_v49  ;;  %v2243_v52 = vmul.f32 %v4744_v34, %v2233_v50  ;;  %v5420_v43 = vld [vmem:[%s6793_s1 + $0x18] sm:$0xff]   ;;  %v5423_v47 = vld [vmem:[%s6793_s1] sm:$0xff]   ;;  %v6536_v49 = vld [vmem:[%s6793_s1 + $0x28] sm:$0xff]  }
 0x52b   : > { %v6499_v54 = vadd.f32 %v2260_v36, %v6434_v45  ;;  %5061 = vmatprep.subr.bf16.mxu0 %v5420_v43 }
 0x52c   : > { %vm2255_vm6 = vcmp.ge.f32.partialorder %v2252_v51, 0.0  ;;  %v2258_v55 = vmul.f32 0.2, %v2252_v51  ;;  %v2253_v56 = vadd.f32 %v4745_v37, %v2243_v52 }
 0x52d   : > { %2266 = vst.msk [vmem:[#allocation2 + $0x8] sm:$0xff] %vm1399_vm0, %v6499_v54 }
 0x52e   : > { %v2261_v53 = vsel %vm2255_vm6, %v2252_v51, %v2258_v55  ;;  %vm2256_vm7 = vcmp.ge.f32.partialorder %v2253_v56, 0.0  ;;  %v2259_v57 = vmul.f32 0.2, %v2253_v56 }
 0x52f   : > { %v6504_v58 = vadd.f32 %v2261_v53, %v6438_v48 }
 0x530   : > { %v2262_v59 = vsel %vm2256_vm7, %v2253_v56, %v2259_v57 }
 0x531   : > { %2267 = vst.msk [vmem:[#allocation2 + $0x10] sm:$0xff] %vm1399_vm0, %v6504_v58  ;;  %v6509_v60 = vadd.f32 %v2262_v59, %v6430_v41 }
 0x533   : > { %2268 = vst.msk [vmem:[#allocation2 + $0x18] sm:$0xff] %vm1399_vm0, %v6509_v60 }
 0x534   : > { %v2278_v45 = vld [vmem:[#allocation2 + $0x8] sm:$0xff] }
 0x535   : > { %v2269_v62 = vld [vmem:[#allocation2 + $0x6] sm:$0xff] }
 0x538   : > { %v2279_v61 = vld [vmem:[#allocation2 + $0x10] sm:$0xff] }
 0x539   : > { %v2270_v63 = vld [vmem:[#allocation2 + $0xe] sm:$0xff]  ;;  %v2281_v0 = vpack.c.bf16 %v2279_v61, %v2278_v45 }
 0x53a   : > { %v2272_v1 = vpack.c.bf16 %v2270_v63, %v2269_v62  ;;  %v2420_v2 = vld [vmem:[#allocation2 + $0xa] sm:$0xff]  ;;  %v2280_v3 = vld [vmem:[#allocation2 + $0x18] sm:$0xff] }
 0x53b   : > { %v2271_v48 = vld [vmem:[#allocation2 + $0x16] sm:$0xff]  ;;  %5041 = vmatprep.mubr.msk.bf16.mxu1 %vm1399_vm0, %v2281_v0  ;;  %v2282_v5 = vpack.c.bf16 %v2280_v3, %v2280_v3 }
 0x53c   : > { %v2421_v4 = vld [vmem:[#allocation2 + $0x12] sm:$0xff]  ;;  %5049 = vmatprep.mubr.msk.bf16.mxu0 %vm1399_vm0, %v2272_v1  ;;  %v2273_v41 = vpack.c.bf16 %v2271_v48, %v2271_v48  ;;  %v2422_v8 = vld [vmem:[#allocation2 + $0x1a] sm:$0xff] }
 0x53d   : > { %v2423_v6 = vpack.c.bf16 %v2421_v4, %v2420_v2  ;;  %5042 = vmatmul.mubr.msk.bf16.vlgmr.msra.gmra.mxu1 %vm1399_vm0, %v2282_v5  ;;  %v2424_v9 = vpack.c.bf16 %v2422_v8, %v2422_v8  ;;  %v4759_v8 = vld [vmem:[%s6794_s2] ss:$0 sm:$0xff]  ;;  %s6804_s2 = sld [smem:[#allocation55_spill]] }
 0x53e   : > { %5050 = vmatmul.mubr.msk.bf16.vlgmr.msra.gmra.mxu0 %vm1399_vm0, %v2273_v41  ;;  %5054 = vmatpush3.bf16.msra.mxu1 %v6492_v10 }
 0x53f   : > { %5057 = vmatprep.mubr.msk.bf16.mxu1 %vm1399_vm0, %v2423_v6  ;;  %5055 = vmatprep.subr.bf16.mxu1 %v5419_v7 }
 0x540   : > { %5062 = vmatpush3.bf16.msra.mxu0 %v5420_v43 }
 0x541   : > { %5063 = vmatprep.subr.bf16.mxu0 %v5422_v46 }
 0x542   : > { %5056 = vmatpush3.bf16.msra.mxu1 %v5419_v7 }
 0x543   : > { %5069 = vmatprep.subr.bf16.mxu1 %v5421_v44 }
 0x544   : > { %5064 = vmatpush3.bf16.msra.mxu0 %v5422_v46 }
 0x545   : > { %5058 = vmatmul.mubr.msk.bf16.vlgmr.msra.gmra.mxu1 %vm1399_vm0, %v2424_v9  ;;  %5077 = vmatprep.subr.bf16.mxu0 %v6536_v49 }
 0x546   : > { %5070 = vmatpush3.bf16.msra.mxu1 %v5421_v44  ;;  %v5425_v44 = vld [vmem:[%s6793_s1 + $0x20] sm:$0xff]  }
 0x547   : > { %5071 = vmatprep.subr.bf16.mxu1 %v5423_v47 }
 0x54a   : > { %5072 = vmatpush3.bf16.msra.mxu1 %v5423_v47 }
 0x5fd   : > { %v5043_v11 = vpop.f32.mrf.mxu1 }
 0x5fe   : > { %v5051_v12 = vpop.f32.mrf.mxu0 }
 0x5ff   : > { %v2340_v13 = vpop.f32.mrf.mxu1  ;;  %v2415_v18 = vadd.f32 %v5051_v12, %v5043_v11  ;;  %v4760_v11 = vld [vmem:[%s6795_s15] ss:$0 sm:$0xff]  ;;  %s6805_s15 = sld [smem:[#allocation56_spill]] }
 0x600   : > { %v2406_v14 = vpop.f32.mrf.mxu0 }
 0x601   : > { %v5044_v16 = vpop.f32.mrf.mxu1  ;;  %v2407_v21 = vadd.f32 %v2406_v14, %v2340_v13 }
 0x602   : > { %v5052_v17 = vpop.f32.mrf.mxu0 }
 0x603   : > { %v2343_v15 = vpop.f32.mrf.mxu1 }
 0x604   : > { %v2409_v22 = vpop.f32.mrf.mxu0 }
 0x605   : > { %v5059_v19 = vpop.f32.mrf.mxu1  ;;  %v2410_v27 = vadd.f32 %v2409_v22, %v2343_v15 }
 0x606   : > { %v2498_v10 = vadd.f32 %v5059_v19, %v2415_v18 }
 0x607   : > { %v2482_v23 = vpop.f32.mrf.mxu1 }
 0x608   : > { %v6520_v24 = vadd.f32 %v4758_v20, %v2498_v10  ;;  %v2496_v25 = vadd.f32 %v2482_v23, %v2407_v21 }
 0x609   : > { %v5060_v26 = vpop.f32.mrf.mxu1 }
 0x60a   : > { %v2506_v28 = vadd.f32 %v4758_v20, %v2496_v25  ;;  %v2515_v29 = vsel %vm1399_vm0, %v6520_v24, 0.0  ;;  %v2523_v40 = vmul.f32 %v6520_v24, %v6520_v24 }
 0x60b   : > { %v2485_v30 = vpop.f32.mrf.mxu1  ;;  %2516 = vadd.xlane.f32.xlu0 %v2515_v29 }
 0x60c   : > { %v2497_v31 = vadd.f32 %v2485_v30, %v2410_v27  ;;  %v2521_v32 = vmul.f32 %v2506_v28, %v2506_v28  ;;  %v2509_v35 = vsel %vm1399_vm0, %v2506_v28, 0.0  ;;  %v2530_v42 = vsel %vm1399_vm0, %v2523_v40, 0.0 }
 0x60e   : > { %v2507_v33 = vadd.f32 %v4758_v20, %v2497_v31  ;;  %v2524_v34 = vsel %vm1399_vm0, %v2521_v32, 0.0 }
 0x60f   : > { %2525 = vadd.xlane.f32.xlu1 %v2524_v34  ;;  %2510 = vadd.xlane.f32.xlu0 %v2509_v35 }
 0x610   : > { %v2522_v37 = vmul.f32 %v2507_v33, %v2507_v33  ;;  %v2512_v38 = vsel %vm1399_vm0, %v2507_v33, 0.0 }
 0x612   : > { %v2527_v39 = vsel %vm1399_vm0, %v2522_v37, 0.0 }
 0x613   : > { %2513 = vadd.xlane.f32.xlu1 %v2512_v38  ;;  %2528 = vadd.xlane.f32.xlu0 %v2527_v39 }
 0x617   : > { %2531 = vadd.xlane.f32.xlu1 %v2530_v42 }
 0x694   : > { %v2517_v50 = vpop.xlane.xlu0 %2516 }
 0x695   : > { %v2520_v59 = vmul.f32 0.03125, %v2517_v50 }
 0x697   : > { %v2538_v2 = vmul.f32 %v2520_v59, %v2520_v59  ;;  %v2544_v16 = vsub.f32 %v6520_v24, %v2520_v59 }
 0x698   : > { %v2526_v36 = vpop.xlane.xlu1 %2525  ;;  %v2511_v51 = vpop.xlane.xlu0 %2510 }
 0x699   : > { %v2518_v52 = vmul.f32 0.03125, %v2511_v51  ;;  %v2533_v55 = vmul.f32 0.03125, %v2526_v36 }
 0x69b   : > { %v2536_v56 = vmul.f32 %v2518_v52, %v2518_v52  ;;  %v2542_v6 = vsub.f32 %v2506_v28, %v2518_v52 }
 0x69c   : > { %v2514_v53 = vpop.xlane.xlu1 %2513  ;;  %v2529_v57 = vpop.xlane.xlu0 %2528 }
 0x69d   : > { %v2539_v45 = vsub.f32 %v2533_v55, %v2536_v56  ;;  %v2519_v61 = vmul.f32 0.03125, %v2514_v53  ;;  %v2534_v0 = vmul.f32 0.03125, %v2529_v57 }
 0x69f   : > { %v2545_v62 = vadd.f32 1e-05, %v2539_v45  ;;  %v2537_v63 = vmul.f32 %v2519_v61, %v2519_v61  ;;  %v2543_v13 = vsub.f32 %v2507_v33, %v2519_v61  ;;  %v4781_v45 = vld [vmem:[#allocation16] ss:$0 sm:$0xff] }
 0x6a0   : > { %v2532_v1 = vpop.xlane.xlu1 %2531 }
 0x6a1   : > { %5457 = vrsqrt.f32 %v2545_v62  ;;  %v2540_v3 = vsub.f32 %v2534_v0, %v2537_v63  ;;  %v2535_v48 = vmul.f32 0.03125, %v2532_v1 }
 0x6a3   : > { %v2546_v4 = vadd.f32 1e-05, %v2540_v3  ;;  %v2541_v5 = vsub.f32 %v2535_v48, %v2538_v2 }
 0x6a5   : > { %5459 = vrsqrt.f32 %v2546_v4  ;;  %v2547_v41 = vadd.f32 1e-05, %v2541_v5 }
 0x6a7   : > { %5461 = vrsqrt.f32 %v2547_v41 }
 0x6ae   : > { %v5458_v7 = vpop.eup %5457 }
 0x6af   : > { %v2551_v9 = vmul.f32 %v5458_v7, %v2542_v6 }
 0x6b1   : > { %v2561_v12 = vmul.f32 %v4759_v8, %v2551_v9 }
 0x6b2   : > { %v5460_v14 = vpop.eup %5459 }
 0x6b3   : > { %v2571_v17 = vadd.f32 %v4760_v11, %v2561_v12  ;;  %v2552_v15 = vmul.f32 %v5460_v14, %v2543_v13 }
 0x6b4   : > { %v5462_v18 = vpop.eup %5461 }
 0x6b5   : > { %vm2574_vm8 = vcmp.ge.f32.partialorder %v2571_v17, 0.0  ;;  %v2577_v19 = vmul.f32 0.2, %v2571_v17  ;;  %v2562_v20 = vmul.f32 %v4759_v8, %v2552_v15  ;;  %v2553_v21 = vmul.f32 %v5462_v18, %v2544_v16  ;;  %v5427_v15 = vld [vmem:[%s6796_s8 + $0x8] sm:$0xff]   ;;  %v5428_v18 = vld [vmem:[%s6796_s8 + $0x10] sm:$0xff]  }
 0x6b7   : > { %v2580_v10 = vsel %vm2574_vm8, %v2571_v17, %v2577_v19  ;;  %v2572_v22 = vadd.f32 %v4760_v11, %v2562_v20  ;;  %v2563_v23 = vmul.f32 %v4759_v8, %v2553_v21  ;;  %v5426_v17 = vld [vmem:[%s6796_s8 + $0x18] sm:$0xff]   ;;  %v5429_v19 = vld [vmem:[%s6796_s8] sm:$0xff]   ;;  %v6569_v20 = vld [vmem:[%s6796_s8 + $0x28] sm:$0xff]  }
 0x6b8   : > { %2583 = vst.msk [vmem:[#allocation2 + $0x8] sm:$0xff] %vm1399_vm0, %v2580_v10  ;;  %5085 = vmatprep.subr.bf16.mxu1 %v5426_v17 }
 0x6b9   : > { %vm2575_vm9 = vcmp.ge.f32.partialorder %v2572_v22, 0.0  ;;  %v2578_v25 = vmul.f32 0.2, %v2572_v22  ;;  %v2573_v26 = vadd.f32 %v4760_v11, %v2563_v23 }
 0x6bb   : > { %v2581_v27 = vsel %vm2575_vm9, %v2572_v22, %v2578_v25  ;;  %vm2576_vm10 = vcmp.ge.f32.partialorder %v2573_v26, 0.0  ;;  %v2579_v28 = vmul.f32 0.2, %v2573_v26 }
 0x6bc   : > { %2584 = vst.msk [vmem:[#allocation2 + $0x10] sm:$0xff] %vm1399_vm0, %v2581_v27 }
 0x6bd   : > { %v2582_v24 = vsel %vm2576_vm10, %v2573_v26, %v2579_v28 }
 0x6be   : > { %2585 = vst.msk [vmem:[#allocation2 + $0x18] sm:$0xff] %vm1399_vm0, %v2582_v24 }
 0x6bf   : > { %v2595_v29 = vld [vmem:[#allocation2 + $0x8] sm:$0xff] }
 0x6c0   : > { %v2586_v31 = vld [vmem:[#allocation2 + $0x6] sm:$0xff] }
 0x6c3   : > { %v2596_v30 = vld [vmem:[#allocation2 + $0x10] sm:$0xff] }
 0x6c4   : > { %v2587_v32 = vld [vmem:[#allocation2 + $0xe] sm:$0xff]  ;;  %v2598_v33 = vpack.c.bf16 %v2596_v30, %v2595_v29 }
 0x6c5   : > { %v2589_v34 = vpack.c.bf16 %v2587_v32, %v2586_v31  ;;  %v2737_v35 = vld [vmem:[#allocation2 + $0xa] sm:$0xff]  ;;  %v2597_v37 = vld [vmem:[#allocation2 + $0x18] sm:$0xff] }
 0x6c6   : > { %v2588_v38 = vld [vmem:[#allocation2 + $0x16] sm:$0xff]  ;;  %5065 = vmatprep.mubr.msk.bf16.mxu0 %vm1399_vm0, %v2598_v33  ;;  %v2599_v40 = vpack.c.bf16 %v2597_v37, %v2597_v37 }
 0x6c7   : > { %v2738_v39 = vld [vmem:[#allocation2 + $0x12] sm:$0xff]  ;;  %5073 = vmatprep.mubr.msk.bf16.mxu1 %vm1399_vm0, %v2589_v34  ;;  %v2590_v42 = vpack.c.bf16 %v2588_v38, %v2588_v38  ;;  %v2739_v46 = vld [vmem:[#allocation2 + $0x1a] sm:$0xff] }
 0x6c8   : > { %v2740_v43 = vpack.c.bf16 %v2738_v39, %v2737_v35  ;;  %5066 = vmatmul.mubr.msk.bf16.vlgmr.msra.gmra.mxu0 %vm1399_vm0, %v2599_v40  ;;  %v2741_v47 = vpack.c.bf16 %v2739_v46, %v2739_v46  ;;  %v4782_v46 = vld [vmem:[%s6797_s23] ss:$0 sm:$0xff]  ;;  %s6806_s23 = sld [smem:[#allocation58_spill]] }
 0x6c9   : > { %5074 = vmatmul.mubr.msk.bf16.vlgmr.msra.gmra.mxu1 %vm1399_vm0, %v2590_v42  ;;  %5078 = vmatpush3.bf16.msra.mxu0 %v6536_v49 }
 0x6ca   : > { %5081 = vmatprep.mubr.msk.bf16.mxu0 %vm1399_vm0, %v2740_v43  ;;  %5079 = vmatprep.subr.bf16.mxu0 %v5425_v44 }
 0x6cb   : > { %5086 = vmatpush3.bf16.msra.mxu1 %v5426_v17 }
 0x6cc   : > { %5087 = vmatprep.subr.bf16.mxu1 %v5428_v18 }
 0x6cd   : > { %5080 = vmatpush3.bf16.msra.mxu0 %v5425_v44 }
 0x6ce   : > { %5093 = vmatprep.subr.bf16.mxu0 %v5427_v15 }
 0x6cf   : > { %5088 = vmatpush3.bf16.msra.mxu1 %v5428_v18 }
 0x6d0   : > { %5082 = vmatmul.mubr.msk.bf16.vlgmr.msra.gmra.mxu0 %vm1399_vm0, %v2741_v47  ;;  %5101 = vmatprep.subr.bf16.mxu1 %v6569_v20 }
 0x6d1   : > { %5094 = vmatpush3.bf16.msra.mxu0 %v5427_v15 }
 0x6d2   : > { %5095 = vmatprep.subr.bf16.mxu0 %v5429_v19 }
 0x6d5   : > { %5096 = vmatpush3.bf16.msra.mxu0 %v5429_v19 }
 0x788   : > { %v5067_v50 = vpop.f32.mrf.mxu0 }
 0x789   : > { %v5075_v36 = vpop.f32.mrf.mxu1 }
 0x78a   : > { %v2657_v51 = vpop.f32.mrf.mxu0  ;;  %v2732_v57 = vadd.f32 %v5075_v36, %v5067_v50  ;;  %v4783_v50 = vld [vmem:[%s6798_s28] ss:$0 sm:$0xff]  ;;  %s6807_s28 = sld [smem:[#allocation59_spill]] }
 0x78b   : > { %v2723_v52 = vpop.f32.mrf.mxu1 }
 0x78c   : > { %v5068_v55 = vpop.f32.mrf.mxu0  ;;  %v2724_v61 = vadd.f32 %v2723_v52, %v2657_v51 }
 0x78d   : > { %v5076_v56 = vpop.f32.mrf.mxu1 }
 0x78e   : > { %v2660_v53 = vpop.f32.mrf.mxu0 }
 0x78f   : > { %v2726_v62 = vpop.f32.mrf.mxu1 }
 0x790   : > { %v5083_v59 = vpop.f32.mrf.mxu0  ;;  %v2727_v3 = vadd.f32 %v2726_v62, %v2660_v53 }
 0x791   : > { %v2815_v49 = vadd.f32 %v5083_v59, %v2732_v57 }
 0x792   : > { %v2799_v63 = vpop.f32.mrf.mxu0 }
 0x793   : > { %v6553_v0 = vadd.f32 %v4781_v45, %v2815_v49  ;;  %v2813_v1 = vadd.f32 %v2799_v63, %v2724_v61 }
 0x794   : > { %v5084_v2 = vpop.f32.mrf.mxu0 }
 0x795   : > { %v2823_v48 = vadd.f32 %v4781_v45, %v2813_v1  ;;  %v2832_v4 = vsel %vm1399_vm0, %v6553_v0, 0.0  ;;  %v2840_v14 = vmul.f32 %v6553_v0, %v6553_v0 }
 0x796   : > { %v2802_v5 = vpop.f32.mrf.mxu0  ;;  %2833 = vadd.xlane.f32.xlu0 %v2832_v4 }
 0x797   : > { %v2814_v41 = vadd.f32 %v2802_v5, %v2727_v3  ;;  %v2838_v6 = vmul.f32 %v2823_v48, %v2823_v48  ;;  %v2826_v9 = vsel %vm1399_vm0, %v2823_v48, 0.0  ;;  %v2847_v16 = vsel %vm1399_vm0, %v2840_v14, 0.0 }
 0x799   : > { %v2824_v7 = vadd.f32 %v4781_v45, %v2814_v41  ;;  %v2841_v8 = vsel %vm1399_vm0, %v2838_v6, 0.0 }
 0x79a   : > { %2842 = vadd.xlane.f32.xlu1 %v2841_v8  ;;  %2827 = vadd.xlane.f32.xlu0 %v2826_v9 }
 0x79b   : > { %v2839_v11 = vmul.f32 %v2824_v7, %v2824_v7  ;;  %v2829_v12 = vsel %vm1399_vm0, %v2824_v7, 0.0 }
 0x79d   : > { %v2844_v13 = vsel %vm1399_vm0, %v2839_v11, 0.0 }
 0x79e   : > { %2830 = vadd.xlane.f32.xlu1 %v2829_v12  ;;  %2845 = vadd.xlane.f32.xlu0 %v2844_v13 }
 0x7a2   : > { %2848 = vadd.xlane.f32.xlu1 %v2847_v16 }
 0x81f   : > { %v2834_v21 = vpop.xlane.xlu0 %2833 }
 0x820   : > { %v2837_v24 = vmul.f32 0.03125, %v2834_v21 }
 0x822   : > { %v2855_v35 = vmul.f32 %v2837_v24, %v2837_v24  ;;  %v2861_v55 = vsub.f32 %v6553_v0, %v2837_v24  ;;  %v5434_v24 = vld [vmem:[#allocation19 + $0x10] sm:$0xff]  }
 0x823   : > { %v2843_v10 = vpop.xlane.xlu1 %2842  ;;  %v2828_v22 = vpop.xlane.xlu0 %2827 }
 0x824   : > { %v2835_v23 = vmul.f32 0.03125, %v2828_v22  ;;  %v2850_v25 = vmul.f32 0.03125, %v2843_v10 }
 0x826   : > { %v2853_v26 = vmul.f32 %v2835_v23, %v2835_v23  ;;  %v2859_v43 = vsub.f32 %v2823_v48, %v2835_v23  ;;  %v5431_v23 = vld [vmem:[%s6796_s8 + $0x20] sm:$0xff]  }
 0x827   : > { %v2831_v27 = vpop.xlane.xlu1 %2830  ;;  %v2846_v28 = vpop.xlane.xlu0 %2845 }
 0x828   : > { %v2856_v29 = vsub.f32 %v2850_v25, %v2853_v26  ;;  %v2836_v30 = vmul.f32 0.03125, %v2831_v27  ;;  %v2851_v33 = vmul.f32 0.03125, %v2846_v28  ;;  %v5432_v27 = vld [vmem:[#allocation19 + $0x8] sm:$0xff]   ;;  %v5433_v28 = vld [vmem:[#allocation19] sm:$0xff]  }
 0x829   : > { %5109 = vmatprep.subr.bf16.mxu0 %v5432_v27 }
 0x82a   : > { %v2862_v31 = vadd.f32 1e-05, %v2856_v29  ;;  %v2854_v32 = vmul.f32 %v2836_v30, %v2836_v30  ;;  %v2860_v51 = vsub.f32 %v2824_v7, %v2836_v30 }
 0x82b   : > { %v2849_v34 = vpop.xlane.xlu1 %2848 }
 0x82c   : > { %5463 = vrsqrt.f32 %v2862_v31  ;;  %v2857_v37 = vsub.f32 %v2851_v33, %v2854_v32  ;;  %v2852_v38 = vmul.f32 0.03125, %v2849_v34 }
 0x82e   : > { %v2863_v39 = vadd.f32 1e-05, %v2857_v37  ;;  %v2858_v40 = vsub.f32 %v2852_v38, %v2855_v35  ;;  %v4804_v38 = vld [vmem:[#allocation17] ss:$0 sm:$0xff] }
 0x830   : > { %5465 = vrsqrt.f32 %v2863_v39  ;;  %v2864_v42 = vadd.f32 1e-05, %v2858_v40 }
 0x832   : > { %5467 = vrsqrt.f32 %v2864_v42 }
 0x839   : > { %v5464_v44 = vpop.eup %5463 }
 0x83a   : > { %v2868_v47 = vmul.f32 %v5464_v44, %v2859_v43 }
 0x83c   : > { %v2878_v36 = vmul.f32 %v4782_v46, %v2868_v47 }
 0x83d   : > { %v5466_v52 = vpop.eup %5465 }
 0x83e   : > { %v2888_v56 = vadd.f32 %v4783_v50, %v2878_v36  ;;  %v2869_v53 = vmul.f32 %v5466_v52, %v2860_v51 }
 0x83f   : > { %v5468_v57 = vpop.eup %5467 }
 0x840   : > { %vm2891_vm11 = vcmp.ge.f32.partialorder %v2888_v56, 0.0  ;;  %v2894_v59 = vmul.f32 0.2, %v2888_v56  ;;  %v2879_v45 = vmul.f32 %v4782_v46, %v2869_v53  ;;  %v2870_v61 = vmul.f32 %v5468_v57, %v2861_v55 }
 0x842   : > { %v2897_v49 = vsel %vm2891_vm11, %v2888_v56, %v2894_v59  ;;  %v2889_v62 = vadd.f32 %v4783_v50, %v2879_v45  ;;  %v2880_v63 = vmul.f32 %v4782_v46, %v2870_v61 }
 0x843   : > { %v2900_v1 = vadd.f32 %v2897_v49, %v6499_v54 }
 0x844   : > { %vm2892_vm12 = vcmp.ge.f32.partialorder %v2889_v62, 0.0  ;;  %v2895_v2 = vmul.f32 0.2, %v2889_v62  ;;  %v2890_v3 = vadd.f32 %v4783_v50, %v2880_v63 }
 0x845   : > { %vm2903_vm13 = vcmp.ge.f32.partialorder %v2900_v1, 0.0  ;;  %v2906_v48 = vmul.f32 0.2, %v2900_v1 }
 0x846   : > { %v2898_v4 = vsel %vm2892_vm12, %v2889_v62, %v2895_v2  ;;  %vm2893_vm14 = vcmp.ge.f32.partialorder %v2890_v3, 0.0  ;;  %v2896_v0 = vmul.f32 0.2, %v2890_v3 }
 0x847   : > { %v2909_v5 = vsel %vm2903_vm13, %v2900_v1, %v2906_v48  ;;  %v2901_v41 = vadd.f32 %v2898_v4, %v6504_v58 }
 0x848   : > { %2912 = vst.msk [vmem:[#allocation2 + $0x8] sm:$0xff] %vm1399_vm0, %v2909_v5  ;;  %v2899_v6 = vsel %vm2893_vm14, %v2890_v3, %v2896_v0 }
 0x849   : > { %vm2904_vm15 = vcmp.ge.f32.partialorder %v2901_v41, 0.0  ;;  %v2907_v7 = vmul.f32 0.2, %v2901_v41  ;;  %v2902_v8 = vadd.f32 %v2899_v6, %v6509_v60 }
 0x84b   : > { %v2910_v9 = vsel %vm2904_vm15, %v2901_v41, %v2907_v7  ;;  %vm2905_vm2 = vcmp.ge.f32.partialorder %v2902_v8, 0.0  ;;  %v2908_v54 = vmul.f32 0.2, %v2902_v8 }
 0x84c   : > { %2913 = vst.msk [vmem:[#allocation2 + $0x10] sm:$0xff] %vm1399_vm0, %v2910_v9 }
 0x84d   : > { %v2911_v11 = vsel %vm2905_vm2, %v2902_v8, %v2908_v54 }
 0x84e   : > { %2914 = vst.msk [vmem:[#allocation2 + $0x18] sm:$0xff] %vm1399_vm0, %v2911_v11 }
 0x84f   : > { %v2924_v12 = vld [vmem:[#allocation2 + $0x8] sm:$0xff] }
 0x850   : > { %v2915_v14 = vld [vmem:[#allocation2 + $0x7] sm:$0xff] }
 0x853   : > { %v2925_v13 = vld [vmem:[#allocation2 + $0x10] sm:$0xff] }
 0x854   : > { %v2916_v58 = vld [vmem:[#allocation2 + $0xf] sm:$0xff]  ;;  %v2927_v16 = vpack.c.bf16 %v2925_v13, %v2924_v12 }
 0x855   : > { %v2918_v17 = vpack.c.bf16 %v2916_v58, %v2915_v14  ;;  %v3066_v15 = vld [vmem:[#allocation2 + $0x9] sm:$0xff]  ;;  %v2926_v18 = vld [vmem:[#allocation2 + $0x18] sm:$0xff]  ;;  %v4814_v13 = vld [vmem:[#allocation20] ss:$0 sm:$0xff] }
 0x856   : > { %v2917_v19 = vld [vmem:[#allocation2 + $0x17] sm:$0xff]  ;;  %5089 = vmatprep.mubr.msk.bf16.mxu1 %vm1399_vm0, %v2927_v16  ;;  %v2928_v60 = vpack.c.bf16 %v2926_v18, %v2926_v18 }
 0x857   : > { %v3067_v21 = vld [vmem:[#allocation2 + $0x11] sm:$0xff]  ;;  %5097 = vmatprep.mubr.msk.bf16.mxu0 %vm1399_vm0, %v2918_v17  ;;  %v2919_v10 = vpack.c.bf16 %v2917_v19, %v2917_v19  ;;  %v3068_v25 = vld [vmem:[#allocation2 + $0x19] sm:$0xff] }
 0x858   : > { %v3069_v22 = vpack.c.bf16 %v3067_v21, %v3066_v15  ;;  %5090 = vmatmul.mubr.msk.bf16.vlgmr.msra.gmra.mxu1 %vm1399_vm0, %v2928_v60  ;;  %v3070_v26 = vpack.c.bf16 %v3068_v25, %v3068_v25 }
 0x859   : > { %5098 = vmatmul.mubr.msk.bf16.vlgmr.msra.gmra.mxu0 %vm1399_vm0, %v2919_v10  ;;  %5102 = vmatpush3.bf16.msra.mxu1 %v6569_v20 }
 0x85a   : > { %5105 = vmatprep.mubr.msk.bf16.mxu1 %vm1399_vm0, %v3069_v22  ;;  %5103 = vmatprep.subr.bf16.mxu1 %v5431_v23 }
 0x85b   : > { %5110 = vmatpush3.bf16.msra.mxu0 %v5432_v27 }
 0x85c   : > { %5121 = vmatprep.subr.bf16.mxu0 %v5434_v24 }
 0x85d   : > { %5104 = vmatpush3.bf16.msra.mxu1 %v5431_v23 }
 0x85e   : > { %5115 = vmatprep.subr.bf16.mxu1 %v5433_v28 }
 0x860   : > { %5106 = vmatmul.mubr.msk.bf16.vlgmr.msra.gmra.mxu1 %vm1399_vm0, %v3070_v26 }
 0x861   : > { %5116 = vmatpush3.bf16.msra.mxu1 %v5433_v28 }
 0x918   : > { %v5091_v29 = vpop.f32.mrf.mxu1 }
 0x919   : > { %v5099_v30 = vpop.f32.mrf.mxu0 }
 0x91a   : > { %v2986_v31 = vpop.f32.mrf.mxu1  ;;  %v3061_v35 = vadd.f32 %v5099_v30, %v5091_v29 }
 0x91b   : > { %v3052_v20 = vpop.f32.mrf.mxu0 }
 0x91c   : > { %v5092_v32 = vpop.f32.mrf.mxu1  ;;  %v3053_v39 = vadd.f32 %v3052_v20, %v2986_v31 }
 0x91d   : > { %v5100_v33 = vpop.f32.mrf.mxu0  ;;  %v5435_v32 = vld [vmem:[#allocation22 + $0x8] sm:$0xff]  }
 0x91e   : > { %v2989_v34 = vpop.f32.mrf.mxu1  ;;  %v5436_v33 = vld [vmem:[#allocation22] sm:$0xff]   ;;  %5127 = vmatprep.subr.bf16.mxu1 %v5435_v32 }
 0x91f   : > { %v3055_v42 = vpop.f32.mrf.mxu0 }
 0x920   : > { %v5107_v37 = vpop.f32.mrf.mxu1  ;;  %v3056_v50 = vadd.f32 %v3055_v42, %v2989_v34  ;;  %v6618_v34 = vld [vmem:[#allocation22 + $0x10] sm:$0xff]  }
 0x921   : > { %v3144_v40 = vadd.f32 %v5107_v37, %v3061_v35 }
 0x922   : > { %v3128_v43 = vpop.f32.mrf.mxu1 }
 0x923   : > { %v6589_v44 = vadd.f32 %v4804_v38, %v3144_v40  ;;  %v3142_v46 = vadd.f32 %v3128_v43, %v3053_v39 }
 0x924   : > { %v5108_v47 = vpop.f32.mrf.mxu1 }
 0x925   : > { %3157 = vst.msk [vmem:[#allocation2 + $0x18] sm:$0xff] %vm1408_vm1, %v6589_v44  ;;  %v6593_v36 = vadd.f32 %v4804_v38, %v3142_v46 }
 0x926   : > { %v3131_v51 = vpop.f32.mrf.mxu1 }
 0x927   : > { %3155 = vst.msk [vmem:[#allocation2 + $0x8] sm:$0xff] %vm1408_vm1, %v6593_v36  ;;  %v3143_v52 = vadd.f32 %v3131_v51, %v3056_v50 }
 0x929   : > { %v6597_v55 = vadd.f32 %v4804_v38, %v3143_v52 }
 0x92b   : > { %3156 = vst.msk [vmem:[#allocation2 + $0x10] sm:$0xff] %vm1408_vm1, %v6597_v55 }
 0x92c   : > { %v3167_v57 = vld [vmem:[#allocation2 + $0x18] sm:$0xff] }
 0x92d   : > { %v3169_v3 = vpack.c.bf16 %v3167_v57, %v3167_v57  ;;  %v3295_v4 = vld [vmem:[#allocation2 + $0x19] sm:$0xff] }
 0x92e   : > { %v3165_v56 = vld [vmem:[#allocation2 + $0x8] sm:$0xff]  ;;  %v3297_v0 = vpack.c.bf16 %v3295_v4, %v3295_v4  ;;  %v4816_v4 = vld [vmem:[%s6800_s16] ss:$0 sm:$0xff] }
 0x92f   : > { %v3158_v53 = vld [vmem:[#allocation2 + $0x7] sm:$0xff] }
 0x932   : > { %v3166_v59 = vld [vmem:[#allocation2 + $0x10] sm:$0xff] }
 0x933   : > { %v3159_v45 = vld [vmem:[#allocation2 + $0xf] sm:$0xff]  ;;  %v3160_v61 = vld [vmem:[#allocation2 + $0x17] sm:$0xff]  ;;  %v3168_v49 = vpack.c.bf16 %v3166_v59, %v3165_v56 }
 0x934   : > { %v3161_v62 = vpack.c.bf16 %v3159_v45, %v3158_v53  ;;  %v3162_v63 = vpack.c.bf16 %v3160_v61, %v3160_v61  ;;  %v3293_v1 = vld [vmem:[#allocation2 + $0x9] sm:$0xff]  ;;  %v3294_v2 = vld [vmem:[#allocation2 + $0x11] sm:$0xff] }
 0x935   : > { %5111 = vmatprep.mubr.msk.bf16.mxu0 %vm1408_vm1, %v3168_v49  ;;  %v3296_v48 = vpack.c.bf16 %v3294_v2, %v3293_v1 }
 0x936   : > { %5117 = vmatprep.mubr.msk.bf16.mxu1 %vm1408_vm1, %v3161_v62  ;;  %5112 = vmatmul.mubr.msk.bf16.vlgmr.msra.gmra.mxu0 %vm1408_vm1, %v3169_v3  ;;  %v4815_v3 = vld [vmem:[%s6799_s18] ss:$0 sm:$0xff]  ;;  %s1397_s18 = scalar_lea.vmem %s6214_s6, %s5187_s11 }
 0x937   : > { %5118 = vmatmul.mubr.msk.bf16.vlgmr.msra.gmra.mxu1 %vm1408_vm1, %v3162_v63  ;;  %5122 = vmatpush3.bf16.msra.mxu0 %v5434_v24 }
 0x938   : > { %5123 = vmatprep.mubr.msk.bf16.mxu0 %vm1408_vm1, %v3296_v48  ;;  %5133 = vmatprep.subr.bf16.mxu0 %v5436_v33 }
 0x939   : > { %5128 = vmatpush3.bf16.msra.mxu1 %v5435_v32 }
 0x93a   : > { %5139 = vmatprep.subr.bf16.mxu1 %v6618_v34 }
 0x93e   : > { %5124 = vmatmul.mubr.msk.bf16.vlgmr.msra.gmra.mxu0 %vm1408_vm1, %v3297_v0 }
 0x93f   : > { %5134 = vmatpush3.bf16.msra.mxu0 %v5436_v33 }
 0x9f6   : > { %v5113_v5 = vpop.f32.mrf.mxu0 }
 0x9f7   : > { %v5119_v41 = vpop.f32.mrf.mxu1 }
 0x9f8   : > { %v3219_v6 = vpop.f32.mrf.mxu0  ;;  %v3288_v11 = vadd.f32 %v5119_v41, %v5113_v5 }
 0x9f9   : > { %v3279_v7 = vpop.f32.mrf.mxu1 }
 0x9fa   : > { %v5114_v8 = vpop.f32.mrf.mxu0  ;;  %v3280_v14 = vadd.f32 %v3279_v7, %v3219_v6 }
 0x9fb   : > { %v5120_v9 = vpop.f32.mrf.mxu1 }
 0x9fc   : > { %v3222_v54 = vpop.f32.mrf.mxu0 }
 0x9fd   : > { %v3282_v16 = vpop.f32.mrf.mxu1 }
 0x9fe   : > { %v5125_v12 = vpop.f32.mrf.mxu0  ;;  %v3283_v21 = vadd.f32 %v3282_v16, %v3222_v54 }
 0x9ff   : > { %v3363_v58 = vadd.f32 %v5125_v12, %v3288_v11 }
 0xa00   : > { %v3347_v17 = vpop.f32.mrf.mxu0 }
 0xa01   : > { %v6607_v15 = vadd.f32 %v4814_v13, %v3363_v58  ;;  %v3361_v18 = vadd.f32 %v3347_v17, %v3280_v14 }
 0xa02   : > { %v5126_v19 = vpop.f32.mrf.mxu0 }
 0xa03   : > { %v3371_v60 = vadd.f32 %v4814_v13, %v3361_v18  ;;  %v3380_v10 = vsel %vm1408_vm1, %v6607_v15, 0.0  ;;  %v3389_v31 = vmul.f32 %v6607_v15, %v6607_v15 }
 0xa04   : > { %v3350_v22 = vpop.f32.mrf.mxu0  ;;  %3381 = vadd.xlane.f32.xlu0 %v3380_v10 }
 0xa05   : > { %v3362_v23 = vadd.f32 %v3350_v22, %v3283_v21  ;;  %v3387_v25 = vmul.f32 %v3371_v60, %v3371_v60  ;;  %v3374_v28 = vsel %vm1408_vm1, %v3371_v60, 0.0  ;;  %v3396_v20 = vsel %vm1408_vm1, %v3389_v31, 0.0 }
 0xa07   : > { %v3372_v26 = vadd.f32 %v4814_v13, %v3362_v23  ;;  %v3390_v27 = vsel %vm1408_vm1, %v3387_v25, 0.0 }
 0xa08   : > { %3391 = vadd.xlane.f32.xlu1 %v3390_v27  ;;  %3375 = vadd.xlane.f32.xlu0 %v3374_v28 }
 0xa09   : > { %v3388_v24 = vmul.f32 %v3372_v26, %v3372_v26  ;;  %v3377_v29 = vsel %vm1408_vm1, %v3372_v26, 0.0 }
 0xa0b   : > { %v3393_v30 = vsel %vm1408_vm1, %v3388_v24, 0.0 }
 0xa0c   : > { %3378 = vadd.xlane.f32.xlu1 %v3377_v29  ;;  %3394 = vadd.xlane.f32.xlu0 %v3393_v30 }
 0xa10   : > { %3397 = vadd.xlane.f32.xlu1 %v3396_v20 }
 0xa8d   : > { %v3382_v35 = vpop.xlane.xlu0 %3381 }
 0xa8e   : > { %v3386_v47 = vmul.f32 0.0625, %v3382_v35 }
 0xa90   : > { %v3404_v59 = vmul.f32 %v3386_v47, %v3386_v47  ;;  %v3410_v6 = vsub.f32 %v6607_v15, %v3386_v47  ;;  %v4826_v47 = vld [vmem:[#allocation23] ss:$0 sm:$0xff] }
 0xa91   : > { %v3392_v37 = vpop.xlane.xlu1 %3391  ;;  %v3376_v38 = vpop.xlane.xlu0 %3375 }
 0xa92   : > { %v3384_v39 = vmul.f32 0.0625, %v3376_v38  ;;  %v3399_v40 = vmul.f32 0.0625, %v3392_v37 }
 0xa94   : > { %v3402_v42 = vmul.f32 %v3384_v39, %v3384_v39  ;;  %v3408_v1 = vsub.f32 %v3371_v60, %v3384_v39 }
 0xa95   : > { %v3379_v43 = vpop.xlane.xlu1 %3378  ;;  %v3395_v46 = vpop.xlane.xlu0 %3394 }
 0xa96   : > { %v3405_v50 = vsub.f32 %v3399_v40, %v3402_v42  ;;  %v3385_v51 = vmul.f32 0.0625, %v3379_v43  ;;  %v3400_v53 = vmul.f32 0.0625, %v3395_v46 }
 0xa98   : > { %v3411_v52 = vadd.f32 1e-05, %v3405_v50  ;;  %v3403_v56 = vmul.f32 %v3385_v51, %v3385_v51  ;;  %v3409_v5 = vsub.f32 %v3372_v26, %v3385_v51 }
 0xa99   : > { %v3398_v57 = vpop.xlane.xlu1 %3397 }
 0xa9a   : > { %5469 = vrsqrt.f32 %v3411_v52  ;;  %v3406_v45 = vsub.f32 %v3400_v53, %v3403_v56  ;;  %v3401_v61 = vmul.f32 0.0625, %v3398_v57 }
 0xa9c   : > { %v3412_v49 = vadd.f32 1e-05, %v3406_v45  ;;  %v3407_v62 = vsub.f32 %v3401_v61, %v3404_v59 }
 0xa9e   : > { %5471 = vrsqrt.f32 %v3412_v49  ;;  %v3413_v63 = vadd.f32 1e-05, %v3407_v62 }
 0xaa0   : > { %5473 = vrsqrt.f32 %v3413_v63 }
 0xaa7   : > { %v5470_v2 = vpop.eup %5469 }
 0xaa8   : > { %v3417_v48 = vmul.f32 %v5470_v2, %v3408_v1 }
 0xaaa   : > { %v3427_v0 = vmul.f32 %v4815_v3, %v3417_v48 }
 0xaab   : > { %v5472_v41 = vpop.eup %5471 }
 0xaac   : > { %v3437_v7 = vadd.f32 %v4816_v4, %v3427_v0  ;;  %v3418_v8 = vmul.f32 %v5472_v41, %v3409_v5 }
 0xaad   : > { %v5474_v9 = vpop.eup %5473 }
 0xaae   : > { %vm3440_vm0 = vcmp.ge.f32.partialorder %v3437_v7, 0.0  ;;  %v3443_v54 = vmul.f32 0.2, %v3437_v7  ;;  %v3428_v11 = vmul.f32 %v4815_v3, %v3418_v8  ;;  %v3419_v12 = vmul.f32 %v5474_v9, %v3410_v6  ;;  %v5438_v6 = vld [vmem:[#allocation25 + $0x8] sm:$0xff]   ;;  %v6645_v8 = vld [vmem:[#allocation25 + $0x10] sm:$0xff]  }
 0xaaf   : > { %5145 = vmatprep.subr.bf16.mxu0 %v5438_v6 }
 0xab0   : > { %v3446_v13 = vsel %vm3440_vm0, %v3437_v7, %v3443_v54  ;;  %v3438_v14 = vadd.f32 %v4816_v4, %v3428_v11  ;;  %v3429_v58 = vmul.f32 %v4815_v3, %v3419_v12  ;;  %v5439_v7 = vld [vmem:[#allocation25] sm:$0xff]   ;;  %vm4414_vm0 = vcmask 64512  }
 0xab1   : > { %3449 = vst.msk [vmem:[#allocation2 + $0x8] sm:$0xff] %vm1408_vm1, %v3446_v13 }
 0xab2   : > { %vm3441_vm3 = vcmp.ge.f32.partialorder %v3438_v14, 0.0  ;;  %v3444_v16 = vmul.f32 0.2, %v3438_v14  ;;  %v3439_v17 = vadd.f32 %v4816_v4, %v3429_v58 }
 0xab4   : > { %v3447_v18 = vsel %vm3441_vm3, %v3438_v14, %v3444_v16  ;;  %vm3442_vm4 = vcmp.ge.f32.partialorder %v3439_v17, 0.0  ;;  %v3445_v19 = vmul.f32 0.2, %v3439_v17 }
 0xab5   : > { %3450 = vst.msk [vmem:[#allocation2 + $0x10] sm:$0xff] %vm1408_vm1, %v3447_v18 }
 0xab6   : > { %v3448_v15 = vsel %vm3442_vm4, %v3439_v17, %v3445_v19 }
 0xab7   : > { %3451 = vst.msk [vmem:[#allocation2 + $0x18] sm:$0xff] %vm1408_vm1, %v3448_v15 }
 0xab8   : > { %v3459_v21 = vld [vmem:[#allocation2 + $0x8] sm:$0xff] }
 0xab9   : > { %v3452_v10 = vld [vmem:[#allocation2 + $0x7] sm:$0xff] }
 0xabc   : > { %v3460_v60 = vld [vmem:[#allocation2 + $0x10] sm:$0xff] }
 0xabd   : > { %v3453_v22 = vld [vmem:[#allocation2 + $0xf] sm:$0xff]  ;;  %v3462_v23 = vpack.c.bf16 %v3460_v60, %v3459_v21 }
 0xabe   : > { %v3455_v25 = vpack.c.bf16 %v3453_v22, %v3452_v10  ;;  %v3587_v26 = vld [vmem:[#allocation2 + $0x9] sm:$0xff]  ;;  %v3461_v27 = vld [vmem:[#allocation2 + $0x18] sm:$0xff] }
 0xabf   : > { %v3454_v28 = vld [vmem:[#allocation2 + $0x17] sm:$0xff]  ;;  %5129 = vmatprep.mubr.msk.bf16.mxu1 %vm1408_vm1, %v3462_v23  ;;  %v3463_v29 = vpack.c.bf16 %v3461_v27, %v3461_v27 }
 0xac0   : > { %v3588_v24 = vld [vmem:[#allocation2 + $0x11] sm:$0xff]  ;;  %5135 = vmatprep.mubr.msk.bf16.mxu0 %vm1408_vm1, %v3455_v25  ;;  %v3456_v30 = vpack.c.bf16 %v3454_v28, %v3454_v28  ;;  %v3589_v20 = vld [vmem:[#allocation2 + $0x19] sm:$0xff] }
 0xac1   : > { %v3590_v31 = vpack.c.bf16 %v3588_v24, %v3587_v26  ;;  %5130 = vmatmul.mubr.msk.bf16.vlgmr.msra.gmra.mxu1 %vm1408_vm1, %v3463_v29  ;;  %v3591_v32 = vpack.c.bf16 %v3589_v20, %v3589_v20  ;;  %v4828_v20 = vld [vmem:[%s6802_s0] ss:$0 sm:$0xff] }
 0xac2   : > { %5136 = vmatmul.mubr.msk.bf16.vlgmr.msra.gmra.mxu0 %vm1408_vm1, %v3456_v30  ;;  %5140 = vmatpush3.bf16.msra.mxu1 %v6618_v34  ;;  %v4827_v30 = vld [vmem:[%s6801_s10] ss:$0 sm:$0xff] }
 0xac3   : > { %5141 = vmatprep.mubr.msk.bf16.mxu1 %vm1408_vm1, %v3590_v31  ;;  %5151 = vmatprep.subr.bf16.mxu1 %v5439_v7 }
 0xac4   : > { %5146 = vmatpush3.bf16.msra.mxu0 %v5438_v6 }
 0xac5   : > { %5157 = vmatprep.subr.bf16.mxu0 %v6645_v8 }
 0xac9   : > { %5142 = vmatmul.mubr.msk.bf16.vlgmr.msra.gmra.mxu1 %vm1408_vm1, %v3591_v32 }
 0xaca   : > { %5152 = vmatpush3.bf16.msra.mxu1 %v5439_v7 }
 0xb81   : > { %v5131_v33 = vpop.f32.mrf.mxu1 }
 0xb82   : > { %v5137_v35 = vpop.f32.mrf.mxu0 }
 0xb83   : > { %v3513_v37 = vpop.f32.mrf.mxu1  ;;  %v3582_v43 = vadd.f32 %v5137_v35, %v5131_v33 }
 0xb84   : > { %v3573_v38 = vpop.f32.mrf.mxu0 }
 0xb85   : > { %v5132_v39 = vpop.f32.mrf.mxu1  ;;  %v3574_v50 = vadd.f32 %v3573_v38, %v3513_v37 }
 0xb86   : > { %v5138_v40 = vpop.f32.mrf.mxu0 }
 0xb87   : > { %v3516_v42 = vpop.f32.mrf.mxu1 }
 0xb88   : > { %v3576_v52 = vpop.f32.mrf.mxu0 }
 0xb89   : > { %v5143_v46 = vpop.f32.mrf.mxu1  ;;  %v3577_v59 = vadd.f32 %v3576_v52, %v3516_v42 }
 0xb8a   : > { %v3657_v51 = vadd.f32 %v5143_v46, %v3582_v43 }
 0xb8b   : > { %v3641_v34 = vpop.f32.mrf.mxu1 }
 0xb8c   : > { %v6634_v56 = vadd.f32 %v4826_v47, %v3657_v51  ;;  %v3655_v53 = vadd.f32 %v3641_v34, %v3574_v50 }
 0xb8d   : > { %v5144_v57 = vpop.f32.mrf.mxu1 }
 0xb8e   : > { %v3665_v45 = vadd.f32 %v4826_v47, %v3655_v53  ;;  %v3674_v61 = vsel %vm1408_vm1, %v6634_v56, 0.0  ;;  %v3682_v5 = vmul.f32 %v6634_v56, %v6634_v56 }
 0xb8f   : > { %v3644_v49 = vpop.f32.mrf.mxu1  ;;  %3675 = vadd.xlane.f32.xlu0 %v3674_v61 }
 0xb90   : > { %v3656_v62 = vadd.f32 %v3644_v49, %v3577_v59  ;;  %v3680_v63 = vmul.f32 %v3665_v45, %v3665_v45  ;;  %v3668_v3 = vsel %vm1408_vm1, %v3665_v45, 0.0  ;;  %v3689_v41 = vsel %vm1408_vm1, %v3682_v5, 0.0 }
 0xb92   : > { %v3666_v1 = vadd.f32 %v4826_v47, %v3656_v62  ;;  %v3683_v2 = vsel %vm1408_vm1, %v3680_v63, 0.0 }
 0xb93   : > { %3684 = vadd.xlane.f32.xlu1 %v3683_v2  ;;  %3669 = vadd.xlane.f32.xlu0 %v3668_v3 }
 0xb94   : > { %v3681_v48 = vmul.f32 %v3666_v1, %v3666_v1  ;;  %v3671_v4 = vsel %vm1408_vm1, %v3666_v1, 0.0 }
 0xb96   : > { %v3686_v0 = vsel %vm1408_vm1, %v3681_v48, 0.0 }
 0xb97   : > { %3672 = vadd.xlane.f32.xlu1 %v3671_v4  ;;  %3687 = vadd.xlane.f32.xlu0 %v3686_v0 }
 0xb9b   : > { %3690 = vadd.xlane.f32.xlu1 %v3689_v41 }
 0xc18   : > { %v3676_v9 = vpop.xlane.xlu0 %3675 }
 0xc19   : > { %v3679_v17 = vmul.f32 0.0625, %v3676_v9 }
 0xc1b   : > { %v3697_v22 = vmul.f32 %v3679_v17, %v3679_v17  ;;  %v3703_v37 = vsub.f32 %v6634_v56, %v3679_v17  ;;  %v4838_v17 = vld [vmem:[#allocation26] ss:$0 sm:$0xff] }
 0xc1c   : > { %v3685_v54 = vpop.xlane.xlu1 %3684  ;;  %v3670_v11 = vpop.xlane.xlu0 %3669 }
 0xc1d   : > { %v3677_v12 = vmul.f32 0.0625, %v3670_v11  ;;  %v3692_v13 = vmul.f32 0.0625, %v3685_v54 }
 0xc1f   : > { %v3695_v14 = vmul.f32 %v3677_v12, %v3677_v12  ;;  %v3701_v24 = vsub.f32 %v3665_v45, %v3677_v12 }
 0xc20   : > { %v3673_v58 = vpop.xlane.xlu1 %3672  ;;  %v3688_v16 = vpop.xlane.xlu0 %3687 }
 0xc21   : > { %v3698_v18 = vsub.f32 %v3692_v13, %v3695_v14  ;;  %v3678_v19 = vmul.f32 0.0625, %v3673_v58  ;;  %v3693_v60 = vmul.f32 0.0625, %v3688_v16 }
 0xc23   : > { %v3704_v15 = vadd.f32 1e-05, %v3698_v18  ;;  %v3696_v21 = vmul.f32 %v3678_v19, %v3678_v19  ;;  %v3702_v33 = vsub.f32 %v3666_v1, %v3678_v19 }
 0xc24   : > { %v3691_v10 = vpop.xlane.xlu1 %3690 }
 0xc25   : > { %5475 = vrsqrt.f32 %v3704_v15  ;;  %v3699_v23 = vsub.f32 %v3693_v60, %v3696_v21  ;;  %v3694_v25 = vmul.f32 0.0625, %v3691_v10 }
 0xc27   : > { %v3705_v26 = vadd.f32 1e-05, %v3699_v23  ;;  %v3700_v27 = vsub.f32 %v3694_v25, %v3697_v22 }
 0xc29   : > { %5477 = vrsqrt.f32 %v3705_v26  ;;  %v3706_v28 = vadd.f32 1e-05, %v3700_v27 }
 0xc2b   : > { %5479 = vrsqrt.f32 %v3706_v28 }
 0xc32   : > { %v5476_v29 = vpop.eup %5475 }
 0xc33   : > { %v3710_v31 = vmul.f32 %v5476_v29, %v3701_v24 }
 0xc35   : > { %v3720_v32 = vmul.f32 %v4827_v30, %v3710_v31 }
 0xc36   : > { %v5478_v35 = vpop.eup %5477 }
 0xc37   : > { %v3730_v38 = vadd.f32 %v4828_v20, %v3720_v32  ;;  %v3711_v39 = vmul.f32 %v5478_v35, %v3702_v33 }
 0xc38   : > { %v5480_v40 = vpop.eup %5479 }
 0xc39   : > { %vm3733_vm5 = vcmp.ge.f32.partialorder %v3730_v38, 0.0  ;;  %v3736_v42 = vmul.f32 0.2, %v3730_v38  ;;  %v3721_v43 = vmul.f32 %v4827_v30, %v3711_v39  ;;  %v3712_v46 = vmul.f32 %v5480_v40, %v3703_v37  ;;  %v5441_v37 = vld [vmem:[%s6803_s7 + $0x8] sm:$0xff]   ;;  %v6687_v39 = vld [vmem:[%s6803_s7 + $0x10] sm:$0xff]  }
 0xc3a   : > { %5163 = vmatprep.subr.bf16.mxu1 %v5441_v37 }
 0xc3b   : > { %v3739_v47 = vsel %vm3733_vm5, %v3730_v38, %v3736_v42  ;;  %v3731_v50 = vadd.f32 %v4828_v20, %v3721_v43  ;;  %v3722_v51 = vmul.f32 %v4827_v30, %v3712_v46  ;;  %v5442_v38 = vld [vmem:[%s6803_s7] sm:$0xff]  }
 0xc3c   : > { %v6652_v52 = vadd.f32 %v3739_v47, %v6593_v36 }
 0xc3d   : > { %vm3734_vm6 = vcmp.ge.f32.partialorder %v3731_v50, 0.0  ;;  %v3737_v34 = vmul.f32 0.2, %v3731_v50  ;;  %v3732_v53 = vadd.f32 %v4828_v20, %v3722_v51 }
 0xc3e   : > { %3745 = vst.msk [vmem:[#allocation2 + $0x8] sm:$0xff] %vm1408_vm1, %v6652_v52 }
 0xc3f   : > { %v3740_v56 = vsel %vm3734_vm6, %v3731_v50, %v3737_v34  ;;  %vm3735_vm7 = vcmp.ge.f32.partialorder %v3732_v53, 0.0  ;;  %v3738_v57 = vmul.f32 0.2, %v3732_v53 }
 0xc40   : > { %v6657_v59 = vadd.f32 %v3740_v56, %v6597_v55 }
 0xc41   : > { %v3741_v45 = vsel %vm3735_vm7, %v3732_v53, %v3738_v57 }
 0xc42   : > { %3746 = vst.msk [vmem:[#allocation2 + $0x10] sm:$0xff] %vm1408_vm1, %v6657_v59  ;;  %v6662_v61 = vadd.f32 %v3741_v45, %v6589_v44 }
 0xc44   : > { %3747 = vst.msk [vmem:[#allocation2 + $0x18] sm:$0xff] %vm1408_vm1, %v6662_v61 }
 0xc45   : > { %v3755_v36 = vld [vmem:[#allocation2 + $0x8] sm:$0xff] }
 0xc46   : > { %v3748_v62 = vld [vmem:[#allocation2 + $0x6] sm:$0xff] }
 0xc49   : > { %v3756_v49 = vld [vmem:[#allocation2 + $0x10] sm:$0xff] }
 0xc4a   : > { %v3749_v63 = vld [vmem:[#allocation2 + $0xe] sm:$0xff]  ;;  %v3758_v1 = vpack.c.bf16 %v3756_v49, %v3755_v36 }
 0xc4b   : > { %v3751_v2 = vpack.c.bf16 %v3749_v63, %v3748_v62  ;;  %v3883_v3 = vld [vmem:[#allocation2 + $0xa] sm:$0xff]  ;;  %v3757_v48 = vld [vmem:[#allocation2 + $0x18] sm:$0xff] }
 0xc4c   : > { %v3750_v55 = vld [vmem:[#allocation2 + $0x16] sm:$0xff]  ;;  %5147 = vmatprep.mubr.msk.bf16.mxu0 %vm1408_vm1, %v3758_v1  ;;  %v3759_v0 = vpack.c.bf16 %v3757_v48, %v3757_v48 }
 0xc4d   : > { %v3884_v4 = vld [vmem:[#allocation2 + $0x12] sm:$0xff]  ;;  %5153 = vmatprep.mubr.msk.bf16.mxu1 %vm1408_vm1, %v3751_v2  ;;  %v3752_v44 = vpack.c.bf16 %v3750_v55, %v3750_v55  ;;  %v3885_v41 = vld [vmem:[#allocation2 + $0x1a] sm:$0xff] }
 0xc4e   : > { %v3886_v5 = vpack.c.bf16 %v3884_v4, %v3883_v3  ;;  %5148 = vmatmul.mubr.msk.bf16.vlgmr.msra.gmra.mxu0 %vm1408_vm1, %v3759_v0  ;;  %v3887_v6 = vpack.c.bf16 %v3885_v41, %v3885_v41  ;;  %v4840_v41 = vld [vmem:[%s6805_s15] ss:$0 sm:$0xff] }
 0xc4f   : > { %5154 = vmatmul.mubr.msk.bf16.vlgmr.msra.gmra.mxu1 %vm1408_vm1, %v3752_v44  ;;  %5158 = vmatpush3.bf16.msra.mxu0 %v6645_v8  ;;  %v4839_v44 = vld [vmem:[%s6804_s2] ss:$0 sm:$0xff] }
 0xc50   : > { %5159 = vmatprep.mubr.msk.bf16.mxu0 %vm1408_vm1, %v3886_v5  ;;  %5169 = vmatprep.subr.bf16.mxu0 %v5442_v38 }
 0xc51   : > { %5164 = vmatpush3.bf16.msra.mxu1 %v5441_v37 }
 0xc52   : > { %5175 = vmatprep.subr.bf16.mxu1 %v6687_v39 }
 0xc56   : > { %5160 = vmatmul.mubr.msk.bf16.vlgmr.msra.gmra.mxu0 %vm1408_vm1, %v3887_v6 }
 0xc57   : > { %5170 = vmatpush3.bf16.msra.mxu0 %v5442_v38 }
 0xd0e   : > { %v5149_v7 = vpop.f32.mrf.mxu0 }
 0xd0f   : > { %v5155_v9 = vpop.f32.mrf.mxu1 }
 0xd10   : > { %v3809_v54 = vpop.f32.mrf.mxu0  ;;  %v3878_v58 = vadd.f32 %v5155_v9, %v5149_v7 }
 0xd11   : > { %v3869_v11 = vpop.f32.mrf.mxu1 }
 0xd12   : > { %v5150_v12 = vpop.f32.mrf.mxu0  ;;  %v3870_v18 = vadd.f32 %v3869_v11, %v3809_v54 }
 0xd13   : > { %v5156_v13 = vpop.f32.mrf.mxu1 }
 0xd14   : > { %v3812_v14 = vpop.f32.mrf.mxu0 }
 0xd15   : > { %v3872_v15 = vpop.f32.mrf.mxu1 }
 0xd16   : > { %v5161_v16 = vpop.f32.mrf.mxu0  ;;  %v3873_v22 = vadd.f32 %v3872_v15, %v3812_v14 }
 0xd17   : > { %v3953_v19 = vadd.f32 %v5161_v16, %v3878_v58 }
 0xd18   : > { %v3937_v8 = vpop.f32.mrf.mxu0 }
 0xd19   : > { %v6673_v21 = vadd.f32 %v4838_v17, %v3953_v19  ;;  %v3951_v60 = vadd.f32 %v3937_v8, %v3870_v18 }
 0xd1a   : > { %v5162_v10 = vpop.f32.mrf.mxu0 }
 0xd1b   : > { %v3961_v23 = vadd.f32 %v4838_v17, %v3951_v60  ;;  %v3970_v25 = vsel %vm1408_vm1, %v6673_v21, 0.0  ;;  %v3978_v33 = vmul.f32 %v6673_v21, %v6673_v21 }
 0xd1c   : > { %v3940_v26 = vpop.f32.mrf.mxu0  ;;  %3971 = vadd.xlane.f32.xlu0 %v3970_v25 }
 0xd1d   : > { %v3952_v27 = vadd.f32 %v3940_v26, %v3873_v22  ;;  %v3976_v28 = vmul.f32 %v3961_v23, %v3961_v23  ;;  %v3964_v30 = vsel %vm1408_vm1, %v3961_v23, 0.0  ;;  %v3985_v35 = vsel %vm1408_vm1, %v3978_v33, 0.0 }
 0xd1f   : > { %v3962_v24 = vadd.f32 %v4838_v17, %v3952_v27  ;;  %v3979_v29 = vsel %vm1408_vm1, %v3976_v28, 0.0 }
 0xd20   : > { %3980 = vadd.xlane.f32.xlu1 %v3979_v29  ;;  %3965 = vadd.xlane.f32.xlu0 %v3964_v30 }
 0xd21   : > { %v3977_v31 = vmul.f32 %v3962_v24, %v3962_v24  ;;  %v3967_v20 = vsel %vm1408_vm1, %v3962_v24, 0.0 }
 0xd23   : > { %v3982_v32 = vsel %vm1408_vm1, %v3977_v31, 0.0 }
 0xd24   : > { %3968 = vadd.xlane.f32.xlu1 %v3967_v20  ;;  %3983 = vadd.xlane.f32.xlu0 %v3982_v32 }
 0xd28   : > { %3986 = vadd.xlane.f32.xlu1 %v3985_v35 }
 0xda5   : > { %v3972_v40 = vpop.xlane.xlu0 %3971 }
 0xda6   : > { %v3975_v53 = vmul.f32 0.0625, %v3972_v40 }
 0xda8   : > { %v3993_v63 = vmul.f32 %v3975_v53, %v3975_v53  ;;  %v3999_v54 = vsub.f32 %v6673_v21, %v3975_v53  ;;  %v4854_v53 = vld [vmem:[%s6806_s23] ss:$0 sm:$0xff] }
 0xda9   : > { %v3981_v42 = vpop.xlane.xlu1 %3980  ;;  %v3966_v43 = vpop.xlane.xlu0 %3965 }
 0xdaa   : > { %v3973_v46 = vmul.f32 0.0625, %v3966_v43  ;;  %v3988_v47 = vmul.f32 0.0625, %v3981_v42 }
 0xdac   : > { %v3991_v50 = vmul.f32 %v3973_v46, %v3973_v46  ;;  %v3997_v4 = vsub.f32 %v3961_v23, %v3973_v46 }
 0xdad   : > { %v3969_v51 = vpop.xlane.xlu1 %3968  ;;  %v3984_v34 = vpop.xlane.xlu0 %3983 }
 0xdae   : > { %v3994_v56 = vsub.f32 %v3988_v47, %v3991_v50  ;;  %v3974_v57 = vmul.f32 0.0625, %v3969_v51  ;;  %v3989_v49 = vmul.f32 0.0625, %v3984_v34 }
 0xdb0   : > { %v4000_v45 = vadd.f32 1e-05, %v3994_v56  ;;  %v3992_v36 = vmul.f32 %v3974_v57, %v3974_v57  ;;  %v3998_v7 = vsub.f32 %v3962_v24, %v3974_v57 }
 0xdb1   : > { %v3987_v62 = vpop.xlane.xlu1 %3986 }
 0xdb2   : > { %5481 = vrsqrt.f32 %v4000_v45  ;;  %v3995_v1 = vsub.f32 %v3989_v49, %v3992_v36  ;;  %v3990_v2 = vmul.f32 0.0625, %v3987_v62 }
 0xdb4   : > { %v4001_v3 = vadd.f32 1e-05, %v3995_v1  ;;  %v3996_v48 = vsub.f32 %v3990_v2, %v3993_v63 }
 0xdb6   : > { %5483 = vrsqrt.f32 %v4001_v3  ;;  %v4002_v55 = vadd.f32 1e-05, %v3996_v48 }
 0xdb8   : > { %5485 = vrsqrt.f32 %v4002_v55 }
 0xdbf   : > { %v5482_v0 = vpop.eup %5481 }
 0xdc0   : > { %v4006_v5 = vmul.f32 %v5482_v0, %v3997_v4 }
 0xdc2   : > { %v4016_v6 = vmul.f32 %v4839_v44, %v4006_v5 }
 0xdc3   : > { %v5484_v9 = vpop.eup %5483 }
 0xdc4   : > { %v4026_v11 = vadd.f32 %v4840_v41, %v4016_v6  ;;  %v4007_v12 = vmul.f32 %v5484_v9, %v3998_v7 }
 0xdc5   : > { %v5486_v13 = vpop.eup %5485 }
 0xdc6   : > { %vm4029_vm8 = vcmp.ge.f32.partialorder %v4026_v11, 0.0  ;;  %v4032_v14 = vmul.f32 0.2, %v4026_v11  ;;  %v4017_v58 = vmul.f32 %v4839_v44, %v4007_v12  ;;  %v4008_v16 = vmul.f32 %v5486_v13, %v3999_v54  ;;  %v5444_v54 = vld [vmem:[%s6204_s25] sm:$0xff]  }
 0xdc7   : > { %5181 = vmatprep.subr.bf16.mxu0 %v5444_v54 }
 0xdc8   : > { %v4035_v17 = vsel %vm4029_vm8, %v4026_v11, %v4032_v14  ;;  %v4027_v18 = vadd.f32 %v4840_v41, %v4017_v58  ;;  %v4018_v19 = vmul.f32 %v4839_v44, %v4008_v16 }
 0xdc9   : > { %4038 = vst.msk [vmem:[#allocation2 + $0x8] sm:$0xff] %vm1408_vm1, %v4035_v17 }
 0xdca   : > { %vm4030_vm9 = vcmp.ge.f32.partialorder %v4027_v18, 0.0  ;;  %v4033_v15 = vmul.f32 0.2, %v4027_v18  ;;  %v4028_v8 = vadd.f32 %v4840_v41, %v4018_v19 }
 0xdcc   : > { %v4036_v60 = vsel %vm4030_vm9, %v4027_v18, %v4033_v15  ;;  %vm4031_vm10 = vcmp.ge.f32.partialorder %v4028_v8, 0.0  ;;  %v4034_v10 = vmul.f32 0.2, %v4028_v8 }
 0xdcd   : > { %4039 = vst.msk [vmem:[#allocation2 + $0x10] sm:$0xff] %vm1408_vm1, %v4036_v60 }
 0xdce   : > { %v4037_v21 = vsel %vm4031_vm10, %v4028_v8, %v4034_v10 }
 0xdcf   : > { %4040 = vst.msk [vmem:[#allocation2 + $0x18] sm:$0xff] %vm1408_vm1, %v4037_v21 }
 0xdd0   : > { %v4048_v22 = vld [vmem:[#allocation2 + $0x8] sm:$0xff] }
 0xdd1   : > { %v4041_v25 = vld [vmem:[#allocation2 + $0x6] sm:$0xff] }
 0xdd4   : > { %v4049_v23 = vld [vmem:[#allocation2 + $0x10] sm:$0xff] }
 0xdd5   : > { %v4042_v26 = vld [vmem:[#allocation2 + $0xe] sm:$0xff]  ;;  %v4051_v27 = vpack.c.bf16 %v4049_v23, %v4048_v22 }
 0xdd6   : > { %v4044_v28 = vpack.c.bf16 %v4042_v26, %v4041_v25  ;;  %v4176_v24 = vld [vmem:[#allocation2 + $0xa] sm:$0xff]  ;;  %v4050_v29 = vld [vmem:[#allocation2 + $0x18] sm:$0xff] }
 0xdd7   : > { %v4043_v30 = vld [vmem:[#allocation2 + $0x16] sm:$0xff]  ;;  %5165 = vmatprep.mubr.msk.bf16.mxu1 %vm1408_vm1, %v4051_v27  ;;  %v4052_v20 = vpack.c.bf16 %v4050_v29, %v4050_v29 }
 0xdd8   : > { %v4177_v31 = vld [vmem:[#allocation2 + $0x12] sm:$0xff]  ;;  %5171 = vmatprep.mubr.msk.bf16.mxu0 %vm1408_vm1, %v4044_v28  ;;  %v4045_v32 = vpack.c.bf16 %v4043_v30, %v4043_v30  ;;  %v4178_v35 = vld [vmem:[#allocation2 + $0x1a] sm:$0xff] }
 0xdd9   : > { %v4179_v33 = vpack.c.bf16 %v4177_v31, %v4176_v24  ;;  %5166 = vmatmul.mubr.msk.bf16.vlgmr.msra.gmra.mxu1 %vm1408_vm1, %v4052_v20  ;;  %v4180_v37 = vpack.c.bf16 %v4178_v35, %v4178_v35  ;;  %v4855_v31 = vld [vmem:[%s6807_s28] ss:$0 sm:$0xff] }
 0xdda   : > { %5172 = vmatmul.mubr.msk.bf16.vlgmr.msra.gmra.mxu0 %vm1408_vm1, %v4045_v32  ;;  %5176 = vmatpush3.bf16.msra.mxu1 %v6687_v39  ;;  %v4856_v32 = vld [vmem:[%s6199_s19] ss:$0 sm:$0xff] }
 0xddb   : > { %5177 = vmatprep.mubr.msk.bf16.mxu1 %vm1408_vm1, %v4179_v33  ;;  %5182 = vmatpush3.bf16.msra.mxu0 %v5444_v54 }
 0xde1   : > { %5178 = vmatmul.mubr.msk.bf16.vlgmr.msra.gmra.mxu1 %vm1408_vm1, %v4180_v37 }
 0xe99   : > { %v5167_v38 = vpop.f32.mrf.mxu1 }
 0xe9a   : > { %v5173_v40 = vpop.f32.mrf.mxu0 }
 0xe9b   : > { %v4102_v42 = vpop.f32.mrf.mxu1  ;;  %v4171_v51 = vadd.f32 %v5173_v40, %v5167_v38 }
 0xe9c   : > { %v4162_v43 = vpop.f32.mrf.mxu0 }
 0xe9d   : > { %v5168_v46 = vpop.f32.mrf.mxu1  ;;  %v4163_v56 = vadd.f32 %v4162_v43, %v4102_v42 }
 0xe9e   : > { %v5174_v47 = vpop.f32.mrf.mxu0 }
 0xe9f   : > { %v4105_v50 = vpop.f32.mrf.mxu1 }
 0xea0   : > { %v4165_v45 = vpop.f32.mrf.mxu0 }
 0xea1   : > { %v5179_v34 = vpop.f32.mrf.mxu1  ;;  %v4166_v63 = vadd.f32 %v4165_v45, %v4105_v50 }
 0xea2   : > { %v4246_v57 = vadd.f32 %v5179_v34, %v4171_v51 }
 0xea3   : > { %v4230_v39 = vpop.f32.mrf.mxu1 }
 0xea4   : > { %v6704_v36 = vadd.f32 %v4854_v53, %v4246_v57  ;;  %v4244_v49 = vadd.f32 %v4230_v39, %v4163_v56 }
 0xea5   : > { %v5180_v62 = vpop.f32.mrf.mxu1 }
 0xea6   : > { %v4254_v1 = vadd.f32 %v4854_v53, %v4244_v49  ;;  %v4263_v2 = vsel %vm1408_vm1, %v6704_v36, 0.0  ;;  %v4271_v7 = vmul.f32 %v6704_v36, %v6704_v36 }
 0xea7   : > { %v4233_v3 = vpop.f32.mrf.mxu1  ;;  %4264 = vadd.xlane.f32.xlu0 %v4263_v2 }
 0xea8   : > { %v4245_v48 = vadd.f32 %v4233_v3, %v4166_v63  ;;  %v4269_v55 = vmul.f32 %v4254_v1, %v4254_v1  ;;  %v4257_v44 = vsel %vm1408_vm1, %v4254_v1, 0.0  ;;  %v4278_v9 = vsel %vm1408_vm1, %v4271_v7, 0.0 }
 0xeaa   : > { %v4255_v4 = vadd.f32 %v4854_v53, %v4245_v48  ;;  %v4272_v0 = vsel %vm1408_vm1, %v4269_v55, 0.0 }
 0xeab   : > { %4273 = vadd.xlane.f32.xlu1 %v4272_v0  ;;  %4258 = vadd.xlane.f32.xlu0 %v4257_v44 }
 0xeac   : > { %v4270_v5 = vmul.f32 %v4255_v4, %v4255_v4  ;;  %v4260_v41 = vsel %vm1408_vm1, %v4255_v4, 0.0 }
 0xeae   : > { %v4275_v6 = vsel %vm1408_vm1, %v4270_v5, 0.0 }
 0xeaf   : > { %4261 = vadd.xlane.f32.xlu1 %v4260_v41  ;;  %4276 = vadd.xlane.f32.xlu0 %v4275_v6 }
 0xeb3   : > { %4279 = vadd.xlane.f32.xlu1 %v4278_v9 }
 0xf30   : > { %v4265_v11 = vpop.xlane.xlu0 %4264 }
 0xf31   : > { %v4268_v19 = vmul.f32 0.0625, %v4265_v11 }
 0xf33   : > { %v4286_v23 = vmul.f32 %v4268_v19, %v4268_v19  ;;  %v4292_v38 = vsub.f32 %v6704_v36, %v4268_v19 }
 0xf34   : > { %v4274_v12 = vpop.xlane.xlu1 %4273  ;;  %v4259_v13 = vpop.xlane.xlu0 %4258 }
 0xf35   : > { %v4266_v14 = vmul.f32 0.0625, %v4259_v13  ;;  %v4281_v58 = vmul.f32 0.0625, %v4274_v12 }
 0xf37   : > { %v4284_v16 = vmul.f32 %v4266_v14, %v4266_v14  ;;  %v4290_v29 = vsub.f32 %v4254_v1, %v4266_v14 }
 0xf38   : > { %v4262_v17 = vpop.xlane.xlu1 %4261  ;;  %v4277_v18 = vpop.xlane.xlu0 %4276 }
 0xf39   : > { %v4287_v15 = vsub.f32 %v4281_v58, %v4284_v16  ;;  %v4267_v8 = vmul.f32 0.0625, %v4262_v17  ;;  %v4282_v21 = vmul.f32 0.0625, %v4277_v18 }
 0xf3b   : > { %v4293_v60 = vadd.f32 1e-05, %v4287_v15  ;;  %v4285_v10 = vmul.f32 %v4267_v8, %v4267_v8  ;;  %v4291_v35 = vsub.f32 %v4255_v4, %v4267_v8 }
 0xf3c   : > { %v4280_v22 = vpop.xlane.xlu1 %4279 }
 0xf3d   : > { %5487 = vrsqrt.f32 %v4293_v60  ;;  %v4288_v25 = vsub.f32 %v4282_v21, %v4285_v10  ;;  %v4283_v26 = vmul.f32 0.0625, %v4280_v22 }
 0xf3f   : > { %v4294_v27 = vadd.f32 1e-05, %v4288_v25  ;;  %v4289_v28 = vsub.f32 %v4283_v26, %v4286_v23 }
 0xf41   : > { %5489 = vrsqrt.f32 %v4294_v27  ;;  %v4295_v24 = vadd.f32 1e-05, %v4289_v28 }
 0xf43   : > { %5491 = vrsqrt.f32 %v4295_v24 }
 0xf4a   : > { %v5488_v30 = vpop.eup %5487 }
 0xf4b   : > { %v4299_v20 = vmul.f32 %v5488_v30, %v4290_v29 }
 0xf4d   : > { %v4309_v33 = vmul.f32 %v4855_v31, %v4299_v20 }
 0xf4e   : > { %v5490_v37 = vpop.eup %5489 }
 0xf4f   : > { %v4319_v40 = vadd.f32 %v4856_v32, %v4309_v33  ;;  %v4300_v42 = vmul.f32 %v5490_v37, %v4291_v35 }
 0xf50   : > { %v5492_v43 = vpop.eup %5491 }
 0xf51   : > { %vm4322_vm11 = vcmp.ge.f32.partialorder %v4319_v40, 0.0  ;;  %v4325_v46 = vmul.f32 0.2, %v4319_v40  ;;  %v4310_v47 = vmul.f32 %v4855_v31, %v4300_v42  ;;  %v4301_v50 = vmul.f32 %v5492_v43, %v4292_v38 }
 0xf53   : > { %v4328_v51 = vsel %vm4322_vm11, %v4319_v40, %v4325_v46  ;;  %v4311_v34 = vmul.f32 %v4855_v31, %v4301_v50  ;;  %v4320_v53 = vadd.f32 %v4856_v32, %v4310_v47 }
 0xf54   : > { %v4331_v56 = vadd.f32 %v4328_v51, %v6652_v52 }
 0xf55   : > { %v4321_v57 = vadd.f32 %v4856_v32, %v4311_v34  ;;  %vm4323_vm12 = vcmp.ge.f32.partialorder %v4320_v53, 0.0  ;;  %v4326_v45 = vmul.f32 0.2, %v4320_v53 }
 0xf56   : > { %v4337_v62 = vmul.f32 0.2, %v4331_v56  ;;  %vm4334_vm14 = vcmp.ge.f32.partialorder %v4331_v56, 0.0 }
 0xf57   : > { %v4329_v39 = vsel %vm4323_vm12, %v4320_v53, %v4326_v45  ;;  %vm4324_vm13 = vcmp.ge.f32.partialorder %v4321_v57, 0.0  ;;  %v4327_v49 = vmul.f32 0.2, %v4321_v57 }
 0xf58   : > { %v4332_v36 = vadd.f32 %v4329_v39, %v6657_v59  ;;  %v4340_v3 = vsel %vm4334_vm14, %v4331_v56, %v4337_v62  ;;  %v4857_v59 = vld [vmem:[%s6209_s5] ss:$0 sm:$0xff] }
 0xf59   : > { %v4330_v63 = vsel %vm4324_vm13, %v4321_v57, %v4327_v49 }
 0xf5a   : > { %vm4335_vm15 = vcmp.ge.f32.partialorder %v4332_v36, 0.0  ;;  %v4338_v1 = vmul.f32 0.2, %v4332_v36  ;;  %v4333_v2 = vadd.f32 %v4330_v63, %v6662_v61 }
 0xf5c   : > { %v4341_v52 = vsel %vm4335_vm15, %v4332_v36, %v4338_v1  ;;  %vm4336_vm2 = vcmp.ge.f32.partialorder %v4333_v2, 0.0  ;;  %v4339_v48 = vmul.f32 0.2, %v4333_v2 }
 0xf5d   : > { %v4343_v55 = vpack.c.bf16 %v4341_v52, %v4340_v3 }
 0xf5e   : > { %v4342_v4 = vsel %vm4336_vm2, %v4333_v2, %v4339_v48 }
 0xf5f   : > { %5183 = vmatprep.mubr.msk.bf16.mxu0 %vm1408_vm1, %v4343_v55  ;;  %v4344_v0 = vpack.c.bf16 %v4342_v4, %v4342_v4 }
 0xf61   : > { %5184 = vmatmul.mubr.msk.bf16.vlgmr.msra.gmra.mxu0 %vm1408_vm1, %v4344_v0 }
0x1021   : > { %v5185_v44 = vpop.f32.mrf.mxu0 }
0x1022   : > { %v4409_v5 = vadd.f32 %v5185_v44, %v4857_v59 }
0x1023   : > { %v4400_v41 = vpop.f32.mrf.mxu0 }
0x1024   : > { %4417 = vst.msk [vmem:[%s1397_s18 + $0x10] sm:$0xff] %vm4414_vm0, %v4409_v5  ;;  %v4401_v61 = vadd.f32 %v4857_v59, %v4400_v41 }
0x1025   : > { %v5186_v6 = vpop.f32.mrf.mxu0 }
0x1026   : > { %4415 = vst.msk [vmem:[%s1397_s18] sm:$0xff] %vm4414_vm0, %v4401_v61 }
0x1027   : > { %v4403_v7 = vpop.f32.mrf.mxu0 }
0x1028   : > { %v4404_v9 = vadd.f32 %v4857_v59, %v4403_v7 }
0x102a   : > { %4416 = vst.msk [vmem:[%s1397_s18 + $0x8] sm:$0xff] %vm4414_vm0, %v4404_v9 }
0x102b PF: > { %s98_s22 = sadd.s32 1, %s5951_s22  }
0x102c   : > { %p95_p5 = scmp.ge.s32.totalorder %s98_s22, 4  }
0x102e   :  { %97 = sbr.rel (!%p95_p5) target bundleno = 79 (0x4f), region = 330 }
0x1033   :  { %4439 = vsyncpa [#allocation4], 1 }
0x1034   :  { %4441 = vsyncpa [#allocation4 + $0x1], 1 }
0x1035   :  { %4442 = vsyncpa [#allocation6], 1 }
0x1036   :  { %4443 = vsyncpa [#allocation9], 1 }
0x1037   :  { %4444 = vsyncpa [#allocation12], 1 }
0x1038   :  { %4445 = vsyncpa [#allocation15], 1 }
0x1039   :  { %4446 = vsyncpa [#allocation18], 1 }
0x103a   :  { %4447 = vsyncpa [#allocation21], 1 }
0x103b   :  { %4448 = vsyncpa [#allocation24], 1 }
0x103c   :  { %4449 = vsyncpa [#allocation27], 1 }

</bundles_post_ra>
